<compile_context>
chip_gen: v5e
topology: v5e:2x2
jax: 0.10.0
libtpu: 0.0.40
codegen_flags: <defaults>
</compile_context>

<pallas_src>
import functools

import jax
import jax.numpy as jnp
from jax.experimental import pallas as pl
from jax.experimental.pallas import tpu as pltpu

_PARALLEL_1D = pltpu.CompilerParams(dimension_semantics=("parallel",))


# ----------------------------- Pallas kernels ------------------------------

def _matmul_bias_kernel(x_ref, w_ref, b_ref, o_ref, *, relu):
    # x: (TR, K) bf16, w: (K, N) bf16, b: (1, N) f32 -> o: (TR, N) f32
    acc = jnp.dot(x_ref[...], w_ref[...], preferred_element_type=jnp.float32)
    acc = acc + b_ref[...]
    if relu:
        acc = jnp.maximum(acc, 0.0)
    o_ref[...] = acc.astype(o_ref.dtype)


def _pl_matmul_bias(x, w, b, relu, tile_rows=512):
    R, K = x.shape
    Cout = w.shape[1]
    tr = R if R <= tile_rows else tile_rows          # tile_rows is a multiple of 8
    return pl.pallas_call(
        functools.partial(_matmul_bias_kernel, relu=relu),
        out_shape=jax.ShapeDtypeStruct((R, Cout), jnp.float32),
        grid=(pl.cdiv(R, tr),),
        in_specs=[pl.BlockSpec((tr, K), lambda i: (i, 0)),
                  pl.BlockSpec((K, Cout), lambda i: (0, 0)),
                  pl.BlockSpec((1, Cout), lambda i: (0, 0))],
        out_specs=pl.BlockSpec((tr, Cout), lambda i: (i, 0)),
        compiler_params=_PARALLEL_1D,
    )(x, w, b)


def _tap_dw_kernel(x_ref, w_ref, b_ref, o_ref):
    # x: (9, TR, L), w: (9, L), b: (1, L) -> o: (TR, L); tap-by-tap accumulation (f32)
    w = w_ref[...]
    acc = x_ref[0] * w[0:1, :]
    for k in range(1, 9):
        acc = acc + x_ref[k] * w[k:k + 1, :]
    o_ref[...] = (acc + b_ref[...]).astype(o_ref.dtype)


def _pl_tap_dw(taps, w, b, tile_rows=128):
    _, R, L = taps.shape
    tr = R if R <= tile_rows else tile_rows
    return pl.pallas_call(
        _tap_dw_kernel,
        out_shape=jax.ShapeDtypeStruct((R, L), jnp.float32),
        grid=(pl.cdiv(R, tr),),
        in_specs=[pl.BlockSpec((9, tr, L), lambda i: (0, i, 0)),
                  pl.BlockSpec((9, L), lambda i: (0, 0)),
                  pl.BlockSpec((1, L), lambda i: (0, 0))],
        out_specs=pl.BlockSpec((tr, L), lambda i: (i, 0)),
        compiler_params=_PARALLEL_1D,
    )(taps, w, b)


def _tap_max_kernel(x_ref, o_ref):
    # x: (9, TR, L) -> o: (TR, L)
    m = x_ref[0]
    for k in range(1, 9):
        m = jnp.maximum(m, x_ref[k])
    o_ref[...] = m.astype(o_ref.dtype)


def _pl_tap_max(taps, tile_rows=128):
    _, R, L = taps.shape
    tr = R if R <= tile_rows else tile_rows
    return pl.pallas_call(
        _tap_max_kernel,
        out_shape=jax.ShapeDtypeStruct((R, L), jnp.float32),
        grid=(pl.cdiv(R, tr),),
        in_specs=[pl.BlockSpec((9, tr, L), lambda i: (0, i, 0))],
        out_specs=pl.BlockSpec((tr, L), lambda i: (i, 0)),
        compiler_params=_PARALLEL_1D,
    )(taps)


def _basic_unit_kernel(x_ref, w1_ref, b1_ref, wd_ref, bd_ref, w2_ref, b2_ref,
                       o_ref, pad_ref, z_ref, *, H, W, cb):
    # Fused ShuffleNetV2 basic unit (right branch): pw1(1x1)+BN+ReLU -> dw3x3+BN
    # -> pw2(1x1)+BN+ReLU.  Intermediates never leave VMEM.
    #   x_ref : (1, H*W, cb) bf16        w1/w2 : (cb, cb) bf16
    #   wd    : (9, cb) f32              b1/bd/b2 : (1, cb) f32
    #   pad_ref : (H+2, W+2, cb) f32 scratch (zero border)
    #   z_ref   : (H*W, cb) f32 scratch
    # pw1 on the MXU, f32 accumulation
    y1 = jnp.dot(x_ref[0], w1_ref[...], preferred_element_type=jnp.float32)
    y1 = jnp.maximum(y1 + b1_ref[...], 0.0)

    # scatter pw1 output into the zero-padded spatial scratch (row by row)
    pad_ref[...] = jnp.zeros_like(pad_ref)
    for h in range(H):
        pad_ref[h + 1, 1:W + 1, :] = y1[h * W:(h + 1) * W, :]

    # 3x3 depthwise conv + BN (no ReLU), taps built in-VMEM (no HBM im2col)
    wd = wd_ref[...]
    bd = bd_ref[...]
    for h in range(H):
        row = jnp.zeros((W, cb), jnp.float32)
        for kh in range(3):
            for kw in range(3):
                k = 3 * kh + kw
                row = row + pad_ref[h + kh, kw:kw + W, :] * wd[k:k + 1, :]
        z_ref[h * W:(h + 1) * W, :] = row + bd

    # pw2 on the MXU
    y2 = jnp.dot(z_ref[...].astype(jnp.bfloat16), w2_ref[...],
                 preferred_element_type=jnp.float32)
    y2 = jnp.maximum(y2 + b2_ref[...], 0.0)
    o_ref[0] = y2.astype(o_ref.dtype)


def _pl_basic_unit(x2, pw1, dwp, pw2):
    # TODO(synk): one batch element per grid step; spatially tile with halo for
    # large resolutions (fine for the small feature maps of this backbone test).
    N, H, W, cb = x2.shape
    x2f = x2.reshape(N, H * W, cb).astype(jnp.bfloat16)
    out = pl.pallas_call(
        functools.partial(_basic_unit_kernel, H=H, W=W, cb=cb),
        out_shape=jax.ShapeDtypeStruct((N, H * W, cb), jnp.float32),
        grid=(N,),
        in_specs=[
            pl.BlockSpec((1, H * W, cb), lambda n: (n, 0, 0)),
            pl.BlockSpec((cb, cb), lambda n: (0, 0)),
            pl.BlockSpec((1, cb), lambda n: (0, 0)),
            pl.BlockSpec((9, cb), lambda n: (0, 0)),
            pl.BlockSpec((1, cb), lambda n: (0, 0)),
            pl.BlockSpec((cb, cb), lambda n: (0, 0)),
            pl.BlockSpec((1, cb), lambda n: (0, 0)),
        ],
        out_specs=pl.BlockSpec((1, H * W, cb), lambda n: (n, 0, 0)),
        scratch_shapes=[pltpu.VMEM((H + 2, W + 2, cb), jnp.float32),
                        pltpu.VMEM((H * W, cb), jnp.float32)],
        compiler_params=_PARALLEL_1D,
    )(x2f, pw1['w'], pw1['b'], dwp['w'], dwp['b'], pw2['w'], pw2['b'])
    return out.reshape(N, H, W, cb)


# --------------------------------- layers -----------------------------------

def conv1x1_bn_relu(x, p, relu=True):
    N, H, W, Cin = x.shape
    xm = x.reshape(N * H * W, Cin).astype(jnp.bfloat16)
    out = _pl_matmul_bias(xm, p['w'], p['b'], relu)
    return out.reshape(N, H, W, -1)


def conv3x3_bn_relu_s2(x, p):
    # conv1: full 3x3 conv, stride 2, pad 1 -> im2col GEMM, taps built directly
    # in (R, 9*Cin) layout (single concat, no (R,9,C) stack + double reshape).
    N, H, W, Cin = x.shape
    xp = jnp.pad(x, ((0, 0), (1, 1), (1, 1), (0, 0)))
    Ho = (H - 1) // 2 + 1
    Wo = (W - 1) // 2 + 1
    taps = jnp.concatenate(
        [xp[:, kh:kh + 2 * (Ho - 1) + 1:2, kw:kw + 2 * (Wo - 1) + 1:2, :]
         for kh in range(3) for kw in range(3)], axis=-1)
    xm = taps.reshape(N * Ho * Wo, 9 * Cin).astype(jnp.bfloat16)
    out = _pl_matmul_bias(xm, p['w'], p['b'], relu=True)
    return out.reshape(N, Ho, Wo, -1)


def _stride2_taps(xp, Ho, Wo):
    # 9 stride-2 taps, each flattened to (N*Ho, Wo*C) so the lane dim is dense.
    N, _, _, C = xp.shape
    return jnp.stack(
        [xp[:, kh:kh + 2 * (Ho - 1) + 1:2, kw:kw + 2 * (Wo - 1) + 1:2, :]
         .reshape(N * Ho, Wo * C)
         for kh in range(3) for kw in range(3)], axis=0)


def dwconv3x3_bn_s2(x, p):
    # TODO(synk): the stride-2 path (3 down-units + maxpool only) still extracts its
    # 9 taps in XLA; the common stride-1 depthwise is built fully in-kernel (fused).
    N, H, W, C = x.shape
    xp = jnp.pad(x, ((0, 0), (1, 1), (1, 1), (0, 0)))
    Ho = (H - 1) // 2 + 1
    Wo = (W - 1) // 2 + 1
    taps = _stride2_taps(xp, Ho, Wo)
    w = jnp.tile(p['w'].reshape(9, 1, C), (1, Wo, 1)).reshape(9, Wo * C)
    b = jnp.tile(p['b'].reshape(1, 1, C), (1, Wo, 1)).reshape(1, Wo * C)
    out = _pl_tap_dw(taps, w, b)
    return out.reshape(N, Ho, Wo, C)


def maxpool3x3_s2(x):
    N, H, W, C = x.shape
    xp = jnp.pad(x, ((0, 0), (1, 1), (1, 1), (0, 0)), constant_values=-jnp.inf)
    Ho = (H - 1) // 2 + 1
    Wo = (W - 1) // 2 + 1
    taps = _stride2_taps(xp, Ho, Wo)
    out = _pl_tap_max(taps)
    return out.reshape(N, Ho, Wo, C)


def channel_shuffle(x, groups=2):
    N, H, W, C = x.shape
    x = x.reshape(N, H, W, groups, C // groups)
    x = jnp.transpose(x, (0, 1, 2, 4, 3))
    return x.reshape(N, H, W, C)


def basic_unit(x, p):
    cb = x.shape[-1] // 2
    x1, x2 = x[..., :cb], x[..., cb:]
    y = _pl_basic_unit(x2, p['pw1'], p['dw'], p['pw2'])
    out = jnp.concatenate([x1, y], axis=-1)
    return channel_shuffle(out, 2)


def down_unit(x, p):
    b1 = dwconv3x3_bn_s2(x, p['b1_dw'])
    b1 = conv1x1_bn_relu(b1, p['b1_pw'])
    b2 = conv1x1_bn_relu(x, p['b2_pw1'])
    b2 = dwconv3x3_bn_s2(b2, p['b2_dw'])
    b2 = conv1x1_bn_relu(b2, p['b2_pw2'])
    out = jnp.concatenate([b1, b2], axis=-1)
    return channel_shuffle(out, 2)


def run_stage(x, blocks):
    for i, p in enumerate(blocks):
        x = down_unit(x, p) if i == 0 else basic_unit(x, p)
    return x


def shufflenet_v2_backbone(x_nchw, params, feature_levels=(3, 4, 5)):
    x = jnp.transpose(x_nchw, (0, 2, 3, 1)).astype(jnp.float32)  # NCHW -> NHWC
    forward_levels = tuple(range(1, feature_levels[-1] + 1))
    outs = []
    x = conv3x3_bn_relu_s2(x, params['conv1'])                   # layer1 = conv1
    if 1 in feature_levels:
        outs.append(x)
    x = maxpool3x3_s2(x)                                         # layer2 = maxpool
    if 2 in feature_levels:
        outs.append(x)
    x = run_stage(x, params['stage2'])                           # layer3 = stage2
    if 3 in feature_levels:
        outs.append(x)
    x = run_stage(x, params['stage3'])                           # layer4 = stage3
    if 4 in feature_levels:
        outs.append(x)
    if 5 in forward_levels:                                      # layer5 = stage4 + conv5
        x = run_stage(x, params['stage4'])
        x = conv1x1_bn_relu(x, params['conv5'])
        if 5 in feature_levels:
            outs.append(x)
    return [jnp.transpose(o, (0, 3, 1, 2)) for o in outs]        # back to NCHW


# --------------------------- deterministic params ---------------------------

class _ParamGen:
    def __init__(self, key):
        self._key = key

    def normal(self, shape, scale=0.1):
        self._key, sub = jax.random.split(self._key)
        return scale * jax.random.normal(sub, shape, jnp.float32)

    def _bn(self, c, eps=1e-5):
        gamma = 1.0 + self.normal((c,), 0.05)
        beta = self.normal((c,), 0.05)
        running_mean = jnp.zeros((c,), jnp.float32)
        running_var = jnp.ones((c,), jnp.float32)
        scale = gamma / jnp.sqrt(running_var + eps)
        bias = beta - running_mean * scale
        return scale, bias

    def conv_bn(self, shape):
        scale, bias = self._bn(shape[-1])
        return {'w': self.normal(shape), 'scale': scale, 'bias': bias}

    def dw_bn(self, c):
        scale, bias = self._bn(c)
        return {'w': self.normal((3, 3, c)), 'scale': scale, 'bias': bias}


def make_params(mult=0.5):
    channel_table = {0.5: [24, 48, 96, 192, 1024],
                     1.0: [24, 116, 232, 464, 1024],
                     1.5: [24, 176, 352, 704, 1024],
                     2.0: [24, 244, 488, 976, 2048]}
    channels = channel_table[mult]
    repeats = [4, 8, 4]
    pg = _ParamGen(jax.random.PRNGKey(42))
    params = {'conv1': pg.conv_bn((3, 3, 3, channels[0]))}
    in_c = channels[0]
    for si, (out_c, rep) in enumerate(zip(channels[1:4], repeats)):
        cb = out_c // 2
        blocks = [{
            'b1_dw': pg.dw_bn(in_c),
            'b1_pw': pg.conv_bn((in_c, cb)),
            'b2_pw1': pg.conv_bn((in_c, cb)),
            'b2_dw': pg.dw_bn(cb),
            'b2_pw2': pg.conv_bn((cb, cb)),
        }]
        for _ in range(rep - 1):
            blocks.append({
                'pw1': pg.conv_bn((cb, cb)),
                'dw': pg.dw_bn(cb),
                'pw2': pg.conv_bn((cb, cb)),
            })
        params[f'stage{si + 2}'] = blocks
        in_c = out_c
    params['conv5'] = pg.conv_bn((in_c, channels[4]))
    return params


def fold_bn_params(params):
    # One-time BN fold (inference semantics) + dtype prep:
    #   GEMM weights -> (K, Cout) bf16, depthwise weights -> (9, C) f32, biases f32.
    def gemm(p):
        w = p['w'] * p['scale']
        return {'w': w.reshape(-1, w.shape[-1]).astype(jnp.bfloat16),
                'b': p['bias'].reshape(1, -1).astype(jnp.float32)}

    def dw(p):
        w = p['w'] * p['scale']
        return {'w': w.reshape(9, -1).astype(jnp.float32),
                'b': p['bias'].reshape(1, -1).astype(jnp.float32)}

    out = {'conv1': gemm(params['conv1']), 'conv5': gemm(params['conv5'])}
    for s in ('stage2', 'stage3', 'stage4'):
        blocks = []
        for bp in params[s]:
            if 'b1_dw' in bp:
                blocks.append({'b1_dw': dw(bp['b1_dw']), 'b1_pw': gemm(bp['b1_pw']),
                               'b2_pw1': gemm(bp['b2_pw1']), 'b2_dw': dw(bp['b2_dw']),
                               'b2_pw2': gemm(bp['b2_pw2'])})
            else:
                blocks.append({'pw1': gemm(bp['pw1']), 'dw': dw(bp['dw']),
                               'pw2': gemm(bp['pw2'])})
        out[s] = blocks
    return out


# ----------------------------------- main -----------------------------------

if __name__ == "__main__":
    key = jax.random.PRNGKey(0)
    x = jax.random.normal(key, (2, 3, 32, 32), jnp.float32)      # NCHW, like PyTorch
    raw_params = make_params(mult=0.5)
    params = fold_bn_params(raw_params)                          # BN folded once, up front

    fwd = jax.jit(functools.partial(shufflenet_v2_backbone, feature_levels=(3, 4, 5)))
    outs = fwd(x, params)
    outs = jax.block_until_ready(outs)

    # expected (mult=0.5, 32x32 input): [(2,48,4,4), (2,96,2,2), (2,1024,1,1)]
    assert outs[0].shape == (2, 48, 4, 4)
    assert outs[1].shape == (2, 96, 2, 2)
    assert outs[2].shape == (2, 1024, 1, 1)
    print("KERNEL_OK")
</pallas_src>

<mosaic_0001>
module attributes {stable_mosaic.version = 11 : i64} {
  func.func @_matmul_bias_kernel(%arg0: i32, %arg1: memref<512x27xbf16, #tpu.memory_space<vmem>>, %arg2: memref<27x24xbf16, #tpu.memory_space<vmem>>, %arg3: memref<1x24xf32, #tpu.memory_space<vmem>>, %arg4: memref<512x24xf32, #tpu.memory_space<vmem>>) attributes {dimension_semantics = [#tpu.dimension_semantics<parallel>], iteration_bounds = array<i64: 1>, scalar_prefetch = 0 : i64, scratch_operands = 0 : i64, tpu.core_type = #tpu.core_type<tc>, window_params = [{transform_indices = @transform_0, window_bounds = array<i64: 512, 27>}, {pipeline_mode = #tpu.pipeline_mode<synchronous>, transform_indices = @transform_1, window_bounds = array<i64: 27, 24>}, {pipeline_mode = #tpu.pipeline_mode<synchronous>, transform_indices = @transform_2, window_bounds = array<i64: 1, 24>}, {transform_indices = @transform_3, window_bounds = array<i64: 512, 24>}]} {
    %c0 = arith.constant 0 : index
    %c0_0 = arith.constant 0 : index
    %0 = vector.load %arg1[%c0, %c0_0] : memref<512x27xbf16, #tpu.memory_space<vmem>>, vector<512x27xbf16>
    %c0_1 = arith.constant 0 : index
    %c0_2 = arith.constant 0 : index
    %1 = vector.load %arg2[%c0_1, %c0_2] : memref<27x24xbf16, #tpu.memory_space<vmem>>, vector<27x24xbf16>
    %cst = arith.constant dense<0.000000e+00> : vector<512x24xf32>
    %2 = tpu.matmul %0, %1, %cst {dimension_numbers = #tpu.dot_dimension_numbers<[1], [0], [0], [1], [0, 0, 1, 1], [], []>} : vector<512x27xbf16>, vector<27x24xbf16>, vector<512x24xf32> -> vector<512x24xf32>
    %c0_3 = arith.constant 0 : index
    %c0_4 = arith.constant 0 : index
    %3 = vector.load %arg3[%c0_3, %c0_4] : memref<1x24xf32, #tpu.memory_space<vmem>>, vector<1x24xf32>
    %4 = vector.broadcast %3 : vector<1x24xf32> to vector<512x24xf32>
    %5 = arith.addf %2, %4 : vector<512x24xf32>
    %cst_5 = arith.constant 0.000000e+00 : f32
    %6 = vector.broadcast %cst_5 : f32 to vector<512x24xf32>
    %7 = arith.maximumf %5, %6 : vector<512x24xf32>
    %c0_6 = arith.constant 0 : index
    %c0_7 = arith.constant 0 : index
    %8 = vector.load %arg4[%c0_6, %c0_7] : memref<512x24xf32, #tpu.memory_space<vmem>>, vector<512x24xf32>
    tpu.vector_store %arg4[%c0_6, %c0_7], %7 {strides = array<i32>} : memref<512x24xf32, #tpu.memory_space<vmem>>, vector<512x24xf32>,
    return
  }
  func.func @transform_0(%arg0: i32) -> (i32, i32) {
    %c0_i32 = arith.constant 0 : i32
    %c0_i32_0 = arith.constant 0 : i32
    return %arg0, %c0_i32 : i32, i32
  }
  func.func @transform_1(%arg0: i32) -> (i32, i32) {
    %c0_i32 = arith.constant 0 : i32
    %c0_i32_0 = arith.constant 0 : i32
    %c0_i32_1 = arith.constant 0 : i32
    return %c0_i32, %c0_i32_0 : i32, i32
  }
  func.func @transform_2(%arg0: i32) -> (i32, i32) {
    %c0_i32 = arith.constant 0 : i32
    %c0_i32_0 = arith.constant 0 : i32
    %c0_i32_1 = arith.constant 0 : i32
    return %c0_i32, %c0_i32_0 : i32, i32
  }
  func.func @transform_3(%arg0: i32) -> (i32, i32) {
    %c0_i32 = arith.constant 0 : i32
    %c0_i32_0 = arith.constant 0 : i32
    return %arg0, %c0_i32 : i32, i32
  }
}

module attributes {stable_mosaic.version = 11 : i64} {
  func.func @_tap_max_kernel(%arg0: i32, %arg1: memref<9x16x192xf32, #tpu.memory_space<vmem>>, %arg2: memref<16x192xf32, #tpu.memory_space<vmem>>) attributes {dimension_semantics = [#tpu.dimension_semantics<parallel>], iteration_bounds = array<i64: 1>, scalar_prefetch = 0 : i64, scratch_operands = 0 : i64, tpu.core_type = #tpu.core_type<tc>, window_params = [{transform_indices = @transform_0, window_bounds = array<i64: 9, 16, 192>}, {transform_indices = @transform_1, window_bounds = array<i64: 16, 192>}]} {
    %c0 = arith.constant 0 : index
    %c0_0 = arith.constant 0 : index
    %c0_1 = arith.constant 0 : index
    %0 = vector.load %arg1[%c0, %c0_0, %c0_1] : memref<9x16x192xf32, #tpu.memory_space<vmem>>, vector<1x16x192xf32>
    %1 = vector.shape_cast %0 : vector<1x16x192xf32> to vector<16x192xf32>
    %c1 = arith.constant 1 : index
    %c0_2 = arith.constant 0 : index
    %c0_3 = arith.constant 0 : index
    %2 = vector.load %arg1[%c1, %c0_2, %c0_3] : memref<9x16x192xf32, #tpu.memory_space<vmem>>, vector<1x16x192xf32>
    %3 = vector.shape_cast %2 : vector<1x16x192xf32> to vector<16x192xf32>
    %4 = arith.maximumf %1, %3 : vector<16x192xf32>
    %c2 = arith.constant 2 : index
    %c0_4 = arith.constant 0 : index
    %c0_5 = arith.constant 0 : index
    %5 = vector.load %arg1[%c2, %c0_4, %c0_5] : memref<9x16x192xf32, #tpu.memory_space<vmem>>, vector<1x16x192xf32>
    %6 = vector.shape_cast %5 : vector<1x16x192xf32> to vector<16x192xf32>
    %7 = arith.maximumf %4, %6 : vector<16x192xf32>
    %c3 = arith.constant 3 : index
    %c0_6 = arith.constant 0 : index
    %c0_7 = arith.constant 0 : index
    %8 = vector.load %arg1[%c3, %c0_6, %c0_7] : memref<9x16x192xf32, #tpu.memory_space<vmem>>, vector<1x16x192xf32>
    %9 = vector.shape_cast %8 : vector<1x16x192xf32> to vector<16x192xf32>
    %10 = arith.maximumf %7, %9 : vector<16x192xf32>
    %c4 = arith.constant 4 : index
    %c0_8 = arith.constant 0 : index
    %c0_9 = arith.constant 0 : index
    %11 = vector.load %arg1[%c4, %c0_8, %c0_9] : memref<9x16x192xf32, #tpu.memory_space<vmem>>, vector<1x16x192xf32>
    %12 = vector.shape_cast %11 : vector<1x16x192xf32> to vector<16x192xf32>
    %13 = arith.maximumf %10, %12 : vector<16x192xf32>
    %c5 = arith.constant 5 : index
    %c0_10 = arith.constant 0 : index
    %c0_11 = arith.constant 0 : index
    %14 = vector.load %arg1[%c5, %c0_10, %c0_11] : memref<9x16x192xf32, #tpu.memory_space<vmem>>, vector<1x16x192xf32>
    %15 = vector.shape_cast %14 : vector<1x16x192xf32> to vector<16x192xf32>
    %16 = arith.maximumf %13, %15 : vector<16x192xf32>
    %c6 = arith.constant 6 : index
    %c0_12 = arith.constant 0 : index
    %c0_13 = arith.constant 0 : index
    %17 = vector.load %arg1[%c6, %c0_12, %c0_13] : memref<9x16x192xf32, #tpu.memory_space<vmem>>, vector<1x16x192xf32>
    %18 = vector.shape_cast %17 : vector<1x16x192xf32> to vector<16x192xf32>
    %19 = arith.maximumf %16, %18 : vector<16x192xf32>
    %c7 = arith.constant 7 : index
    %c0_14 = arith.constant 0 : index
    %c0_15 = arith.constant 0 : index
    %20 = vector.load %arg1[%c7, %c0_14, %c0_15] : memref<9x16x192xf32, #tpu.memory_space<vmem>>, vector<1x16x192xf32>
    %21 = vector.shape_cast %20 : vector<1x16x192xf32> to vector<16x192xf32>
    %22 = arith.maximumf %19, %21 : vector<16x192xf32>
    %c8 = arith.constant 8 : index
    %c0_16 = arith.constant 0 : index
    %c0_17 = arith.constant 0 : index
    %23 = vector.load %arg1[%c8, %c0_16, %c0_17] : memref<9x16x192xf32, #tpu.memory_space<vmem>>, vector<1x16x192xf32>
    %24 = vector.shape_cast %23 : vector<1x16x192xf32> to vector<16x192xf32>
    %25 = arith.maximumf %22, %24 : vector<16x192xf32>
    %c0_18 = arith.constant 0 : index
    %c0_19 = arith.constant 0 : index
    %26 = vector.load %arg2[%c0_18, %c0_19] : memref<16x192xf32, #tpu.memory_space<vmem>>, vector<16x192xf32>
    tpu.vector_store %arg2[%c0_18, %c0_19], %25 {strides = array<i32>} : memref<16x192xf32, #tpu.memory_space<vmem>>, vector<16x192xf32>,
    return
  }
  func.func @transform_0(%arg0: i32) -> (i32, i32, i32) {
    %c0_i32 = arith.constant 0 : i32
    %c0_i32_0 = arith.constant 0 : i32
    %c0_i32_1 = arith.constant 0 : i32
    return %c0_i32, %arg0, %c0_i32_0 : i32, i32, i32
  }
  func.func @transform_1(%arg0: i32) -> (i32, i32) {
    %c0_i32 = arith.constant 0 : i32
    %c0_i32_0 = arith.constant 0 : i32
    return %arg0, %c0_i32 : i32, i32
  }
}

module attributes {stable_mosaic.version = 11 : i64} {
  func.func @_tap_dw_kernel(%arg0: i32, %arg1: memref<9x8x96xf32, #tpu.memory_space<vmem>>, %arg2: memref<9x96xf32, #tpu.memory_space<vmem>>, %arg3: memref<1x96xf32, #tpu.memory_space<vmem>>, %arg4: memref<8x96xf32, #tpu.memory_space<vmem>>) attributes {dimension_semantics = [#tpu.dimension_semantics<parallel>], iteration_bounds = array<i64: 1>, scalar_prefetch = 0 : i64, scratch_operands = 0 : i64, tpu.core_type = #tpu.core_type<tc>, window_params = [{transform_indices = @transform_0, window_bounds = array<i64: 9, 8, 96>}, {pipeline_mode = #tpu.pipeline_mode<synchronous>, transform_indices = @transform_1, window_bounds = array<i64: 9, 96>}, {pipeline_mode = #tpu.pipeline_mode<synchronous>, transform_indices = @transform_2, window_bounds = array<i64: 1, 96>}, {transform_indices = @transform_3, window_bounds = array<i64: 8, 96>}]} {
    %c0 = arith.constant 0 : index
    %c0_0 = arith.constant 0 : index
    %0 = vector.load %arg2[%c0, %c0_0] : memref<9x96xf32, #tpu.memory_space<vmem>>, vector<9x96xf32>
    %c0_1 = arith.constant 0 : index
    %c0_2 = arith.constant 0 : index
    %c0_3 = arith.constant 0 : index
    %1 = vector.load %arg1[%c0_1, %c0_2, %c0_3] : memref<9x8x96xf32, #tpu.memory_space<vmem>>, vector<1x8x96xf32>
    %2 = vector.shape_cast %1 : vector<1x8x96xf32> to vector<8x96xf32>
    %3 = vector.extract_strided_slice %0 {offsets = [0, 0], sizes = [1, 96], strides = [1, 1]} : vector<9x96xf32> to vector<1x96xf32>
    %4 = vector.broadcast %3 : vector<1x96xf32> to vector<8x96xf32>
    %5 = arith.mulf %2, %4 : vector<8x96xf32>
    %c1 = arith.constant 1 : index
    %c0_4 = arith.constant 0 : index
    %c0_5 = arith.constant 0 : index
    %6 = vector.load %arg1[%c1, %c0_4, %c0_5] : memref<9x8x96xf32, #tpu.memory_space<vmem>>, vector<1x8x96xf32>
    %7 = vector.shape_cast %6 : vector<1x8x96xf32> to vector<8x96xf32>
    %8 = vector.extract_strided_slice %0 {offsets = [1, 0], sizes = [1, 96], strides = [1, 1]} : vector<9x96xf32> to vector<1x96xf32>
    %9 = vector.broadcast %8 : vector<1x96xf32> to vector<8x96xf32>
    %10 = arith.mulf %7, %9 : vector<8x96xf32>
    %11 = arith.addf %5, %10 : vector<8x96xf32>
    %c2 = arith.constant 2 : index
    %c0_6 = arith.constant 0 : index
    %c0_7 = arith.constant 0 : index
    %12 = vector.load %arg1[%c2, %c0_6, %c0_7] : memref<9x8x96xf32, #tpu.memory_space<vmem>>, vector<1x8x96xf32>
    %13 = vector.shape_cast %12 : vector<1x8x96xf32> to vector<8x96xf32>
    %14 = vector.extract_strided_slice %0 {offsets = [2, 0], sizes = [1, 96], strides = [1, 1]} : vector<9x96xf32> to vector<1x96xf32>
    %15 = vector.broadcast %14 : vector<1x96xf32> to vector<8x96xf32>
    %16 = arith.mulf %13, %15 : vector<8x96xf32>
    %17 = arith.addf %11, %16 : vector<8x96xf32>
    %c3 = arith.constant 3 : index
    %c0_8 = arith.constant 0 : index
    %c0_9 = arith.constant 0 : index
    %18 = vector.load %arg1[%c3, %c0_8, %c0_9] : memref<9x8x96xf32, #tpu.memory_space<vmem>>, vector<1x8x96xf32>
    %19 = vector.shape_cast %18 : vector<1x8x96xf32> to vector<8x96xf32>
    %20 = vector.extract_strided_slice %0 {offsets = [3, 0], sizes = [1, 96], strides = [1, 1]} : vector<9x96xf32> to vector<1x96xf32>
    %21 = vector.broadcast %20 : vector<1x96xf32> to vector<8x96xf32>
    %22 = arith.mulf %19, %21 : vector<8x96xf32>
    %23 = arith.addf %17, %22 : vector<8x96xf32>
    %c4 = arith.constant 4 : index
    %c0_10 = arith.constant 0 : index
    %c0_11 = arith.constant 0 : index
    %24 = vector.load %arg1[%c4, %c0_10, %c0_11] : memref<9x8x96xf32, #tpu.memory_space<vmem>>, vector<1x8x96xf32>
    %25 = vector.shape_cast %24 : vector<1x8x96xf32> to vector<8x96xf32>
    %26 = vector.extract_strided_slice %0 {offsets = [4, 0], sizes = [1, 96], strides = [1, 1]} : vector<9x96xf32> to vector<1x96xf32>
    %27 = vector.broadcast %26 : vector<1x96xf32> to vector<8x96xf32>
    %28 = arith.mulf %25, %27 : vector<8x96xf32>
    %29 = arith.addf %23, %28 : vector<8x96xf32>
    %c5 = arith.constant 5 : index
    %c0_12 = arith.constant 0 : index
    %c0_13 = arith.constant 0 : index
    %30 = vector.load %arg1[%c5, %c0_12, %c0_13] : memref<9x8x96xf32, #tpu.memory_space<vmem>>, vector<1x8x96xf32>
    %31 = vector.shape_cast %30 : vector<1x8x96xf32> to vector<8x96xf32>
    %32 = vector.extract_strided_slice %0 {offsets = [5, 0], sizes = [1, 96], strides = [1, 1]} : vector<9x96xf32> to vector<1x96xf32>
    %33 = vector.broadcast %32 : vector<1x96xf32> to vector<8x96xf32>
    %34 = arith.mulf %31, %33 : vector<8x96xf32>
    %35 = arith.addf %29, %34 : vector<8x96xf32>
    %c6 = arith.constant 6 : index
    %c0_14 = arith.constant 0 : index
    %c0_15 = arith.constant 0 : index
    %36 = vector.load %arg1[%c6, %c0_14, %c0_15] : memref<9x8x96xf32, #tpu.memory_space<vmem>>, vector<1x8x96xf32>
    %37 = vector.shape_cast %36 : vector<1x8x96xf32> to vector<8x96xf32>
    %38 = vector.extract_strided_slice %0 {offsets = [6, 0], sizes = [1, 96], strides = [1, 1]} : vector<9x96xf32> to vector<1x96xf32>
    %39 = vector.broadcast %38 : vector<1x96xf32> to vector<8x96xf32>
    %40 = arith.mulf %37, %39 : vector<8x96xf32>
    %41 = arith.addf %35, %40 : vector<8x96xf32>
    %c7 = arith.constant 7 : index
    %c0_16 = arith.constant 0 : index
    %c0_17 = arith.constant 0 : index
    %42 = vector.load %arg1[%c7, %c0_16, %c0_17] : memref<9x8x96xf32, #tpu.memory_space<vmem>>, vector<1x8x96xf32>
    %43 = vector.shape_cast %42 : vector<1x8x96xf32> to vector<8x96xf32>
    %44 = vector.extract_strided_slice %0 {offsets = [7, 0], sizes = [1, 96], strides = [1, 1]} : vector<9x96xf32> to vector<1x96xf32>
    %45 = vector.broadcast %44 : vector<1x96xf32> to vector<8x96xf32>
    %46 = arith.mulf %43, %45 : vector<8x96xf32>
    %47 = arith.addf %41, %46 : vector<8x96xf32>
    %c8 = arith.constant 8 : index
    %c0_18 = arith.constant 0 : index
    %c0_19 = arith.constant 0 : index
    %48 = vector.load %arg1[%c8, %c0_18, %c0_19] : memref<9x8x96xf32, #tpu.memory_space<vmem>>, vector<1x8x96xf32>
    %49 = vector.shape_cast %48 : vector<1x8x96xf32> to vector<8x96xf32>
    %50 = vector.extract_strided_slice %0 {offsets = [8, 0], sizes = [1, 96], strides = [1, 1]} : vector<9x96xf32> to vector<1x96xf32>
    %51 = vector.broadcast %50 : vector<1x96xf32> to vector<8x96xf32>
    %52 = arith.mulf %49, %51 : vector<8x96xf32>
    %53 = arith.addf %47, %52 : vector<8x96xf32>
    %c0_20 = arith.constant 0 : index
    %c0_21 = arith.constant 0 : index
    %54 = vector.load %arg3[%c0_20, %c0_21] : memref<1x96xf32, #tpu.memory_space<vmem>>, vector<1x96xf32>
    %55 = vector.broadcast %54 : vector<1x96xf32> to vector<8x96xf32>
    %56 = arith.addf %53, %55 : vector<8x96xf32>
    %c0_22 = arith.constant 0 : index
    %c0_23 = arith.constant 0 : index
    %57 = vector.load %arg4[%c0_22, %c0_23] : memref<8x96xf32, #tpu.memory_space<vmem>>, vector<8x96xf32>
    tpu.vector_store %arg4[%c0_22, %c0_23], %56 {strides = array<i32>} : memref<8x96xf32, #tpu.memory_space<vmem>>, vector<8x96xf32>,
    return
  }
  func.func @transform_0(%arg0: i32) -> (i32, i32, i32) {
    %c0_i32 = arith.constant 0 : i32
    %c0_i32_0 = arith.constant 0 : i32
    %c0_i32_1 = arith.constant 0 : i32
    return %c0_i32, %arg0, %c0_i32_0 : i32, i32, i32
  }
  func.func @transform_1(%arg0: i32) -> (i32, i32) {
    %c0_i32 = arith.constant 0 : i32
    %c0_i32_0 = arith.constant 0 : i32
    %c0_i32_1 = arith.constant 0 : i32
    return %c0_i32, %c0_i32_0 : i32, i32
  }
  func.func @transform_2(%arg0: i32) -> (i32, i32) {
    %c0_i32 = arith.constant 0 : i32
    %c0_i32_0 = arith.constant 0 : i32
    %c0_i32_1 = arith.constant 0 : i32
    return %c0_i32, %c0_i32_0 : i32, i32
  }
  func.func @transform_3(%arg0: i32) -> (i32, i32) {
    %c0_i32 = arith.constant 0 : i32
    %c0_i32_0 = arith.constant 0 : i32
    return %arg0, %c0_i32 : i32, i32
  }
}

module attributes {stable_mosaic.version = 11 : i64} {
  func.func @_matmul_bias_kernel(%arg0: i32, %arg1: memref<128x24xbf16, #tpu.memory_space<vmem>>, %arg2: memref<24x24xbf16, #tpu.memory_space<vmem>>, %arg3: memref<1x24xf32, #tpu.memory_space<vmem>>, %arg4: memref<128x24xf32, #tpu.memory_space<vmem>>) attributes {dimension_semantics = [#tpu.dimension_semantics<parallel>], iteration_bounds = array<i64: 1>, scalar_prefetch = 0 : i64, scratch_operands = 0 : i64, tpu.core_type = #tpu.core_type<tc>, window_params = [{transform_indices = @transform_0, window_bounds = array<i64: 128, 24>}, {pipeline_mode = #tpu.pipeline_mode<synchronous>, transform_indices = @transform_1, window_bounds = array<i64: 24, 24>}, {pipeline_mode = #tpu.pipeline_mode<synchronous>, transform_indices = @transform_2, window_bounds = array<i64: 1, 24>}, {transform_indices = @transform_3, window_bounds = array<i64: 128, 24>}]} {
    %c0 = arith.constant 0 : index
    %c0_0 = arith.constant 0 : index
    %0 = vector.load %arg1[%c0, %c0_0] : memref<128x24xbf16, #tpu.memory_space<vmem>>, vector<128x24xbf16>
    %c0_1 = arith.constant 0 : index
    %c0_2 = arith.constant 0 : index
    %1 = vector.load %arg2[%c0_1, %c0_2] : memref<24x24xbf16, #tpu.memory_space<vmem>>, vector<24x24xbf16>
    %cst = arith.constant dense<0.000000e+00> : vector<128x24xf32>
    %2 = tpu.matmul %0, %1, %cst {dimension_numbers = #tpu.dot_dimension_numbers<[1], [0], [0], [1], [0, 0, 1, 1], [], []>} : vector<128x24xbf16>, vector<24x24xbf16>, vector<128x24xf32> -> vector<128x24xf32>
    %c0_3 = arith.constant 0 : index
    %c0_4 = arith.constant 0 : index
    %3 = vector.load %arg3[%c0_3, %c0_4] : memref<1x24xf32, #tpu.memory_space<vmem>>, vector<1x24xf32>
    %4 = vector.broadcast %3 : vector<1x24xf32> to vector<128x24xf32>
    %5 = arith.addf %2, %4 : vector<128x24xf32>
    %cst_5 = arith.constant 0.000000e+00 : f32
    %6 = vector.broadcast %cst_5 : f32 to vector<128x24xf32>
    %7 = arith.maximumf %5, %6 : vector<128x24xf32>
    %c0_6 = arith.constant 0 : index
    %c0_7 = arith.constant 0 : index
    %8 = vector.load %arg4[%c0_6, %c0_7] : memref<128x24xf32, #tpu.memory_space<vmem>>, vector<128x24xf32>
    tpu.vector_store %arg4[%c0_6, %c0_7], %7 {strides = array<i32>} : memref<128x24xf32, #tpu.memory_space<vmem>>, vector<128x24xf32>,
    return
  }
  func.func @transform_0(%arg0: i32) -> (i32, i32) {
    %c0_i32 = arith.constant 0 : i32
    %c0_i32_0 = arith.constant 0 : i32
    return %arg0, %c0_i32 : i32, i32
  }
  func.func @transform_1(%arg0: i32) -> (i32, i32) {
    %c0_i32 = arith.constant 0 : i32
    %c0_i32_0 = arith.constant 0 : i32
    %c0_i32_1 = arith.constant 0 : i32
    return %c0_i32, %c0_i32_0 : i32, i32
  }
  func.func @transform_2(%arg0: i32) -> (i32, i32) {
    %c0_i32 = arith.constant 0 : i32
    %c0_i32_0 = arith.constant 0 : i32
    %c0_i32_1 = arith.constant 0 : i32
    return %c0_i32, %c0_i32_0 : i32, i32
  }
  func.func @transform_3(%arg0: i32) -> (i32, i32) {
    %c0_i32 = arith.constant 0 : i32
    %c0_i32_0 = arith.constant 0 : i32
    return %arg0, %c0_i32 : i32, i32
  }
}

module attributes {stable_mosaic.version = 11 : i64} {
  func.func @_matmul_bias_kernel(%arg0: i32, %arg1: memref<32x24xbf16, #tpu.memory_space<vmem>>, %arg2: memref<24x24xbf16, #tpu.memory_space<vmem>>, %arg3: memref<1x24xf32, #tpu.memory_space<vmem>>, %arg4: memref<32x24xf32, #tpu.memory_space<vmem>>) attributes {dimension_semantics = [#tpu.dimension_semantics<parallel>], iteration_bounds = array<i64: 1>, scalar_prefetch = 0 : i64, scratch_operands = 0 : i64, tpu.core_type = #tpu.core_type<tc>, window_params = [{transform_indices = @transform_0, window_bounds = array<i64: 32, 24>}, {pipeline_mode = #tpu.pipeline_mode<synchronous>, transform_indices = @transform_1, window_bounds = array<i64: 24, 24>}, {pipeline_mode = #tpu.pipeline_mode<synchronous>, transform_indices = @transform_2, window_bounds = array<i64: 1, 24>}, {transform_indices = @transform_3, window_bounds = array<i64: 32, 24>}]} {
    %c0 = arith.constant 0 : index
    %c0_0 = arith.constant 0 : index
    %0 = vector.load %arg1[%c0, %c0_0] : memref<32x24xbf16, #tpu.memory_space<vmem>>, vector<32x24xbf16>
    %c0_1 = arith.constant 0 : index
    %c0_2 = arith.constant 0 : index
    %1 = vector.load %arg2[%c0_1, %c0_2] : memref<24x24xbf16, #tpu.memory_space<vmem>>, vector<24x24xbf16>
    %cst = arith.constant dense<0.000000e+00> : vector<32x24xf32>
    %2 = tpu.matmul %0, %1, %cst {dimension_numbers = #tpu.dot_dimension_numbers<[1], [0], [0], [1], [0, 0, 1, 1], [], []>} : vector<32x24xbf16>, vector<24x24xbf16>, vector<32x24xf32> -> vector<32x24xf32>
    %c0_3 = arith.constant 0 : index
    %c0_4 = arith.constant 0 : index
    %3 = vector.load %arg3[%c0_3, %c0_4] : memref<1x24xf32, #tpu.memory_space<vmem>>, vector<1x24xf32>
    %4 = vector.broadcast %3 : vector<1x24xf32> to vector<32x24xf32>
    %5 = arith.addf %2, %4 : vector<32x24xf32>
    %cst_5 = arith.constant 0.000000e+00 : f32
    %6 = vector.broadcast %cst_5 : f32 to vector<32x24xf32>
    %7 = arith.maximumf %5, %6 : vector<32x24xf32>
    %c0_6 = arith.constant 0 : index
    %c0_7 = arith.constant 0 : index
    %8 = vector.load %arg4[%c0_6, %c0_7] : memref<32x24xf32, #tpu.memory_space<vmem>>, vector<32x24xf32>
    tpu.vector_store %arg4[%c0_6, %c0_7], %7 {strides = array<i32>} : memref<32x24xf32, #tpu.memory_space<vmem>>, vector<32x24xf32>,
    return
  }
  func.func @transform_0(%arg0: i32) -> (i32, i32) {
    %c0_i32 = arith.constant 0 : i32
    %c0_i32_0 = arith.constant 0 : i32
    return %arg0, %c0_i32 : i32, i32
  }
  func.func @transform_1(%arg0: i32) -> (i32, i32) {
    %c0_i32 = arith.constant 0 : i32
    %c0_i32_0 = arith.constant 0 : i32
    %c0_i32_1 = arith.constant 0 : i32
    return %c0_i32, %c0_i32_0 : i32, i32
  }
  func.func @transform_2(%arg0: i32) -> (i32, i32) {
    %c0_i32 = arith.constant 0 : i32
    %c0_i32_0 = arith.constant 0 : i32
    %c0_i32_1 = arith.constant 0 : i32
    return %c0_i32, %c0_i32_0 : i32, i32
  }
  func.func @transform_3(%arg0: i32) -> (i32, i32) {
    %c0_i32 = arith.constant 0 : i32
    %c0_i32_0 = arith.constant 0 : i32
    return %arg0, %c0_i32 : i32, i32
  }
}

module attributes {stable_mosaic.version = 11 : i64} {
  func.func @_basic_unit_kernel(%arg0: i32, %arg1: memref<1x16x24xbf16, #tpu.memory_space<vmem>>, %arg2: memref<24x24xbf16, #tpu.memory_space<vmem>>, %arg3: memref<1x24xf32, #tpu.memory_space<vmem>>, %arg4: memref<9x24xf32, #tpu.memory_space<vmem>>, %arg5: memref<1x24xf32, #tpu.memory_space<vmem>>, %arg6: memref<24x24xbf16, #tpu.memory_space<vmem>>, %arg7: memref<1x24xf32, #tpu.memory_space<vmem>>, %arg8: memref<1x16x24xf32, #tpu.memory_space<vmem>>, %arg9: memref<6x6x24xf32, #tpu.memory_space<vmem>>, %arg10: memref<16x24xf32, #tpu.memory_space<vmem>>) attributes {dimension_semantics = [#tpu.dimension_semantics<parallel>], iteration_bounds = array<i64: 2>, scalar_prefetch = 0 : i64, scratch_operands = 2 : i64, tpu.core_type = #tpu.core_type<tc>, window_params = [{transform_indices = @transform_0, window_bounds = array<i64: 1, 16, 24>}, {pipeline_mode = #tpu.pipeline_mode<synchronous>, transform_indices = @transform_1, window_bounds = array<i64: 24, 24>}, {pipeline_mode = #tpu.pipeline_mode<synchronous>, transform_indices = @transform_2, window_bounds = array<i64: 1, 24>}, {pipeline_mode = #tpu.pipeline_mode<synchronous>, transform_indices = @transform_3, window_bounds = array<i64: 9, 24>}, {pipeline_mode = #tpu.pipeline_mode<synchronous>, transform_indices = @transform_4, window_bounds = array<i64: 1, 24>}, {pipeline_mode = #tpu.pipeline_mode<synchronous>, transform_indices = @transform_5, window_bounds = array<i64: 24, 24>}, {pipeline_mode = #tpu.pipeline_mode<synchronous>, transform_indices = @transform_6, window_bounds = array<i64: 1, 24>}, {transform_indices = @transform_7, window_bounds = array<i64: 1, 16, 24>}]} {
    %c0 = arith.constant 0 : index
    %c0_0 = arith.constant 0 : index
    %c0_1 = arith.constant 0 : index
    %0 = vector.load %arg1[%c0, %c0_0, %c0_1] : memref<1x16x24xbf16, #tpu.memory_space<vmem>>, vector<1x16x24xbf16>
    %1 = vector.shape_cast %0 : vector<1x16x24xbf16> to vector<16x24xbf16>
    %c0_2 = arith.constant 0 : index
    %c0_3 = arith.constant 0 : index
    %2 = vector.load %arg2[%c0_2, %c0_3] : memref<24x24xbf16, #tpu.memory_space<vmem>>, vector<24x24xbf16>
    %cst = arith.constant dense<0.000000e+00> : vector<16x24xf32>
    %3 = tpu.matmul %1, %2, %cst {dimension_numbers = #tpu.dot_dimension_numbers<[1], [0], [0], [1], [0, 0, 1, 1], [], []>} : vector<16x24xbf16>, vector<24x24xbf16>, vector<16x24xf32> -> vector<16x24xf32>
    %c0_4 = arith.constant 0 : index
    %c0_5 = arith.constant 0 : index
    %4 = vector.load %arg3[%c0_4, %c0_5] : memref<1x24xf32, #tpu.memory_space<vmem>>, vector<1x24xf32>
    %5 = vector.broadcast %4 : vector<1x24xf32> to vector<16x24xf32>
    %6 = arith.addf %3, %5 : vector<16x24xf32>
    %cst_6 = arith.constant 0.000000e+00 : f32
    %7 = vector.broadcast %cst_6 : f32 to vector<16x24xf32>
    %8 = arith.maximumf %6, %7 : vector<16x24xf32>
    %cst_7 = arith.constant 0.000000e+00 : f32
    %9 = vector.broadcast %cst_7 : f32 to vector<6x6x24xf32>
    %c0_8 = arith.constant 0 : index
    %c0_9 = arith.constant 0 : index
    %c0_10 = arith.constant 0 : index
    %10 = vector.load %arg9[%c0_8, %c0_9, %c0_10] : memref<6x6x24xf32, #tpu.memory_space<vmem>>, vector<6x6x24xf32>
    tpu.vector_store %arg9[%c0_8, %c0_9, %c0_10], %9 {strides = array<i32>} : memref<6x6x24xf32, #tpu.memory_space<vmem>>, vector<6x6x24xf32>,
    %11 = vector.extract_strided_slice %8 {offsets = [0, 0], sizes = [4, 24], strides = [1, 1]} : vector<16x24xf32> to vector<4x24xf32>
    %c1 = arith.constant 1 : index
    %c1_11 = arith.constant 1 : index
    %c0_12 = arith.constant 0 : index
    %12 = vector.load %arg9[%c1, %c1_11, %c0_12] : memref<6x6x24xf32, #tpu.memory_space<vmem>>, vector<1x4x24xf32>
    %13 = vector.shape_cast %12 : vector<1x4x24xf32> to vector<4x24xf32>
    %14 = vector.shape_cast %11 : vector<4x24xf32> to vector<1x4x24xf32>
    tpu.vector_store %arg9[%c1, %c1_11, %c0_12], %14 {strides = array<i32>} : memref<6x6x24xf32, #tpu.memory_space<vmem>>, vector<1x4x24xf32>,
    %15 = vector.extract_strided_slice %8 {offsets = [4, 0], sizes = [4, 24], strides = [1, 1]} : vector<16x24xf32> to vector<4x24xf32>
    %c2 = arith.constant 2 : index
    %c1_13 = arith.constant 1 : index
    %c0_14 = arith.constant 0 : index
    %16 = vector.load %arg9[%c2, %c1_13, %c0_14] : memref<6x6x24xf32, #tpu.memory_space<vmem>>, vector<1x4x24xf32>
    %17 = vector.shape_cast %16 : vector<1x4x24xf32> to vector<4x24xf32>
    %18 = vector.shape_cast %15 : vector<4x24xf32> to vector<1x4x24xf32>
    tpu.vector_store %arg9[%c2, %c1_13, %c0_14], %18 {strides = array<i32>} : memref<6x6x24xf32, #tpu.memory_space<vmem>>, vector<1x4x24xf32>,
    %19 = vector.extract_strided_slice %8 {offsets = [8, 0], sizes = [4, 24], strides = [1, 1]} : vector<16x24xf32> to vector<4x24xf32>
    %c3 = arith.constant 3 : index
    %c1_15 = arith.constant 1 : index
    %c0_16 = arith.constant 0 : index
    %20 = vector.load %arg9[%c3, %c1_15, %c0_16] : memref<6x6x24xf32, #tpu.memory_space<vmem>>, vector<1x4x24xf32>
    %21 = vector.shape_cast %20 : vector<1x4x24xf32> to vector<4x24xf32>
    %22 = vector.shape_cast %19 : vector<4x24xf32> to vector<1x4x24xf32>
    tpu.vector_store %arg9[%c3, %c1_15, %c0_16], %22 {strides = array<i32>} : memref<6x6x24xf32, #tpu.memory_space<vmem>>, vector<1x4x24xf32>,
    %23 = vector.extract_strided_slice %8 {offsets = [12, 0], sizes = [4, 24], strides = [1, 1]} : vector<16x24xf32> to vector<4x24xf32>
    %c4 = arith.constant 4 : index
    %c1_17 = arith.constant 1 : index
    %c0_18 = arith.constant 0 : index
    %24 = vector.load %arg9[%c4, %c1_17, %c0_18] : memref<6x6x24xf32, #tpu.memory_space<vmem>>, vector<1x4x24xf32>
    %25 = vector.shape_cast %24 : vector<1x4x24xf32> to vector<4x24xf32>
    %26 = vector.shape_cast %23 : vector<4x24xf32> to vector<1x4x24xf32>
    tpu.vector_store %arg9[%c4, %c1_17, %c0_18], %26 {strides = array<i32>} : memref<6x6x24xf32, #tpu.memory_space<vmem>>, vector<1x4x24xf32>,
    %c0_19 = arith.constant 0 : index
    %c0_20 = arith.constant 0 : index
    %27 = vector.load %arg4[%c0_19, %c0_20] : memref<9x24xf32, #tpu.memory_space<vmem>>, vector<9x24xf32>
    %c0_21 = arith.constant 0 : index
    %c0_22 = arith.constant 0 : index
    %28 = vector.load %arg5[%c0_21, %c0_22] : memref<1x24xf32, #tpu.memory_space<vmem>>, vector<1x24xf32>
    %cst_23 = arith.constant 0.000000e+00 : f32
    %29 = vector.broadcast %cst_23 : f32 to vector<4x24xf32>
    %c0_24 = arith.constant 0 : index
    %c0_25 = arith.constant 0 : index
    %c0_26 = arith.constant 0 : index
    %30 = vector.load %arg9[%c0_24, %c0_25, %c0_26] : memref<6x6x24xf32, #tpu.memory_space<vmem>>, vector<1x4x24xf32>
    %31 = vector.shape_cast %30 : vector<1x4x24xf32> to vector<4x24xf32>
    %32 = vector.extract_strided_slice %27 {offsets = [0, 0], sizes = [1, 24], strides = [1, 1]} : vector<9x24xf32> to vector<1x24xf32>
    %33 = vector.broadcast %32 : vector<1x24xf32> to vector<4x24xf32>
    %34 = arith.mulf %31, %33 : vector<4x24xf32>
    %35 = arith.addf %29, %34 : vector<4x24xf32>
    %c0_27 = arith.constant 0 : index
    %c1_28 = arith.constant 1 : index
    %c0_29 = arith.constant 0 : index
    %36 = vector.load %arg9[%c0_27, %c1_28, %c0_29] : memref<6x6x24xf32, #tpu.memory_space<vmem>>, vector<1x4x24xf32>
    %37 = vector.shape_cast %36 : vector<1x4x24xf32> to vector<4x24xf32>
    %38 = vector.extract_strided_slice %27 {offsets = [1, 0], sizes = [1, 24], strides = [1, 1]} : vector<9x24xf32> to vector<1x24xf32>
    %39 = vector.broadcast %38 : vector<1x24xf32> to vector<4x24xf32>
    %40 = arith.mulf %37, %39 : vector<4x24xf32>
    %41 = arith.addf %35, %40 : vector<4x24xf32>
    %c0_30 = arith.constant 0 : index
    %c2_31 = arith.constant 2 : index
    %c0_32 = arith.constant 0 : index
    %42 = vector.load %arg9[%c0_30, %c2_31, %c0_32] : memref<6x6x24xf32, #tpu.memory_space<vmem>>, vector<1x4x24xf32>
    %43 = vector.shape_cast %42 : vector<1x4x24xf32> to vector<4x24xf32>
    %44 = vector.extract_strided_slice %27 {offsets = [2, 0], sizes = [1, 24], strides = [1, 1]} : vector<9x24xf32> to vector<1x24xf32>
    %45 = vector.broadcast %44 : vector<1x24xf32> to vector<4x24xf32>
    %46 = arith.mulf %43, %45 : vector<4x24xf32>
    %47 = arith.addf %41, %46 : vector<4x24xf32>
    %c1_33 = arith.constant 1 : index
    %c0_34 = arith.constant 0 : index
    %c0_35 = arith.constant 0 : index
    %48 = vector.load %arg9[%c1_33, %c0_34, %c0_35] : memref<6x6x24xf32, #tpu.memory_space<vmem>>, vector<1x4x24xf32>
    %49 = vector.shape_cast %48 : vector<1x4x24xf32> to vector<4x24xf32>
    %50 = vector.extract_strided_slice %27 {offsets = [3, 0], sizes = [1, 24], strides = [1, 1]} : vector<9x24xf32> to vector<1x24xf32>
    %51 = vector.broadcast %50 : vector<1x24xf32> to vector<4x24xf32>
    %52 = arith.mulf %49, %51 : vector<4x24xf32>
    %53 = arith.addf %47, %52 : vector<4x24xf32>
    %c1_36 = arith.constant 1 : index
    %c1_37 = arith.constant 1 : index
    %c0_38 = arith.constant 0 : index
    %54 = vector.load %arg9[%c1_36, %c1_37, %c0_38] : memref<6x6x24xf32, #tpu.memory_space<vmem>>, vector<1x4x24xf32>
    %55 = vector.shape_cast %54 : vector<1x4x24xf32> to vector<4x24xf32>
    %56 = vector.extract_strided_slice %27 {offsets = [4, 0], sizes = [1, 24], strides = [1, 1]} : vector<9x24xf32> to vector<1x24xf32>
    %57 = vector.broadcast %56 : vector<1x24xf32> to vector<4x24xf32>
    %58 = arith.mulf %55, %57 : vector<4x24xf32>
    %59 = arith.addf %53, %58 : vector<4x24xf32>
    %c1_39 = arith.constant 1 : index
    %c2_40 = arith.constant 2 : index
    %c0_41 = arith.constant 0 : index
    %60 = vector.load %arg9[%c1_39, %c2_40, %c0_41] : memref<6x6x24xf32, #tpu.memory_space<vmem>>, vector<1x4x24xf32>
    %61 = vector.shape_cast %60 : vector<1x4x24xf32> to vector<4x24xf32>
    %62 = vector.extract_strided_slice %27 {offsets = [5, 0], sizes = [1, 24], strides = [1, 1]} : vector<9x24xf32> to vector<1x24xf32>
    %63 = vector.broadcast %62 : vector<1x24xf32> to vector<4x24xf32>
    %64 = arith.mulf %61, %63 : vector<4x24xf32>
    %65 = arith.addf %59, %64 : vector<4x24xf32>
    %c2_42 = arith.constant 2 : index
    %c0_43 = arith.constant 0 : index
    %c0_44 = arith.constant 0 : index
    %66 = vector.load %arg9[%c2_42, %c0_43, %c0_44] : memref<6x6x24xf32, #tpu.memory_space<vmem>>, vector<1x4x24xf32>
    %67 = vector.shape_cast %66 : vector<1x4x24xf32> to vector<4x24xf32>
    %68 = vector.extract_strided_slice %27 {offsets = [6, 0], sizes = [1, 24], strides = [1, 1]} : vector<9x24xf32> to vector<1x24xf32>
    %69 = vector.broadcast %68 : vector<1x24xf32> to vector<4x24xf32>
    %70 = arith.mulf %67, %69 : vector<4x24xf32>
    %71 = arith.addf %65, %70 : vector<4x24xf32>
    %c2_45 = arith.constant 2 : index
    %c1_46 = arith.constant 1 : index
    %c0_47 = arith.constant 0 : index
    %72 = vector.load %arg9[%c2_45, %c1_46, %c0_47] : memref<6x6x24xf32, #tpu.memory_space<vmem>>, vector<1x4x24xf32>
    %73 = vector.shape_cast %72 : vector<1x4x24xf32> to vector<4x24xf32>
    %74 = vector.extract_strided_slice %27 {offsets = [7, 0], sizes = [1, 24], strides = [1, 1]} : vector<9x24xf32> to vector<1x24xf32>
    %75 = vector.broadcast %74 : vector<1x24xf32> to vector<4x24xf32>
    %76 = arith.mulf %73, %75 : vector<4x24xf32>
    %77 = arith.addf %71, %76 : vector<4x24xf32>
    %c2_48 = arith.constant 2 : index
    %c2_49 = arith.constant 2 : index
    %c0_50 = arith.constant 0 : index
    %78 = vector.load %arg9[%c2_48, %c2_49, %c0_50] : memref<6x6x24xf32, #tpu.memory_space<vmem>>, vector<1x4x24xf32>
    %79 = vector.shape_cast %78 : vector<1x4x24xf32> to vector<4x24xf32>
    %80 = vector.extract_strided_slice %27 {offsets = [8, 0], sizes = [1, 24], strides = [1, 1]} : vector<9x24xf32> to vector<1x24xf32>
    %81 = vector.broadcast %80 : vector<1x24xf32> to vector<4x24xf32>
    %82 = arith.mulf %79, %81 : vector<4x24xf32>
    %83 = arith.addf %77, %82 : vector<4x24xf32>
    %84 = vector.broadcast %28 : vector<1x24xf32> to vector<4x24xf32>
    %85 = arith.addf %83, %84 : vector<4x24xf32>
    %c0_51 = arith.constant 0 : index
    %c0_52 = arith.constant 0 : index
    %86 = vector.load %arg10[%c0_51, %c0_52] : memref<16x24xf32, #tpu.memory_space<vmem>>, vector<4x24xf32>
    tpu.vector_store %arg10[%c0_51, %c0_52], %85 {strides = array<i32>} : memref<16x24xf32, #tpu.memory_space<vmem>>, vector<4x24xf32>,
    %cst_53 = arith.constant 0.000000e+00 : f32
    %87 = vector.broadcast %cst_53 : f32 to vector<4x24xf32>
    %c1_54 = arith.constant 1 : index
    %c0_55 = arith.constant 0 : index
    %c0_56 = arith.constant 0 : index
    %88 = vector.load %arg9[%c1_54, %c0_55, %c0_56] : memref<6x6x24xf32, #tpu.memory_space<vmem>>, vector<1x4x24xf32>
    %89 = vector.shape_cast %88 : vector<1x4x24xf32> to vector<4x24xf32>
    %90 = vector.extract_strided_slice %27 {offsets = [0, 0], sizes = [1, 24], strides = [1, 1]} : vector<9x24xf32> to vector<1x24xf32>
    %91 = vector.broadcast %90 : vector<1x24xf32> to vector<4x24xf32>
    %92 = arith.mulf %89, %91 : vector<4x24xf32>
    %93 = arith.addf %87, %92 : vector<4x24xf32>
    %c1_57 = arith.constant 1 : index
    %c1_58 = arith.constant 1 : index
    %c0_59 = arith.constant 0 : index
    %94 = vector.load %arg9[%c1_57, %c1_58, %c0_59] : memref<6x6x24xf32, #tpu.memory_space<vmem>>, vector<1x4x24xf32>
    %95 = vector.shape_cast %94 : vector<1x4x24xf32> to vector<4x24xf32>
    %96 = vector.extract_strided_slice %27 {offsets = [1, 0], sizes = [1, 24], strides = [1, 1]} : vector<9x24xf32> to vector<1x24xf32>
    %97 = vector.broadcast %96 : vector<1x24xf32> to vector<4x24xf32>
    %98 = arith.mulf %95, %97 : vector<4x24xf32>
    %99 = arith.addf %93, %98 : vector<4x24xf32>
    %c1_60 = arith.constant 1 : index
    %c2_61 = arith.constant 2 : index
    %c0_62 = arith.constant 0 : index
    %100 = vector.load %arg9[%c1_60, %c2_61, %c0_62] : memref<6x6x24xf32, #tpu.memory_space<vmem>>, vector<1x4x24xf32>
    %101 = vector.shape_cast %100 : vector<1x4x24xf32> to vector<4x24xf32>
    %102 = vector.extract_strided_slice %27 {offsets = [2, 0], sizes = [1, 24], strides = [1, 1]} : vector<9x24xf32> to vector<1x24xf32>
    %103 = vector.broadcast %102 : vector<1x24xf32> to vector<4x24xf32>
    %104 = arith.mulf %101, %103 : vector<4x24xf32>
    %105 = arith.addf %99, %104 : vector<4x24xf32>
    %c2_63 = arith.constant 2 : index
    %c0_64 = arith.constant 0 : index
    %c0_65 = arith.constant 0 : index
    %106 = vector.load %arg9[%c2_63, %c0_64, %c0_65] : memref<6x6x24xf32, #tpu.memory_space<vmem>>, vector<1x4x24xf32>
    %107 = vector.shape_cast %106 : vector<1x4x24xf32> to vector<4x24xf32>
    %108 = vector.extract_strided_slice %27 {offsets = [3, 0], sizes = [1, 24], strides = [1, 1]} : vector<9x24xf32> to vector<1x24xf32>
    %109 = vector.broadcast %108 : vector<1x24xf32> to vector<4x24xf32>
    %110 = arith.mulf %107, %109 : vector<4x24xf32>
    %111 = arith.addf %105, %110 : vector<4x24xf32>
    %c2_66 = arith.constant 2 : index
    %c1_67 = arith.constant 1 : index
    %c0_68 = arith.constant 0 : index
    %112 = vector.load %arg9[%c2_66, %c1_67, %c0_68] : memref<6x6x24xf32, #tpu.memory_space<vmem>>, vector<1x4x24xf32>
    %113 = vector.shape_cast %112 : vector<1x4x24xf32> to vector<4x24xf32>
    %114 = vector.extract_strided_slice %27 {offsets = [4, 0], sizes = [1, 24], strides = [1, 1]} : vector<9x24xf32> to vector<1x24xf32>
    %115 = vector.broadcast %114 : vector<1x24xf32> to vector<4x24xf32>
    %116 = arith.mulf %113, %115 : vector<4x24xf32>
    %117 = arith.addf %111, %116 : vector<4x24xf32>
    %c2_69 = arith.constant 2 : index
    %c2_70 = arith.constant 2 : index
    %c0_71 = arith.constant 0 : index
    %118 = vector.load %arg9[%c2_69, %c2_70, %c0_71] : memref<6x6x24xf32, #tpu.memory_space<vmem>>, vector<1x4x24xf32>
    %119 = vector.shape_cast %118 : vector<1x4x24xf32> to vector<4x24xf32>
    %120 = vector.extract_strided_slice %27 {offsets = [5, 0], sizes = [1, 24], strides = [1, 1]} : vector<9x24xf32> to vector<1x24xf32>
    %121 = vector.broadcast %120 : vector<1x24xf32> to vector<4x24xf32>
    %122 = arith.mulf %119, %121 : vector<4x24xf32>
    %123 = arith.addf %117, %122 : vector<4x24xf32>
    %c3_72 = arith.constant 3 : index
    %c0_73 = arith.constant 0 : index
    %c0_74 = arith.constant 0 : index
    %124 = vector.load %arg9[%c3_72, %c0_73, %c0_74] : memref<6x6x24xf32, #tpu.memory_space<vmem>>, vector<1x4x24xf32>
    %125 = vector.shape_cast %124 : vector<1x4x24xf32> to vector<4x24xf32>
    %126 = vector.extract_strided_slice %27 {offsets = [6, 0], sizes = [1, 24], strides = [1, 1]} : vector<9x24xf32> to vector<1x24xf32>
    %127 = vector.broadcast %126 : vector<1x24xf32> to vector<4x24xf32>
    %128 = arith.mulf %125, %127 : vector<4x24xf32>
    %129 = arith.addf %123, %128 : vector<4x24xf32>
    %c3_75 = arith.constant 3 : index
    %c1_76 = arith.constant 1 : index
    %c0_77 = arith.constant 0 : index
    %130 = vector.load %arg9[%c3_75, %c1_76, %c0_77] : memref<6x6x24xf32, #tpu.memory_space<vmem>>, vector<1x4x24xf32>
    %131 = vector.shape_cast %130 : vector<1x4x24xf32> to vector<4x24xf32>
    %132 = vector.extract_strided_slice %27 {offsets = [7, 0], sizes = [1, 24], strides = [1, 1]} : vector<9x24xf32> to vector<1x24xf32>
    %133 = vector.broadcast %132 : vector<1x24xf32> to vector<4x24xf32>
    %134 = arith.mulf %131, %133 : vector<4x24xf32>
    %135 = arith.addf %129, %134 : vector<4x24xf32>
    %c3_78 = arith.constant 3 : index
    %c2_79 = arith.constant 2 : index
    %c0_80 = arith.constant 0 : index
    %136 = vector.load %arg9[%c3_78, %c2_79, %c0_80] : memref<6x6x24xf32, #tpu.memory_space<vmem>>, vector<1x4x24xf32>
    %137 = vector.shape_cast %136 : vector<1x4x24xf32> to vector<4x24xf32>
    %138 = vector.extract_strided_slice %27 {offsets = [8, 0], sizes = [1, 24], strides = [1, 1]} : vector<9x24xf32> to vector<1x24xf32>
    %139 = vector.broadcast %138 : vector<1x24xf32> to vector<4x24xf32>
    %140 = arith.mulf %137, %139 : vector<4x24xf32>
    %141 = arith.addf %135, %140 : vector<4x24xf32>
    %142 = vector.broadcast %28 : vector<1x24xf32> to vector<4x24xf32>
    %143 = arith.addf %141, %142 : vector<4x24xf32>
    %c4_81 = arith.constant 4 : index
    %c0_82 = arith.constant 0 : index
    %144 = vector.load %arg10[%c4_81, %c0_82] : memref<16x24xf32, #tpu.memory_space<vmem>>, vector<4x24xf32>
    tpu.vector_store %arg10[%c4_81, %c0_82], %143 {strides = array<i32>} : memref<16x24xf32, #tpu.memory_space<vmem>>, vector<4x24xf32>,
    %cst_83 = arith.constant 0.000000e+00 : f32
    %145 = vector.broadcast %cst_83 : f32 to vector<4x24xf32>
    %c2_84 = arith.constant 2 : index
    %c0_85 = arith.constant 0 : index
    %c0_86 = arith.constant 0 : index
    %146 = vector.load %arg9[%c2_84, %c0_85, %c0_86] : memref<6x6x24xf32, #tpu.memory_space<vmem>>, vector<1x4x24xf32>
    %147 = vector.shape_cast %146 : vector<1x4x24xf32> to vector<4x24xf32>
    %148 = vector.extract_strided_slice %27 {offsets = [0, 0], sizes = [1, 24], strides = [1, 1]} : vector<9x24xf32> to vector<1x24xf32>
    %149 = vector.broadcast %148 : vector<1x24xf32> to vector<4x24xf32>
    %150 = arith.mulf %147, %149 : vector<4x24xf32>
    %151 = arith.addf %145, %150 : vector<4x24xf32>
    %c2_87 = arith.constant 2 : index
    %c1_88 = arith.constant 1 : index
    %c0_89 = arith.constant 0 : index
    %152 = vector.load %arg9[%c2_87, %c1_88, %c0_89] : memref<6x6x24xf32, #tpu.memory_space<vmem>>, vector<1x4x24xf32>
    %153 = vector.shape_cast %152 : vector<1x4x24xf32> to vector<4x24xf32>
    %154 = vector.extract_strided_slice %27 {offsets = [1, 0], sizes = [1, 24], strides = [1, 1]} : vector<9x24xf32> to vector<1x24xf32>
    %155 = vector.broadcast %154 : vector<1x24xf32> to vector<4x24xf32>
    %156 = arith.mulf %153, %155 : vector<4x24xf32>
    %157 = arith.addf %151, %156 : vector<4x24xf32>
    %c2_90 = arith.constant 2 : index
    %c2_91 = arith.constant 2 : index
    %c0_92 = arith.constant 0 : index
    %158 = vector.load %arg9[%c2_90, %c2_91, %c0_92] : memref<6x6x24xf32, #tpu.memory_space<vmem>>, vector<1x4x24xf32>
    %159 = vector.shape_cast %158 : vector<1x4x24xf32> to vector<4x24xf32>
    %160 = vector.extract_strided_slice %27 {offsets = [2, 0], sizes = [1, 24], strides = [1, 1]} : vector<9x24xf32> to vector<1x24xf32>
    %161 = vector.broadcast %160 : vector<1x24xf32> to vector<4x24xf32>
    %162 = arith.mulf %159, %161 : vector<4x24xf32>
    %163 = arith.addf %157, %162 : vector<4x24xf32>
    %c3_93 = arith.constant 3 : index
    %c0_94 = arith.constant 0 : index
    %c0_95 = arith.constant 0 : index
    %164 = vector.load %arg9[%c3_93, %c0_94, %c0_95] : memref<6x6x24xf32, #tpu.memory_space<vmem>>, vector<1x4x24xf32>
    %165 = vector.shape_cast %164 : vector<1x4x24xf32> to vector<4x24xf32>
    %166 = vector.extract_strided_slice %27 {offsets = [3, 0], sizes = [1, 24], strides = [1, 1]} : vector<9x24xf32> to vector<1x24xf32>
    %167 = vector.broadcast %166 : vector<1x24xf32> to vector<4x24xf32>
    %168 = arith.mulf %165, %167 : vector<4x24xf32>
    %169 = arith.addf %163, %168 : vector<4x24xf32>
    %c3_96 = arith.constant 3 : index
    %c1_97 = arith.constant 1 : index
    %c0_98 = arith.constant 0 : index
    %170 = vector.load %arg9[%c3_96, %c1_97, %c0_98] : memref<6x6x24xf32, #tpu.memory_space<vmem>>, vector<1x4x24xf32>
    %171 = vector.shape_cast %170 : vector<1x4x24xf32> to vector<4x24xf32>
    %172 = vector.extract_strided_slice %27 {offsets = [4, 0], sizes = [1, 24], strides = [1, 1]} : vector<9x24xf32> to vector<1x24xf32>
    %173 = vector.broadcast %172 : vector<1x24xf32> to vector<4x24xf32>
    %174 = arith.mulf %171, %173 : vector<4x24xf32>
    %175 = arith.addf %169, %174 : vector<4x24xf32>
    %c3_99 = arith.constant 3 : index
    %c2_100 = arith.constant 2 : index
    %c0_101 = arith.constant 0 : index
    %176 = vector.load %arg9[%c3_99, %c2_100, %c0_101] : memref<6x6x24xf32, #tpu.memory_space<vmem>>, vector<1x4x24xf32>
    %177 = vector.shape_cast %176 : vector<1x4x24xf32> to vector<4x24xf32>
    %178 = vector.extract_strided_slice %27 {offsets = [5, 0], sizes = [1, 24], strides = [1, 1]} : vector<9x24xf32> to vector<1x24xf32>
    %179 = vector.broadcast %178 : vector<1x24xf32> to vector<4x24xf32>
    %180 = arith.mulf %177, %179 : vector<4x24xf32>
    %181 = arith.addf %175, %180 : vector<4x24xf32>
    %c4_102 = arith.constant 4 : index
    %c0_103 = arith.constant 0 : index
    %c0_104 = arith.constant 0 : index
    %182 = vector.load %arg9[%c4_102, %c0_103, %c0_104] : memref<6x6x24xf32, #tpu.memory_space<vmem>>, vector<1x4x24xf32>
    %183 = vector.shape_cast %182 : vector<1x4x24xf32> to vector<4x24xf32>
    %184 = vector.extract_strided_slice %27 {offsets = [6, 0], sizes = [1, 24], strides = [1, 1]} : vector<9x24xf32> to vector<1x24xf32>
    %185 = vector.broadcast %184 : vector<1x24xf32> to vector<4x24xf32>
    %186 = arith.mulf %183, %185 : vector<4x24xf32>
    %187 = arith.addf %181, %186 : vector<4x24xf32>
    %c4_105 = arith.constant 4 : index
    %c1_106 = arith.constant 1 : index
    %c0_107 = arith.constant 0 : index
    %188 = vector.load %arg9[%c4_105, %c1_106, %c0_107] : memref<6x6x24xf32, #tpu.memory_space<vmem>>, vector<1x4x24xf32>
    %189 = vector.shape_cast %188 : vector<1x4x24xf32> to vector<4x24xf32>
    %190 = vector.extract_strided_slice %27 {offsets = [7, 0], sizes = [1, 24], strides = [1, 1]} : vector<9x24xf32> to vector<1x24xf32>
    %191 = vector.broadcast %190 : vector<1x24xf32> to vector<4x24xf32>
    %192 = arith.mulf %189, %191 : vector<4x24xf32>
    %193 = arith.addf %187, %192 : vector<4x24xf32>
    %c4_108 = arith.constant 4 : index
    %c2_109 = arith.constant 2 : index
    %c0_110 = arith.constant 0 : index
    %194 = vector.load %arg9[%c4_108, %c2_109, %c0_110] : memref<6x6x24xf32, #tpu.memory_space<vmem>>, vector<1x4x24xf32>
    %195 = vector.shape_cast %194 : vector<1x4x24xf32> to vector<4x24xf32>
    %196 = vector.extract_strided_slice %27 {offsets = [8, 0], sizes = [1, 24], strides = [1, 1]} : vector<9x24xf32> to vector<1x24xf32>
    %197 = vector.broadcast %196 : vector<1x24xf32> to vector<4x24xf32>
    %198 = arith.mulf %195, %197 : vector<4x24xf32>
    %199 = arith.addf %193, %198 : vector<4x24xf32>
    %200 = vector.broadcast %28 : vector<1x24xf32> to vector<4x24xf32>
    %201 = arith.addf %199, %200 : vector<4x24xf32>
    %c8 = arith.constant 8 : index
    %c0_111 = arith.constant 0 : index
    %202 = vector.load %arg10[%c8, %c0_111] : memref<16x24xf32, #tpu.memory_space<vmem>>, vector<4x24xf32>
    tpu.vector_store %arg10[%c8, %c0_111], %201 {strides = array<i32>} : memref<16x24xf32, #tpu.memory_space<vmem>>, vector<4x24xf32>,
    %cst_112 = arith.constant 0.000000e+00 : f32
    %203 = vector.broadcast %cst_112 : f32 to vector<4x24xf32>
    %c3_113 = arith.constant 3 : index
    %c0_114 = arith.constant 0 : index
    %c0_115 = arith.constant 0 : index
    %204 = vector.load %arg9[%c3_113, %c0_114, %c0_115] : memref<6x6x24xf32, #tpu.memory_space<vmem>>, vector<1x4x24xf32>
    %205 = vector.shape_cast %204 : vector<1x4x24xf32> to vector<4x24xf32>
    %206 = vector.extract_strided_slice %27 {offsets = [0, 0], sizes = [1, 24], strides = [1, 1]} : vector<9x24xf32> to vector<1x24xf32>
    %207 = vector.broadcast %206 : vector<1x24xf32> to vector<4x24xf32>
    %208 = arith.mulf %205, %207 : vector<4x24xf32>
    %209 = arith.addf %203, %208 : vector<4x24xf32>
    %c3_116 = arith.constant 3 : index
    %c1_117 = arith.constant 1 : index
    %c0_118 = arith.constant 0 : index
    %210 = vector.load %arg9[%c3_116, %c1_117, %c0_118] : memref<6x6x24xf32, #tpu.memory_space<vmem>>, vector<1x4x24xf32>
    %211 = vector.shape_cast %210 : vector<1x4x24xf32> to vector<4x24xf32>
    %212 = vector.extract_strided_slice %27 {offsets = [1, 0], sizes = [1, 24], strides = [1, 1]} : vector<9x24xf32> to vector<1x24xf32>
    %213 = vector.broadcast %212 : vector<1x24xf32> to vector<4x24xf32>
    %214 = arith.mulf %211, %213 : vector<4x24xf32>
    %215 = arith.addf %209, %214 : vector<4x24xf32>
    %c3_119 = arith.constant 3 : index
    %c2_120 = arith.constant 2 : index
    %c0_121 = arith.constant 0 : index
    %216 = vector.load %arg9[%c3_119, %c2_120, %c0_121] : memref<6x6x24xf32, #tpu.memory_space<vmem>>, vector<1x4x24xf32>
    %217 = vector.shape_cast %216 : vector<1x4x24xf32> to vector<4x24xf32>
    %218 = vector.extract_strided_slice %27 {offsets = [2, 0], sizes = [1, 24], strides = [1, 1]} : vector<9x24xf32> to vector<1x24xf32>
    %219 = vector.broadcast %218 : vector<1x24xf32> to vector<4x24xf32>
    %220 = arith.mulf %217, %219 : vector<4x24xf32>
    %221 = arith.addf %215, %220 : vector<4x24xf32>
    %c4_122 = arith.constant 4 : index
    %c0_123 = arith.constant 0 : index
    %c0_124 = arith.constant 0 : index
    %222 = vector.load %arg9[%c4_122, %c0_123, %c0_124] : memref<6x6x24xf32, #tpu.memory_space<vmem>>, vector<1x4x24xf32>
    %223 = vector.shape_cast %222 : vector<1x4x24xf32> to vector<4x24xf32>
    %224 = vector.extract_strided_slice %27 {offsets = [3, 0], sizes = [1, 24], strides = [1, 1]} : vector<9x24xf32> to vector<1x24xf32>
    %225 = vector.broadcast %224 : vector<1x24xf32> to vector<4x24xf32>
    %226 = arith.mulf %223, %225 : vector<4x24xf32>
    %227 = arith.addf %221, %226 : vector<4x24xf32>
    %c4_125 = arith.constant 4 : index
    %c1_126 = arith.constant 1 : index
    %c0_127 = arith.constant 0 : index
    %228 = vector.load %arg9[%c4_125, %c1_126, %c0_127] : memref<6x6x24xf32, #tpu.memory_space<vmem>>, vector<1x4x24xf32>
    %229 = vector.shape_cast %228 : vector<1x4x24xf32> to vector<4x24xf32>
    %230 = vector.extract_strided_slice %27 {offsets = [4, 0], sizes = [1, 24], strides = [1, 1]} : vector<9x24xf32> to vector<1x24xf32>
    %231 = vector.broadcast %230 : vector<1x24xf32> to vector<4x24xf32>
    %232 = arith.mulf %229, %231 : vector<4x24xf32>
    %233 = arith.addf %227, %232 : vector<4x24xf32>
    %c4_128 = arith.constant 4 : index
    %c2_129 = arith.constant 2 : index
    %c0_130 = arith.constant 0 : index
    %234 = vector.load %arg9[%c4_128, %c2_129, %c0_130] : memref<6x6x24xf32, #tpu.memory_space<vmem>>, vector<1x4x24xf32>
    %235 = vector.shape_cast %234 : vector<1x4x24xf32> to vector<4x24xf32>
    %236 = vector.extract_strided_slice %27 {offsets = [5, 0], sizes = [1, 24], strides = [1, 1]} : vector<9x24xf32> to vector<1x24xf32>
    %237 = vector.broadcast %236 : vector<1x24xf32> to vector<4x24xf32>
    %238 = arith.mulf %235, %237 : vector<4x24xf32>
    %239 = arith.addf %233, %238 : vector<4x24xf32>
    %c5 = arith.constant 5 : index
    %c0_131 = arith.constant 0 : index
    %c0_132 = arith.constant 0 : index
    %240 = vector.load %arg9[%c5, %c0_131, %c0_132] : memref<6x6x24xf32, #tpu.memory_space<vmem>>, vector<1x4x24xf32>
    %241 = vector.shape_cast %240 : vector<1x4x24xf32> to vector<4x24xf32>
    %242 = vector.extract_strided_slice %27 {offsets = [6, 0], sizes = [1, 24], strides = [1, 1]} : vector<9x24xf32> to vector<1x24xf32>
    %243 = vector.broadcast %242 : vector<1x24xf32> to vector<4x24xf32>
    %244 = arith.mulf %241, %243 : vector<4x24xf32>
    %245 = arith.addf %239, %244 : vector<4x24xf32>
    %c5_133 = arith.constant 5 : index
    %c1_134 = arith.constant 1 : index
    %c0_135 = arith.constant 0 : index
    %246 = vector.load %arg9[%c5_133, %c1_134, %c0_135] : memref<6x6x24xf32, #tpu.memory_space<vmem>>, vector<1x4x24xf32>
    %247 = vector.shape_cast %246 : vector<1x4x24xf32> to vector<4x24xf32>
    %248 = vector.extract_strided_slice %27 {offsets = [7, 0], sizes = [1, 24], strides = [1, 1]} : vector<9x24xf32> to vector<1x24xf32>
    %249 = vector.broadcast %248 : vector<1x24xf32> to vector<4x24xf32>
    %250 = arith.mulf %247, %249 : vector<4x24xf32>
    %251 = arith.addf %245, %250 : vector<4x24xf32>
    %c5_136 = arith.constant 5 : index
    %c2_137 = arith.constant 2 : index
    %c0_138 = arith.constant 0 : index
    %252 = vector.load %arg9[%c5_136, %c2_137, %c0_138] : memref<6x6x24xf32, #tpu.memory_space<vmem>>, vector<1x4x24xf32>
    %253 = vector.shape_cast %252 : vector<1x4x24xf32> to vector<4x24xf32>
    %254 = vector.extract_strided_slice %27 {offsets = [8, 0], sizes = [1, 24], strides = [1, 1]} : vector<9x24xf32> to vector<1x24xf32>
    %255 = vector.broadcast %254 : vector<1x24xf32> to vector<4x24xf32>
    %256 = arith.mulf %253, %255 : vector<4x24xf32>
    %257 = arith.addf %251, %256 : vector<4x24xf32>
    %258 = vector.broadcast %28 : vector<1x24xf32> to vector<4x24xf32>
    %259 = arith.addf %257, %258 : vector<4x24xf32>
    %c12 = arith.constant 12 : index
    %c0_139 = arith.constant 0 : index
    %260 = vector.load %arg10[%c12, %c0_139] : memref<16x24xf32, #tpu.memory_space<vmem>>, vector<4x24xf32>
    tpu.vector_store %arg10[%c12, %c0_139], %259 {strides = array<i32>} : memref<16x24xf32, #tpu.memory_space<vmem>>, vector<4x24xf32>,
    %c0_140 = arith.constant 0 : index
    %c0_141 = arith.constant 0 : index
    %261 = vector.load %arg10[%c0_140, %c0_141] : memref<16x24xf32, #tpu.memory_space<vmem>>, vector<16x24xf32>
    %262 = arith.truncf %261 : vector<16x24xf32> to vector<16x24xbf16>
    %c0_142 = arith.constant 0 : index
    %c0_143 = arith.constant 0 : index
    %263 = vector.load %arg6[%c0_142, %c0_143] : memref<24x24xbf16, #tpu.memory_space<vmem>>, vector<24x24xbf16>
    %cst_144 = arith.constant dense<0.000000e+00> : vector<16x24xf32>
    %264 = tpu.matmul %262, %263, %cst_144 {dimension_numbers = #tpu.dot_dimension_numbers<[1], [0], [0], [1], [0, 0, 1, 1], [], []>} : vector<16x24xbf16>, vector<24x24xbf16>, vector<16x24xf32> -> vector<16x24xf32>
    %c0_145 = arith.constant 0 : index
    %c0_146 = arith.constant 0 : index
    %265 = vector.load %arg7[%c0_145, %c0_146] : memref<1x24xf32, #tpu.memory_space<vmem>>, vector<1x24xf32>
    %266 = vector.broadcast %265 : vector<1x24xf32> to vector<16x24xf32>
    %267 = arith.addf %264, %266 : vector<16x24xf32>
    %cst_147 = arith.constant 0.000000e+00 : f32
    %268 = vector.broadcast %cst_147 : f32 to vector<16x24xf32>
    %269 = arith.maximumf %267, %268 : vector<16x24xf32>
    %c0_148 = arith.constant 0 : index
    %c0_149 = arith.constant 0 : index
    %c0_150 = arith.constant 0 : index
    %270 = vector.load %arg8[%c0_148, %c0_149, %c0_150] : memref<1x16x24xf32, #tpu.memory_space<vmem>>, vector<1x16x24xf32>
    %271 = vector.shape_cast %270 : vector<1x16x24xf32> to vector<16x24xf32>
    %272 = vector.shape_cast %269 : vector<16x24xf32> to vector<1x16x24xf32>
    tpu.vector_store %arg8[%c0_148, %c0_149, %c0_150], %272 {strides = array<i32>} : memref<1x16x24xf32, #tpu.memory_space<vmem>>, vector<1x16x24xf32>,
    return
  }
  func.func @transform_0(%arg0: i32) -> (i32, i32, i32) {
    %c0_i32 = arith.constant 0 : i32
    %c0_i32_0 = arith.constant 0 : i32
    %c0_i32_1 = arith.constant 0 : i32
    return %arg0, %c0_i32, %c0_i32_0 : i32, i32, i32
  }
  func.func @transform_1(%arg0: i32) -> (i32, i32) {
    %c0_i32 = arith.constant 0 : i32
    %c0_i32_0 = arith.constant 0 : i32
    %c0_i32_1 = arith.constant 0 : i32
    return %c0_i32, %c0_i32_0 : i32, i32
  }
  func.func @transform_2(%arg0: i32) -> (i32, i32) {
    %c0_i32 = arith.constant 0 : i32
    %c0_i32_0 = arith.constant 0 : i32
    %c0_i32_1 = arith.constant 0 : i32
    return %c0_i32, %c0_i32_0 : i32, i32
  }
  func.func @transform_3(%arg0: i32) -> (i32, i32) {
    %c0_i32 = arith.constant 0 : i32
    %c0_i32_0 = arith.constant 0 : i32
    %c0_i32_1 = arith.constant 0 : i32
    return %c0_i32, %c0_i32_0 : i32, i32
  }
  func.func @transform_4(%arg0: i32) -> (i32, i32) {
    %c0_i32 = arith.constant 0 : i32
    %c0_i32_0 = arith.constant 0 : i32
    %c0_i32_1 = arith.constant 0 : i32
    return %c0_i32, %c0_i32_0 : i32, i32
  }
  func.func @transform_5(%arg0: i32) -> (i32, i32) {
    %c0_i32 = arith.constant 0 : i32
    %c0_i32_0 = arith.constant 0 : i32
    %c0_i32_1 = arith.constant 0 : i32
    return %c0_i32, %c0_i32_0 : i32, i32
  }
  func.func @transform_6(%arg0: i32) -> (i32, i32) {
    %c0_i32 = arith.constant 0 : i32
    %c0_i32_0 = arith.constant 0 : i32
    %c0_i32_1 = arith.constant 0 : i32
    return %c0_i32, %c0_i32_0 : i32, i32
  }
  func.func @transform_7(%arg0: i32) -> (i32, i32, i32) {
    %c0_i32 = arith.constant 0 : i32
    %c0_i32_0 = arith.constant 0 : i32
    %c0_i32_1 = arith.constant 0 : i32
    return %arg0, %c0_i32, %c0_i32_0 : i32, i32, i32
  }
}

module attributes {stable_mosaic.version = 11 : i64} {
  func.func @_matmul_bias_kernel(%arg0: i32, %arg1: memref<8x48xbf16, #tpu.memory_space<vmem>>, %arg2: memref<48x48xbf16, #tpu.memory_space<vmem>>, %arg3: memref<1x48xf32, #tpu.memory_space<vmem>>, %arg4: memref<8x48xf32, #tpu.memory_space<vmem>>) attributes {dimension_semantics = [#tpu.dimension_semantics<parallel>], iteration_bounds = array<i64: 1>, scalar_prefetch = 0 : i64, scratch_operands = 0 : i64, tpu.core_type = #tpu.core_type<tc>, window_params = [{transform_indices = @transform_0, window_bounds = array<i64: 8, 48>}, {pipeline_mode = #tpu.pipeline_mode<synchronous>, transform_indices = @transform_1, window_bounds = array<i64: 48, 48>}, {pipeline_mode = #tpu.pipeline_mode<synchronous>, transform_indices = @transform_2, window_bounds = array<i64: 1, 48>}, {transform_indices = @transform_3, window_bounds = array<i64: 8, 48>}]} {
    %c0 = arith.constant 0 : index
    %c0_0 = arith.constant 0 : index
    %0 = vector.load %arg1[%c0, %c0_0] : memref<8x48xbf16, #tpu.memory_space<vmem>>, vector<8x48xbf16>
    %c0_1 = arith.constant 0 : index
    %c0_2 = arith.constant 0 : index
    %1 = vector.load %arg2[%c0_1, %c0_2] : memref<48x48xbf16, #tpu.memory_space<vmem>>, vector<48x48xbf16>
    %cst = arith.constant dense<0.000000e+00> : vector<8x48xf32>
    %2 = tpu.matmul %0, %1, %cst {dimension_numbers = #tpu.dot_dimension_numbers<[1], [0], [0], [1], [0, 0, 1, 1], [], []>} : vector<8x48xbf16>, vector<48x48xbf16>, vector<8x48xf32> -> vector<8x48xf32>
    %c0_3 = arith.constant 0 : index
    %c0_4 = arith.constant 0 : index
    %3 = vector.load %arg3[%c0_3, %c0_4] : memref<1x48xf32, #tpu.memory_space<vmem>>, vector<1x48xf32>
    %4 = vector.broadcast %3 : vector<1x48xf32> to vector<8x48xf32>
    %5 = arith.addf %2, %4 : vector<8x48xf32>
    %cst_5 = arith.constant 0.000000e+00 : f32
    %6 = vector.broadcast %cst_5 : f32 to vector<8x48xf32>
    %7 = arith.maximumf %5, %6 : vector<8x48xf32>
    %c0_6 = arith.constant 0 : index
    %c0_7 = arith.constant 0 : index
    %8 = vector.load %arg4[%c0_6, %c0_7] : memref<8x48xf32, #tpu.memory_space<vmem>>, vector<8x48xf32>
    tpu.vector_store %arg4[%c0_6, %c0_7], %7 {strides = array<i32>} : memref<8x48xf32, #tpu.memory_space<vmem>>, vector<8x48xf32>,
    return
  }
  func.func @transform_0(%arg0: i32) -> (i32, i32) {
    %c0_i32 = arith.constant 0 : i32
    %c0_i32_0 = arith.constant 0 : i32
    return %arg0, %c0_i32 : i32, i32
  }
  func.func @transform_1(%arg0: i32) -> (i32, i32) {
    %c0_i32 = arith.constant 0 : i32
    %c0_i32_0 = arith.constant 0 : i32
    %c0_i32_1 = arith.constant 0 : i32
    return %c0_i32, %c0_i32_0 : i32, i32
  }
  func.func @transform_2(%arg0: i32) -> (i32, i32) {
    %c0_i32 = arith.constant 0 : i32
    %c0_i32_0 = arith.constant 0 : i32
    %c0_i32_1 = arith.constant 0 : i32
    return %c0_i32, %c0_i32_0 : i32, i32
  }
  func.func @transform_3(%arg0: i32) -> (i32, i32) {
    %c0_i32 = arith.constant 0 : i32
    %c0_i32_0 = arith.constant 0 : i32
    return %arg0, %c0_i32 : i32, i32
  }
}

module attributes {stable_mosaic.version = 11 : i64} {
  func.func @_tap_dw_kernel(%arg0: i32, %arg1: memref<9x4x96xf32, #tpu.memory_space<vmem>>, %arg2: memref<9x96xf32, #tpu.memory_space<vmem>>, %arg3: memref<1x96xf32, #tpu.memory_space<vmem>>, %arg4: memref<4x96xf32, #tpu.memory_space<vmem>>) attributes {dimension_semantics = [#tpu.dimension_semantics<parallel>], iteration_bounds = array<i64: 1>, scalar_prefetch = 0 : i64, scratch_operands = 0 : i64, tpu.core_type = #tpu.core_type<tc>, window_params = [{transform_indices = @transform_0, window_bounds = array<i64: 9, 4, 96>}, {pipeline_mode = #tpu.pipeline_mode<synchronous>, transform_indices = @transform_1, window_bounds = array<i64: 9, 96>}, {pipeline_mode = #tpu.pipeline_mode<synchronous>, transform_indices = @transform_2, window_bounds = array<i64: 1, 96>}, {transform_indices = @transform_3, window_bounds = array<i64: 4, 96>}]} {
    %c0 = arith.constant 0 : index
    %c0_0 = arith.constant 0 : index
    %0 = vector.load %arg2[%c0, %c0_0] : memref<9x96xf32, #tpu.memory_space<vmem>>, vector<9x96xf32>
    %c0_1 = arith.constant 0 : index
    %c0_2 = arith.constant 0 : index
    %c0_3 = arith.constant 0 : index
    %1 = vector.load %arg1[%c0_1, %c0_2, %c0_3] : memref<9x4x96xf32, #tpu.memory_space<vmem>>, vector<1x4x96xf32>
    %2 = vector.shape_cast %1 : vector<1x4x96xf32> to vector<4x96xf32>
    %3 = vector.extract_strided_slice %0 {offsets = [0, 0], sizes = [1, 96], strides = [1, 1]} : vector<9x96xf32> to vector<1x96xf32>
    %4 = vector.broadcast %3 : vector<1x96xf32> to vector<4x96xf32>
    %5 = arith.mulf %2, %4 : vector<4x96xf32>
    %c1 = arith.constant 1 : index
    %c0_4 = arith.constant 0 : index
    %c0_5 = arith.constant 0 : index
    %6 = vector.load %arg1[%c1, %c0_4, %c0_5] : memref<9x4x96xf32, #tpu.memory_space<vmem>>, vector<1x4x96xf32>
    %7 = vector.shape_cast %6 : vector<1x4x96xf32> to vector<4x96xf32>
    %8 = vector.extract_strided_slice %0 {offsets = [1, 0], sizes = [1, 96], strides = [1, 1]} : vector<9x96xf32> to vector<1x96xf32>
    %9 = vector.broadcast %8 : vector<1x96xf32> to vector<4x96xf32>
    %10 = arith.mulf %7, %9 : vector<4x96xf32>
    %11 = arith.addf %5, %10 : vector<4x96xf32>
    %c2 = arith.constant 2 : index
    %c0_6 = arith.constant 0 : index
    %c0_7 = arith.constant 0 : index
    %12 = vector.load %arg1[%c2, %c0_6, %c0_7] : memref<9x4x96xf32, #tpu.memory_space<vmem>>, vector<1x4x96xf32>
    %13 = vector.shape_cast %12 : vector<1x4x96xf32> to vector<4x96xf32>
    %14 = vector.extract_strided_slice %0 {offsets = [2, 0], sizes = [1, 96], strides = [1, 1]} : vector<9x96xf32> to vector<1x96xf32>
    %15 = vector.broadcast %14 : vector<1x96xf32> to vector<4x96xf32>
    %16 = arith.mulf %13, %15 : vector<4x96xf32>
    %17 = arith.addf %11, %16 : vector<4x96xf32>
    %c3 = arith.constant 3 : index
    %c0_8 = arith.constant 0 : index
    %c0_9 = arith.constant 0 : index
    %18 = vector.load %arg1[%c3, %c0_8, %c0_9] : memref<9x4x96xf32, #tpu.memory_space<vmem>>, vector<1x4x96xf32>
    %19 = vector.shape_cast %18 : vector<1x4x96xf32> to vector<4x96xf32>
    %20 = vector.extract_strided_slice %0 {offsets = [3, 0], sizes = [1, 96], strides = [1, 1]} : vector<9x96xf32> to vector<1x96xf32>
    %21 = vector.broadcast %20 : vector<1x96xf32> to vector<4x96xf32>
    %22 = arith.mulf %19, %21 : vector<4x96xf32>
    %23 = arith.addf %17, %22 : vector<4x96xf32>
    %c4 = arith.constant 4 : index
    %c0_10 = arith.constant 0 : index
    %c0_11 = arith.constant 0 : index
    %24 = vector.load %arg1[%c4, %c0_10, %c0_11] : memref<9x4x96xf32, #tpu.memory_space<vmem>>, vector<1x4x96xf32>
    %25 = vector.shape_cast %24 : vector<1x4x96xf32> to vector<4x96xf32>
    %26 = vector.extract_strided_slice %0 {offsets = [4, 0], sizes = [1, 96], strides = [1, 1]} : vector<9x96xf32> to vector<1x96xf32>
    %27 = vector.broadcast %26 : vector<1x96xf32> to vector<4x96xf32>
    %28 = arith.mulf %25, %27 : vector<4x96xf32>
    %29 = arith.addf %23, %28 : vector<4x96xf32>
    %c5 = arith.constant 5 : index
    %c0_12 = arith.constant 0 : index
    %c0_13 = arith.constant 0 : index
    %30 = vector.load %arg1[%c5, %c0_12, %c0_13] : memref<9x4x96xf32, #tpu.memory_space<vmem>>, vector<1x4x96xf32>
    %31 = vector.shape_cast %30 : vector<1x4x96xf32> to vector<4x96xf32>
    %32 = vector.extract_strided_slice %0 {offsets = [5, 0], sizes = [1, 96], strides = [1, 1]} : vector<9x96xf32> to vector<1x96xf32>
    %33 = vector.broadcast %32 : vector<1x96xf32> to vector<4x96xf32>
    %34 = arith.mulf %31, %33 : vector<4x96xf32>
    %35 = arith.addf %29, %34 : vector<4x96xf32>
    %c6 = arith.constant 6 : index
    %c0_14 = arith.constant 0 : index
    %c0_15 = arith.constant 0 : index
    %36 = vector.load %arg1[%c6, %c0_14, %c0_15] : memref<9x4x96xf32, #tpu.memory_space<vmem>>, vector<1x4x96xf32>
    %37 = vector.shape_cast %36 : vector<1x4x96xf32> to vector<4x96xf32>
    %38 = vector.extract_strided_slice %0 {offsets = [6, 0], sizes = [1, 96], strides = [1, 1]} : vector<9x96xf32> to vector<1x96xf32>
    %39 = vector.broadcast %38 : vector<1x96xf32> to vector<4x96xf32>
    %40 = arith.mulf %37, %39 : vector<4x96xf32>
    %41 = arith.addf %35, %40 : vector<4x96xf32>
    %c7 = arith.constant 7 : index
    %c0_16 = arith.constant 0 : index
    %c0_17 = arith.constant 0 : index
    %42 = vector.load %arg1[%c7, %c0_16, %c0_17] : memref<9x4x96xf32, #tpu.memory_space<vmem>>, vector<1x4x96xf32>
    %43 = vector.shape_cast %42 : vector<1x4x96xf32> to vector<4x96xf32>
    %44 = vector.extract_strided_slice %0 {offsets = [7, 0], sizes = [1, 96], strides = [1, 1]} : vector<9x96xf32> to vector<1x96xf32>
    %45 = vector.broadcast %44 : vector<1x96xf32> to vector<4x96xf32>
    %46 = arith.mulf %43, %45 : vector<4x96xf32>
    %47 = arith.addf %41, %46 : vector<4x96xf32>
    %c8 = arith.constant 8 : index
    %c0_18 = arith.constant 0 : index
    %c0_19 = arith.constant 0 : index
    %48 = vector.load %arg1[%c8, %c0_18, %c0_19] : memref<9x4x96xf32, #tpu.memory_space<vmem>>, vector<1x4x96xf32>
    %49 = vector.shape_cast %48 : vector<1x4x96xf32> to vector<4x96xf32>
    %50 = vector.extract_strided_slice %0 {offsets = [8, 0], sizes = [1, 96], strides = [1, 1]} : vector<9x96xf32> to vector<1x96xf32>
    %51 = vector.broadcast %50 : vector<1x96xf32> to vector<4x96xf32>
    %52 = arith.mulf %49, %51 : vector<4x96xf32>
    %53 = arith.addf %47, %52 : vector<4x96xf32>
    %c0_20 = arith.constant 0 : index
    %c0_21 = arith.constant 0 : index
    %54 = vector.load %arg3[%c0_20, %c0_21] : memref<1x96xf32, #tpu.memory_space<vmem>>, vector<1x96xf32>
    %55 = vector.broadcast %54 : vector<1x96xf32> to vector<4x96xf32>
    %56 = arith.addf %53, %55 : vector<4x96xf32>
    %c0_22 = arith.constant 0 : index
    %c0_23 = arith.constant 0 : index
    %57 = vector.load %arg4[%c0_22, %c0_23] : memref<4x96xf32, #tpu.memory_space<vmem>>, vector<4x96xf32>
    tpu.vector_store %arg4[%c0_22, %c0_23], %56 {strides = array<i32>} : memref<4x96xf32, #tpu.memory_space<vmem>>, vector<4x96xf32>,
    return
  }
  func.func @transform_0(%arg0: i32) -> (i32, i32, i32) {
    %c0_i32 = arith.constant 0 : i32
    %c0_i32_0 = arith.constant 0 : i32
    %c0_i32_1 = arith.constant 0 : i32
    return %c0_i32, %arg0, %c0_i32_0 : i32, i32, i32
  }
  func.func @transform_1(%arg0: i32) -> (i32, i32) {
    %c0_i32 = arith.constant 0 : i32
    %c0_i32_0 = arith.constant 0 : i32
    %c0_i32_1 = arith.constant 0 : i32
    return %c0_i32, %c0_i32_0 : i32, i32
  }
  func.func @transform_2(%arg0: i32) -> (i32, i32) {
    %c0_i32 = arith.constant 0 : i32
    %c0_i32_0 = arith.constant 0 : i32
    %c0_i32_1 = arith.constant 0 : i32
    return %c0_i32, %c0_i32_0 : i32, i32
  }
  func.func @transform_3(%arg0: i32) -> (i32, i32) {
    %c0_i32 = arith.constant 0 : i32
    %c0_i32_0 = arith.constant 0 : i32
    return %arg0, %c0_i32 : i32, i32
  }
}

module attributes {stable_mosaic.version = 11 : i64} {
  func.func @_matmul_bias_kernel(%arg0: i32, %arg1: memref<32x48xbf16, #tpu.memory_space<vmem>>, %arg2: memref<48x48xbf16, #tpu.memory_space<vmem>>, %arg3: memref<1x48xf32, #tpu.memory_space<vmem>>, %arg4: memref<32x48xf32, #tpu.memory_space<vmem>>) attributes {dimension_semantics = [#tpu.dimension_semantics<parallel>], iteration_bounds = array<i64: 1>, scalar_prefetch = 0 : i64, scratch_operands = 0 : i64, tpu.core_type = #tpu.core_type<tc>, window_params = [{transform_indices = @transform_0, window_bounds = array<i64: 32, 48>}, {pipeline_mode = #tpu.pipeline_mode<synchronous>, transform_indices = @transform_1, window_bounds = array<i64: 48, 48>}, {pipeline_mode = #tpu.pipeline_mode<synchronous>, transform_indices = @transform_2, window_bounds = array<i64: 1, 48>}, {transform_indices = @transform_3, window_bounds = array<i64: 32, 48>}]} {
    %c0 = arith.constant 0 : index
    %c0_0 = arith.constant 0 : index
    %0 = vector.load %arg1[%c0, %c0_0] : memref<32x48xbf16, #tpu.memory_space<vmem>>, vector<32x48xbf16>
    %c0_1 = arith.constant 0 : index
    %c0_2 = arith.constant 0 : index
    %1 = vector.load %arg2[%c0_1, %c0_2] : memref<48x48xbf16, #tpu.memory_space<vmem>>, vector<48x48xbf16>
    %cst = arith.constant dense<0.000000e+00> : vector<32x48xf32>
    %2 = tpu.matmul %0, %1, %cst {dimension_numbers = #tpu.dot_dimension_numbers<[1], [0], [0], [1], [0, 0, 1, 1], [], []>} : vector<32x48xbf16>, vector<48x48xbf16>, vector<32x48xf32> -> vector<32x48xf32>
    %c0_3 = arith.constant 0 : index
    %c0_4 = arith.constant 0 : index
    %3 = vector.load %arg3[%c0_3, %c0_4] : memref<1x48xf32, #tpu.memory_space<vmem>>, vector<1x48xf32>
    %4 = vector.broadcast %3 : vector<1x48xf32> to vector<32x48xf32>
    %5 = arith.addf %2, %4 : vector<32x48xf32>
    %cst_5 = arith.constant 0.000000e+00 : f32
    %6 = vector.broadcast %cst_5 : f32 to vector<32x48xf32>
    %7 = arith.maximumf %5, %6 : vector<32x48xf32>
    %c0_6 = arith.constant 0 : index
    %c0_7 = arith.constant 0 : index
    %8 = vector.load %arg4[%c0_6, %c0_7] : memref<32x48xf32, #tpu.memory_space<vmem>>, vector<32x48xf32>
    tpu.vector_store %arg4[%c0_6, %c0_7], %7 {strides = array<i32>} : memref<32x48xf32, #tpu.memory_space<vmem>>, vector<32x48xf32>,
    return
  }
  func.func @transform_0(%arg0: i32) -> (i32, i32) {
    %c0_i32 = arith.constant 0 : i32
    %c0_i32_0 = arith.constant 0 : i32
    return %arg0, %c0_i32 : i32, i32
  }
  func.func @transform_1(%arg0: i32) -> (i32, i32) {
    %c0_i32 = arith.constant 0 : i32
    %c0_i32_0 = arith.constant 0 : i32
    %c0_i32_1 = arith.constant 0 : i32
    return %c0_i32, %c0_i32_0 : i32, i32
  }
  func.func @transform_2(%arg0: i32) -> (i32, i32) {
    %c0_i32 = arith.constant 0 : i32
    %c0_i32_0 = arith.constant 0 : i32
    %c0_i32_1 = arith.constant 0 : i32
    return %c0_i32, %c0_i32_0 : i32, i32
  }
  func.func @transform_3(%arg0: i32) -> (i32, i32) {
    %c0_i32 = arith.constant 0 : i32
    %c0_i32_0 = arith.constant 0 : i32
    return %arg0, %c0_i32 : i32, i32
  }
}

module attributes {stable_mosaic.version = 11 : i64} {
  func.func @_basic_unit_kernel(%arg0: i32, %arg1: memref<1x4x48xbf16, #tpu.memory_space<vmem>>, %arg2: memref<48x48xbf16, #tpu.memory_space<vmem>>, %arg3: memref<1x48xf32, #tpu.memory_space<vmem>>, %arg4: memref<9x48xf32, #tpu.memory_space<vmem>>, %arg5: memref<1x48xf32, #tpu.memory_space<vmem>>, %arg6: memref<48x48xbf16, #tpu.memory_space<vmem>>, %arg7: memref<1x48xf32, #tpu.memory_space<vmem>>, %arg8: memref<1x4x48xf32, #tpu.memory_space<vmem>>, %arg9: memref<4x4x48xf32, #tpu.memory_space<vmem>>, %arg10: memref<4x48xf32, #tpu.memory_space<vmem>>) attributes {dimension_semantics = [#tpu.dimension_semantics<parallel>], iteration_bounds = array<i64: 2>, scalar_prefetch = 0 : i64, scratch_operands = 2 : i64, tpu.core_type = #tpu.core_type<tc>, window_params = [{transform_indices = @transform_0, window_bounds = array<i64: 1, 4, 48>}, {pipeline_mode = #tpu.pipeline_mode<synchronous>, transform_indices = @transform_1, window_bounds = array<i64: 48, 48>}, {pipeline_mode = #tpu.pipeline_mode<synchronous>, transform_indices = @transform_2, window_bounds = array<i64: 1, 48>}, {pipeline_mode = #tpu.pipeline_mode<synchronous>, transform_indices = @transform_3, window_bounds = array<i64: 9, 48>}, {pipeline_mode = #tpu.pipeline_mode<synchronous>, transform_indices = @transform_4, window_bounds = array<i64: 1, 48>}, {pipeline_mode = #tpu.pipeline_mode<synchronous>, transform_indices = @transform_5, window_bounds = array<i64: 48, 48>}, {pipeline_mode = #tpu.pipeline_mode<synchronous>, transform_indices = @transform_6, window_bounds = array<i64: 1, 48>}, {transform_indices = @transform_7, window_bounds = array<i64: 1, 4, 48>}]} {
    %c0 = arith.constant 0 : index
    %c0_0 = arith.constant 0 : index
    %c0_1 = arith.constant 0 : index
    %0 = vector.load %arg1[%c0, %c0_0, %c0_1] : memref<1x4x48xbf16, #tpu.memory_space<vmem>>, vector<1x4x48xbf16>
    %1 = vector.shape_cast %0 : vector<1x4x48xbf16> to vector<4x48xbf16>
    %c0_2 = arith.constant 0 : index
    %c0_3 = arith.constant 0 : index
    %2 = vector.load %arg2[%c0_2, %c0_3] : memref<48x48xbf16, #tpu.memory_space<vmem>>, vector<48x48xbf16>
    %cst = arith.constant dense<0.000000e+00> : vector<4x48xf32>
    %3 = tpu.matmul %1, %2, %cst {dimension_numbers = #tpu.dot_dimension_numbers<[1], [0], [0], [1], [0, 0, 1, 1], [], []>} : vector<4x48xbf16>, vector<48x48xbf16>, vector<4x48xf32> -> vector<4x48xf32>
    %c0_4 = arith.constant 0 : index
    %c0_5 = arith.constant 0 : index
    %4 = vector.load %arg3[%c0_4, %c0_5] : memref<1x48xf32, #tpu.memory_space<vmem>>, vector<1x48xf32>
    %5 = vector.broadcast %4 : vector<1x48xf32> to vector<4x48xf32>
    %6 = arith.addf %3, %5 : vector<4x48xf32>
    %cst_6 = arith.constant 0.000000e+00 : f32
    %7 = vector.broadcast %cst_6 : f32 to vector<4x48xf32>
    %8 = arith.maximumf %6, %7 : vector<4x48xf32>
    %cst_7 = arith.constant 0.000000e+00 : f32
    %9 = vector.broadcast %cst_7 : f32 to vector<4x4x48xf32>
    %c0_8 = arith.constant 0 : index
    %c0_9 = arith.constant 0 : index
    %c0_10 = arith.constant 0 : index
    %10 = vector.load %arg9[%c0_8, %c0_9, %c0_10] : memref<4x4x48xf32, #tpu.memory_space<vmem>>, vector<4x4x48xf32>
    tpu.vector_store %arg9[%c0_8, %c0_9, %c0_10], %9 {strides = array<i32>} : memref<4x4x48xf32, #tpu.memory_space<vmem>>, vector<4x4x48xf32>,
    %11 = vector.extract_strided_slice %8 {offsets = [0, 0], sizes = [2, 48], strides = [1, 1]} : vector<4x48xf32> to vector<2x48xf32>
    %c1 = arith.constant 1 : index
    %c1_11 = arith.constant 1 : index
    %c0_12 = arith.constant 0 : index
    %12 = vector.load %arg9[%c1, %c1_11, %c0_12] : memref<4x4x48xf32, #tpu.memory_space<vmem>>, vector<1x2x48xf32>
    %13 = vector.shape_cast %12 : vector<1x2x48xf32> to vector<2x48xf32>
    %14 = vector.shape_cast %11 : vector<2x48xf32> to vector<1x2x48xf32>
    tpu.vector_store %arg9[%c1, %c1_11, %c0_12], %14 {strides = array<i32>} : memref<4x4x48xf32, #tpu.memory_space<vmem>>, vector<1x2x48xf32>,
    %15 = vector.extract_strided_slice %8 {offsets = [2, 0], sizes = [2, 48], strides = [1, 1]} : vector<4x48xf32> to vector<2x48xf32>
    %c2 = arith.constant 2 : index
    %c1_13 = arith.constant 1 : index
    %c0_14 = arith.constant 0 : index
    %16 = vector.load %arg9[%c2, %c1_13, %c0_14] : memref<4x4x48xf32, #tpu.memory_space<vmem>>, vector<1x2x48xf32>
    %17 = vector.shape_cast %16 : vector<1x2x48xf32> to vector<2x48xf32>
    %18 = vector.shape_cast %15 : vector<2x48xf32> to vector<1x2x48xf32>
    tpu.vector_store %arg9[%c2, %c1_13, %c0_14], %18 {strides = array<i32>} : memref<4x4x48xf32, #tpu.memory_space<vmem>>, vector<1x2x48xf32>,
    %c0_15 = arith.constant 0 : index
    %c0_16 = arith.constant 0 : index
    %19 = vector.load %arg4[%c0_15, %c0_16] : memref<9x48xf32, #tpu.memory_space<vmem>>, vector<9x48xf32>
    %c0_17 = arith.constant 0 : index
    %c0_18 = arith.constant 0 : index
    %20 = vector.load %arg5[%c0_17, %c0_18] : memref<1x48xf32, #tpu.memory_space<vmem>>, vector<1x48xf32>
    %cst_19 = arith.constant 0.000000e+00 : f32
    %21 = vector.broadcast %cst_19 : f32 to vector<2x48xf32>
    %c0_20 = arith.constant 0 : index
    %c0_21 = arith.constant 0 : index
    %c0_22 = arith.constant 0 : index
    %22 = vector.load %arg9[%c0_20, %c0_21, %c0_22] : memref<4x4x48xf32, #tpu.memory_space<vmem>>, vector<1x2x48xf32>
    %23 = vector.shape_cast %22 : vector<1x2x48xf32> to vector<2x48xf32>
    %24 = vector.extract_strided_slice %19 {offsets = [0, 0], sizes = [1, 48], strides = [1, 1]} : vector<9x48xf32> to vector<1x48xf32>
    %25 = vector.broadcast %24 : vector<1x48xf32> to vector<2x48xf32>
    %26 = arith.mulf %23, %25 : vector<2x48xf32>
    %27 = arith.addf %21, %26 : vector<2x48xf32>
    %c0_23 = arith.constant 0 : index
    %c1_24 = arith.constant 1 : index
    %c0_25 = arith.constant 0 : index
    %28 = vector.load %arg9[%c0_23, %c1_24, %c0_25] : memref<4x4x48xf32, #tpu.memory_space<vmem>>, vector<1x2x48xf32>
    %29 = vector.shape_cast %28 : vector<1x2x48xf32> to vector<2x48xf32>
    %30 = vector.extract_strided_slice %19 {offsets = [1, 0], sizes = [1, 48], strides = [1, 1]} : vector<9x48xf32> to vector<1x48xf32>
    %31 = vector.broadcast %30 : vector<1x48xf32> to vector<2x48xf32>
    %32 = arith.mulf %29, %31 : vector<2x48xf32>
    %33 = arith.addf %27, %32 : vector<2x48xf32>
    %c0_26 = arith.constant 0 : index
    %c2_27 = arith.constant 2 : index
    %c0_28 = arith.constant 0 : index
    %34 = vector.load %arg9[%c0_26, %c2_27, %c0_28] : memref<4x4x48xf32, #tpu.memory_space<vmem>>, vector<1x2x48xf32>
    %35 = vector.shape_cast %34 : vector<1x2x48xf32> to vector<2x48xf32>
    %36 = vector.extract_strided_slice %19 {offsets = [2, 0], sizes = [1, 48], strides = [1, 1]} : vector<9x48xf32> to vector<1x48xf32>
    %37 = vector.broadcast %36 : vector<1x48xf32> to vector<2x48xf32>
    %38 = arith.mulf %35, %37 : vector<2x48xf32>
    %39 = arith.addf %33, %38 : vector<2x48xf32>
    %c1_29 = arith.constant 1 : index
    %c0_30 = arith.constant 0 : index
    %c0_31 = arith.constant 0 : index
    %40 = vector.load %arg9[%c1_29, %c0_30, %c0_31] : memref<4x4x48xf32, #tpu.memory_space<vmem>>, vector<1x2x48xf32>
    %41 = vector.shape_cast %40 : vector<1x2x48xf32> to vector<2x48xf32>
    %42 = vector.extract_strided_slice %19 {offsets = [3, 0], sizes = [1, 48], strides = [1, 1]} : vector<9x48xf32> to vector<1x48xf32>
    %43 = vector.broadcast %42 : vector<1x48xf32> to vector<2x48xf32>
    %44 = arith.mulf %41, %43 : vector<2x48xf32>
    %45 = arith.addf %39, %44 : vector<2x48xf32>
    %c1_32 = arith.constant 1 : index
    %c1_33 = arith.constant 1 : index
    %c0_34 = arith.constant 0 : index
    %46 = vector.load %arg9[%c1_32, %c1_33, %c0_34] : memref<4x4x48xf32, #tpu.memory_space<vmem>>, vector<1x2x48xf32>
    %47 = vector.shape_cast %46 : vector<1x2x48xf32> to vector<2x48xf32>
    %48 = vector.extract_strided_slice %19 {offsets = [4, 0], sizes = [1, 48], strides = [1, 1]} : vector<9x48xf32> to vector<1x48xf32>
    %49 = vector.broadcast %48 : vector<1x48xf32> to vector<2x48xf32>
    %50 = arith.mulf %47, %49 : vector<2x48xf32>
    %51 = arith.addf %45, %50 : vector<2x48xf32>
    %c1_35 = arith.constant 1 : index
    %c2_36 = arith.constant 2 : index
    %c0_37 = arith.constant 0 : index
    %52 = vector.load %arg9[%c1_35, %c2_36, %c0_37] : memref<4x4x48xf32, #tpu.memory_space<vmem>>, vector<1x2x48xf32>
    %53 = vector.shape_cast %52 : vector<1x2x48xf32> to vector<2x48xf32>
    %54 = vector.extract_strided_slice %19 {offsets = [5, 0], sizes = [1, 48], strides = [1, 1]} : vector<9x48xf32> to vector<1x48xf32>
    %55 = vector.broadcast %54 : vector<1x48xf32> to vector<2x48xf32>
    %56 = arith.mulf %53, %55 : vector<2x48xf32>
    %57 = arith.addf %51, %56 : vector<2x48xf32>
    %c2_38 = arith.constant 2 : index
    %c0_39 = arith.constant 0 : index
    %c0_40 = arith.constant 0 : index
    %58 = vector.load %arg9[%c2_38, %c0_39, %c0_40] : memref<4x4x48xf32, #tpu.memory_space<vmem>>, vector<1x2x48xf32>
    %59 = vector.shape_cast %58 : vector<1x2x48xf32> to vector<2x48xf32>
    %60 = vector.extract_strided_slice %19 {offsets = [6, 0], sizes = [1, 48], strides = [1, 1]} : vector<9x48xf32> to vector<1x48xf32>
    %61 = vector.broadcast %60 : vector<1x48xf32> to vector<2x48xf32>
    %62 = arith.mulf %59, %61 : vector<2x48xf32>
    %63 = arith.addf %57, %62 : vector<2x48xf32>
    %c2_41 = arith.constant 2 : index
    %c1_42 = arith.constant 1 : index
    %c0_43 = arith.constant 0 : index
    %64 = vector.load %arg9[%c2_41, %c1_42, %c0_43] : memref<4x4x48xf32, #tpu.memory_space<vmem>>, vector<1x2x48xf32>
    %65 = vector.shape_cast %64 : vector<1x2x48xf32> to vector<2x48xf32>
    %66 = vector.extract_strided_slice %19 {offsets = [7, 0], sizes = [1, 48], strides = [1, 1]} : vector<9x48xf32> to vector<1x48xf32>
    %67 = vector.broadcast %66 : vector<1x48xf32> to vector<2x48xf32>
    %68 = arith.mulf %65, %67 : vector<2x48xf32>
    %69 = arith.addf %63, %68 : vector<2x48xf32>
    %c2_44 = arith.constant 2 : index
    %c2_45 = arith.constant 2 : index
    %c0_46 = arith.constant 0 : index
    %70 = vector.load %arg9[%c2_44, %c2_45, %c0_46] : memref<4x4x48xf32, #tpu.memory_space<vmem>>, vector<1x2x48xf32>
    %71 = vector.shape_cast %70 : vector<1x2x48xf32> to vector<2x48xf32>
    %72 = vector.extract_strided_slice %19 {offsets = [8, 0], sizes = [1, 48], strides = [1, 1]} : vector<9x48xf32> to vector<1x48xf32>
    %73 = vector.broadcast %72 : vector<1x48xf32> to vector<2x48xf32>
    %74 = arith.mulf %71, %73 : vector<2x48xf32>
    %75 = arith.addf %69, %74 : vector<2x48xf32>
    %76 = vector.broadcast %20 : vector<1x48xf32> to vector<2x48xf32>
    %77 = arith.addf %75, %76 : vector<2x48xf32>
    %c0_47 = arith.constant 0 : index
    %c0_48 = arith.constant 0 : index
    %78 = vector.load %arg10[%c0_47, %c0_48] : memref<4x48xf32, #tpu.memory_space<vmem>>, vector<2x48xf32>
    tpu.vector_store %arg10[%c0_47, %c0_48], %77 {strides = array<i32>} : memref<4x48xf32, #tpu.memory_space<vmem>>, vector<2x48xf32>,
    %cst_49 = arith.constant 0.000000e+00 : f32
    %79 = vector.broadcast %cst_49 : f32 to vector<2x48xf32>
    %c1_50 = arith.constant 1 : index
    %c0_51 = arith.constant 0 : index
    %c0_52 = arith.constant 0 : index
    %80 = vector.load %arg9[%c1_50, %c0_51, %c0_52] : memref<4x4x48xf32, #tpu.memory_space<vmem>>, vector<1x2x48xf32>
    %81 = vector.shape_cast %80 : vector<1x2x48xf32> to vector<2x48xf32>
    %82 = vector.extract_strided_slice %19 {offsets = [0, 0], sizes = [1, 48], strides = [1, 1]} : vector<9x48xf32> to vector<1x48xf32>
    %83 = vector.broadcast %82 : vector<1x48xf32> to vector<2x48xf32>
    %84 = arith.mulf %81, %83 : vector<2x48xf32>
    %85 = arith.addf %79, %84 : vector<2x48xf32>
    %c1_53 = arith.constant 1 : index
    %c1_54 = arith.constant 1 : index
    %c0_55 = arith.constant 0 : index
    %86 = vector.load %arg9[%c1_53, %c1_54, %c0_55] : memref<4x4x48xf32, #tpu.memory_space<vmem>>, vector<1x2x48xf32>
    %87 = vector.shape_cast %86 : vector<1x2x48xf32> to vector<2x48xf32>
    %88 = vector.extract_strided_slice %19 {offsets = [1, 0], sizes = [1, 48], strides = [1, 1]} : vector<9x48xf32> to vector<1x48xf32>
    %89 = vector.broadcast %88 : vector<1x48xf32> to vector<2x48xf32>
    %90 = arith.mulf %87, %89 : vector<2x48xf32>
    %91 = arith.addf %85, %90 : vector<2x48xf32>
    %c1_56 = arith.constant 1 : index
    %c2_57 = arith.constant 2 : index
    %c0_58 = arith.constant 0 : index
    %92 = vector.load %arg9[%c1_56, %c2_57, %c0_58] : memref<4x4x48xf32, #tpu.memory_space<vmem>>, vector<1x2x48xf32>
    %93 = vector.shape_cast %92 : vector<1x2x48xf32> to vector<2x48xf32>
    %94 = vector.extract_strided_slice %19 {offsets = [2, 0], sizes = [1, 48], strides = [1, 1]} : vector<9x48xf32> to vector<1x48xf32>
    %95 = vector.broadcast %94 : vector<1x48xf32> to vector<2x48xf32>
    %96 = arith.mulf %93, %95 : vector<2x48xf32>
    %97 = arith.addf %91, %96 : vector<2x48xf32>
    %c2_59 = arith.constant 2 : index
    %c0_60 = arith.constant 0 : index
    %c0_61 = arith.constant 0 : index
    %98 = vector.load %arg9[%c2_59, %c0_60, %c0_61] : memref<4x4x48xf32, #tpu.memory_space<vmem>>, vector<1x2x48xf32>
    %99 = vector.shape_cast %98 : vector<1x2x48xf32> to vector<2x48xf32>
    %100 = vector.extract_strided_slice %19 {offsets = [3, 0], sizes = [1, 48], strides = [1, 1]} : vector<9x48xf32> to vector<1x48xf32>
    %101 = vector.broadcast %100 : vector<1x48xf32> to vector<2x48xf32>
    %102 = arith.mulf %99, %101 : vector<2x48xf32>
    %103 = arith.addf %97, %102 : vector<2x48xf32>
    %c2_62 = arith.constant 2 : index
    %c1_63 = arith.constant 1 : index
    %c0_64 = arith.constant 0 : index
    %104 = vector.load %arg9[%c2_62, %c1_63, %c0_64] : memref<4x4x48xf32, #tpu.memory_space<vmem>>, vector<1x2x48xf32>
    %105 = vector.shape_cast %104 : vector<1x2x48xf32> to vector<2x48xf32>
    %106 = vector.extract_strided_slice %19 {offsets = [4, 0], sizes = [1, 48], strides = [1, 1]} : vector<9x48xf32> to vector<1x48xf32>
    %107 = vector.broadcast %106 : vector<1x48xf32> to vector<2x48xf32>
    %108 = arith.mulf %105, %107 : vector<2x48xf32>
    %109 = arith.addf %103, %108 : vector<2x48xf32>
    %c2_65 = arith.constant 2 : index
    %c2_66 = arith.constant 2 : index
    %c0_67 = arith.constant 0 : index
    %110 = vector.load %arg9[%c2_65, %c2_66, %c0_67] : memref<4x4x48xf32, #tpu.memory_space<vmem>>, vector<1x2x48xf32>
    %111 = vector.shape_cast %110 : vector<1x2x48xf32> to vector<2x48xf32>
    %112 = vector.extract_strided_slice %19 {offsets = [5, 0], sizes = [1, 48], strides = [1, 1]} : vector<9x48xf32> to vector<1x48xf32>
    %113 = vector.broadcast %112 : vector<1x48xf32> to vector<2x48xf32>
    %114 = arith.mulf %111, %113 : vector<2x48xf32>
    %115 = arith.addf %109, %114 : vector<2x48xf32>
    %c3 = arith.constant 3 : index
    %c0_68 = arith.constant 0 : index
    %c0_69 = arith.constant 0 : index
    %116 = vector.load %arg9[%c3, %c0_68, %c0_69] : memref<4x4x48xf32, #tpu.memory_space<vmem>>, vector<1x2x48xf32>
    %117 = vector.shape_cast %116 : vector<1x2x48xf32> to vector<2x48xf32>
    %118 = vector.extract_strided_slice %19 {offsets = [6, 0], sizes = [1, 48], strides = [1, 1]} : vector<9x48xf32> to vector<1x48xf32>
    %119 = vector.broadcast %118 : vector<1x48xf32> to vector<2x48xf32>
    %120 = arith.mulf %117, %119 : vector<2x48xf32>
    %121 = arith.addf %115, %120 : vector<2x48xf32>
    %c3_70 = arith.constant 3 : index
    %c1_71 = arith.constant 1 : index
    %c0_72 = arith.constant 0 : index
    %122 = vector.load %arg9[%c3_70, %c1_71, %c0_72] : memref<4x4x48xf32, #tpu.memory_space<vmem>>, vector<1x2x48xf32>
    %123 = vector.shape_cast %122 : vector<1x2x48xf32> to vector<2x48xf32>
    %124 = vector.extract_strided_slice %19 {offsets = [7, 0], sizes = [1, 48], strides = [1, 1]} : vector<9x48xf32> to vector<1x48xf32>
    %125 = vector.broadcast %124 : vector<1x48xf32> to vector<2x48xf32>
    %126 = arith.mulf %123, %125 : vector<2x48xf32>
    %127 = arith.addf %121, %126 : vector<2x48xf32>
    %c3_73 = arith.constant 3 : index
    %c2_74 = arith.constant 2 : index
    %c0_75 = arith.constant 0 : index
    %128 = vector.load %arg9[%c3_73, %c2_74, %c0_75] : memref<4x4x48xf32, #tpu.memory_space<vmem>>, vector<1x2x48xf32>
    %129 = vector.shape_cast %128 : vector<1x2x48xf32> to vector<2x48xf32>
    %130 = vector.extract_strided_slice %19 {offsets = [8, 0], sizes = [1, 48], strides = [1, 1]} : vector<9x48xf32> to vector<1x48xf32>
    %131 = vector.broadcast %130 : vector<1x48xf32> to vector<2x48xf32>
    %132 = arith.mulf %129, %131 : vector<2x48xf32>
    %133 = arith.addf %127, %132 : vector<2x48xf32>
    %134 = vector.broadcast %20 : vector<1x48xf32> to vector<2x48xf32>
    %135 = arith.addf %133, %134 : vector<2x48xf32>
    %c2_76 = arith.constant 2 : index
    %c0_77 = arith.constant 0 : index
    %136 = vector.load %arg10[%c2_76, %c0_77] : memref<4x48xf32, #tpu.memory_space<vmem>>, vector<2x48xf32>
    tpu.vector_store %arg10[%c2_76, %c0_77], %135 {strides = array<i32>} : memref<4x48xf32, #tpu.memory_space<vmem>>, vector<2x48xf32>,
    %c0_78 = arith.constant 0 : index
    %c0_79 = arith.constant 0 : index
    %137 = vector.load %arg10[%c0_78, %c0_79] : memref<4x48xf32, #tpu.memory_space<vmem>>, vector<4x48xf32>
    %138 = arith.truncf %137 : vector<4x48xf32> to vector<4x48xbf16>
    %c0_80 = arith.constant 0 : index
    %c0_81 = arith.constant 0 : index
    %139 = vector.load %arg6[%c0_80, %c0_81] : memref<48x48xbf16, #tpu.memory_space<vmem>>, vector<48x48xbf16>
    %cst_82 = arith.constant dense<0.000000e+00> : vector<4x48xf32>
    %140 = tpu.matmul %138, %139, %cst_82 {dimension_numbers = #tpu.dot_dimension_numbers<[1], [0], [0], [1], [0, 0, 1, 1], [], []>} : vector<4x48xbf16>, vector<48x48xbf16>, vector<4x48xf32> -> vector<4x48xf32>
    %c0_83 = arith.constant 0 : index
    %c0_84 = arith.constant 0 : index
    %141 = vector.load %arg7[%c0_83, %c0_84] : memref<1x48xf32, #tpu.memory_space<vmem>>, vector<1x48xf32>
    %142 = vector.broadcast %141 : vector<1x48xf32> to vector<4x48xf32>
    %143 = arith.addf %140, %142 : vector<4x48xf32>
    %cst_85 = arith.constant 0.000000e+00 : f32
    %144 = vector.broadcast %cst_85 : f32 to vector<4x48xf32>
    %145 = arith.maximumf %143, %144 : vector<4x48xf32>
    %c0_86 = arith.constant 0 : index
    %c0_87 = arith.constant 0 : index
    %c0_88 = arith.constant 0 : index
    %146 = vector.load %arg8[%c0_86, %c0_87, %c0_88] : memref<1x4x48xf32, #tpu.memory_space<vmem>>, vector<1x4x48xf32>
    %147 = vector.shape_cast %146 : vector<1x4x48xf32> to vector<4x48xf32>
    %148 = vector.shape_cast %145 : vector<4x48xf32> to vector<1x4x48xf32>
    tpu.vector_store %arg8[%c0_86, %c0_87, %c0_88], %148 {strides = array<i32>} : memref<1x4x48xf32, #tpu.memory_space<vmem>>, vector<1x4x48xf32>,
    return
  }
  func.func @transform_0(%arg0: i32) -> (i32, i32, i32) {
    %c0_i32 = arith.constant 0 : i32
    %c0_i32_0 = arith.constant 0 : i32
    %c0_i32_1 = arith.constant 0 : i32
    return %arg0, %c0_i32, %c0_i32_0 : i32, i32, i32
  }
  func.func @transform_1(%arg0: i32) -> (i32, i32) {
    %c0_i32 = arith.constant 0 : i32
    %c0_i32_0 = arith.constant 0 : i32
    %c0_i32_1 = arith.constant 0 : i32
    return %c0_i32, %c0_i32_0 : i32, i32
  }
  func.func @transform_2(%arg0: i32) -> (i32, i32) {
    %c0_i32 = arith.constant 0 : i32
    %c0_i32_0 = arith.constant 0 : i32
    %c0_i32_1 = arith.constant 0 : i32
    return %c0_i32, %c0_i32_0 : i32, i32
  }
  func.func @transform_3(%arg0: i32) -> (i32, i32) {
    %c0_i32 = arith.constant 0 : i32
    %c0_i32_0 = arith.constant 0 : i32
    %c0_i32_1 = arith.constant 0 : i32
    return %c0_i32, %c0_i32_0 : i32, i32
  }
  func.func @transform_4(%arg0: i32) -> (i32, i32) {
    %c0_i32 = arith.constant 0 : i32
    %c0_i32_0 = arith.constant 0 : i32
    %c0_i32_1 = arith.constant 0 : i32
    return %c0_i32, %c0_i32_0 : i32, i32
  }
  func.func @transform_5(%arg0: i32) -> (i32, i32) {
    %c0_i32 = arith.constant 0 : i32
    %c0_i32_0 = arith.constant 0 : i32
    %c0_i32_1 = arith.constant 0 : i32
    return %c0_i32, %c0_i32_0 : i32, i32
  }
  func.func @transform_6(%arg0: i32) -> (i32, i32) {
    %c0_i32 = arith.constant 0 : i32
    %c0_i32_0 = arith.constant 0 : i32
    %c0_i32_1 = arith.constant 0 : i32
    return %c0_i32, %c0_i32_0 : i32, i32
  }
  func.func @transform_7(%arg0: i32) -> (i32, i32, i32) {
    %c0_i32 = arith.constant 0 : i32
    %c0_i32_0 = arith.constant 0 : i32
    %c0_i32_1 = arith.constant 0 : i32
    return %arg0, %c0_i32, %c0_i32_0 : i32, i32, i32
  }
}

module attributes {stable_mosaic.version = 11 : i64} {
  func.func @_tap_dw_kernel(%arg0: i32, %arg1: memref<9x2x96xf32, #tpu.memory_space<vmem>>, %arg2: memref<9x96xf32, #tpu.memory_space<vmem>>, %arg3: memref<1x96xf32, #tpu.memory_space<vmem>>, %arg4: memref<2x96xf32, #tpu.memory_space<vmem>>) attributes {dimension_semantics = [#tpu.dimension_semantics<parallel>], iteration_bounds = array<i64: 1>, scalar_prefetch = 0 : i64, scratch_operands = 0 : i64, tpu.core_type = #tpu.core_type<tc>, window_params = [{transform_indices = @transform_0, window_bounds = array<i64: 9, 2, 96>}, {pipeline_mode = #tpu.pipeline_mode<synchronous>, transform_indices = @transform_1, window_bounds = array<i64: 9, 96>}, {pipeline_mode = #tpu.pipeline_mode<synchronous>, transform_indices = @transform_2, window_bounds = array<i64: 1, 96>}, {transform_indices = @transform_3, window_bounds = array<i64: 2, 96>}]} {
    %c0 = arith.constant 0 : index
    %c0_0 = arith.constant 0 : index
    %0 = vector.load %arg2[%c0, %c0_0] : memref<9x96xf32, #tpu.memory_space<vmem>>, vector<9x96xf32>
    %c0_1 = arith.constant 0 : index
    %c0_2 = arith.constant 0 : index
    %c0_3 = arith.constant 0 : index
    %1 = vector.load %arg1[%c0_1, %c0_2, %c0_3] : memref<9x2x96xf32, #tpu.memory_space<vmem>>, vector<1x2x96xf32>
    %2 = vector.shape_cast %1 : vector<1x2x96xf32> to vector<2x96xf32>
    %3 = vector.extract_strided_slice %0 {offsets = [0, 0], sizes = [1, 96], strides = [1, 1]} : vector<9x96xf32> to vector<1x96xf32>
    %4 = vector.broadcast %3 : vector<1x96xf32> to vector<2x96xf32>
    %5 = arith.mulf %2, %4 : vector<2x96xf32>
    %c1 = arith.constant 1 : index
    %c0_4 = arith.constant 0 : index
    %c0_5 = arith.constant 0 : index
    %6 = vector.load %arg1[%c1, %c0_4, %c0_5] : memref<9x2x96xf32, #tpu.memory_space<vmem>>, vector<1x2x96xf32>
    %7 = vector.shape_cast %6 : vector<1x2x96xf32> to vector<2x96xf32>
    %8 = vector.extract_strided_slice %0 {offsets = [1, 0], sizes = [1, 96], strides = [1, 1]} : vector<9x96xf32> to vector<1x96xf32>
    %9 = vector.broadcast %8 : vector<1x96xf32> to vector<2x96xf32>
    %10 = arith.mulf %7, %9 : vector<2x96xf32>
    %11 = arith.addf %5, %10 : vector<2x96xf32>
    %c2 = arith.constant 2 : index
    %c0_6 = arith.constant 0 : index
    %c0_7 = arith.constant 0 : index
    %12 = vector.load %arg1[%c2, %c0_6, %c0_7] : memref<9x2x96xf32, #tpu.memory_space<vmem>>, vector<1x2x96xf32>
    %13 = vector.shape_cast %12 : vector<1x2x96xf32> to vector<2x96xf32>
    %14 = vector.extract_strided_slice %0 {offsets = [2, 0], sizes = [1, 96], strides = [1, 1]} : vector<9x96xf32> to vector<1x96xf32>
    %15 = vector.broadcast %14 : vector<1x96xf32> to vector<2x96xf32>
    %16 = arith.mulf %13, %15 : vector<2x96xf32>
    %17 = arith.addf %11, %16 : vector<2x96xf32>
    %c3 = arith.constant 3 : index
    %c0_8 = arith.constant 0 : index
    %c0_9 = arith.constant 0 : index
    %18 = vector.load %arg1[%c3, %c0_8, %c0_9] : memref<9x2x96xf32, #tpu.memory_space<vmem>>, vector<1x2x96xf32>
    %19 = vector.shape_cast %18 : vector<1x2x96xf32> to vector<2x96xf32>
    %20 = vector.extract_strided_slice %0 {offsets = [3, 0], sizes = [1, 96], strides = [1, 1]} : vector<9x96xf32> to vector<1x96xf32>
    %21 = vector.broadcast %20 : vector<1x96xf32> to vector<2x96xf32>
    %22 = arith.mulf %19, %21 : vector<2x96xf32>
    %23 = arith.addf %17, %22 : vector<2x96xf32>
    %c4 = arith.constant 4 : index
    %c0_10 = arith.constant 0 : index
    %c0_11 = arith.constant 0 : index
    %24 = vector.load %arg1[%c4, %c0_10, %c0_11] : memref<9x2x96xf32, #tpu.memory_space<vmem>>, vector<1x2x96xf32>
    %25 = vector.shape_cast %24 : vector<1x2x96xf32> to vector<2x96xf32>
    %26 = vector.extract_strided_slice %0 {offsets = [4, 0], sizes = [1, 96], strides = [1, 1]} : vector<9x96xf32> to vector<1x96xf32>
    %27 = vector.broadcast %26 : vector<1x96xf32> to vector<2x96xf32>
    %28 = arith.mulf %25, %27 : vector<2x96xf32>
    %29 = arith.addf %23, %28 : vector<2x96xf32>
    %c5 = arith.constant 5 : index
    %c0_12 = arith.constant 0 : index
    %c0_13 = arith.constant 0 : index
    %30 = vector.load %arg1[%c5, %c0_12, %c0_13] : memref<9x2x96xf32, #tpu.memory_space<vmem>>, vector<1x2x96xf32>
    %31 = vector.shape_cast %30 : vector<1x2x96xf32> to vector<2x96xf32>
    %32 = vector.extract_strided_slice %0 {offsets = [5, 0], sizes = [1, 96], strides = [1, 1]} : vector<9x96xf32> to vector<1x96xf32>
    %33 = vector.broadcast %32 : vector<1x96xf32> to vector<2x96xf32>
    %34 = arith.mulf %31, %33 : vector<2x96xf32>
    %35 = arith.addf %29, %34 : vector<2x96xf32>
    %c6 = arith.constant 6 : index
    %c0_14 = arith.constant 0 : index
    %c0_15 = arith.constant 0 : index
    %36 = vector.load %arg1[%c6, %c0_14, %c0_15] : memref<9x2x96xf32, #tpu.memory_space<vmem>>, vector<1x2x96xf32>
    %37 = vector.shape_cast %36 : vector<1x2x96xf32> to vector<2x96xf32>
    %38 = vector.extract_strided_slice %0 {offsets = [6, 0], sizes = [1, 96], strides = [1, 1]} : vector<9x96xf32> to vector<1x96xf32>
    %39 = vector.broadcast %38 : vector<1x96xf32> to vector<2x96xf32>
    %40 = arith.mulf %37, %39 : vector<2x96xf32>
    %41 = arith.addf %35, %40 : vector<2x96xf32>
    %c7 = arith.constant 7 : index
    %c0_16 = arith.constant 0 : index
    %c0_17 = arith.constant 0 : index
    %42 = vector.load %arg1[%c7, %c0_16, %c0_17] : memref<9x2x96xf32, #tpu.memory_space<vmem>>, vector<1x2x96xf32>
    %43 = vector.shape_cast %42 : vector<1x2x96xf32> to vector<2x96xf32>
    %44 = vector.extract_strided_slice %0 {offsets = [7, 0], sizes = [1, 96], strides = [1, 1]} : vector<9x96xf32> to vector<1x96xf32>
    %45 = vector.broadcast %44 : vector<1x96xf32> to vector<2x96xf32>
    %46 = arith.mulf %43, %45 : vector<2x96xf32>
    %47 = arith.addf %41, %46 : vector<2x96xf32>
    %c8 = arith.constant 8 : index
    %c0_18 = arith.constant 0 : index
    %c0_19 = arith.constant 0 : index
    %48 = vector.load %arg1[%c8, %c0_18, %c0_19] : memref<9x2x96xf32, #tpu.memory_space<vmem>>, vector<1x2x96xf32>
    %49 = vector.shape_cast %48 : vector<1x2x96xf32> to vector<2x96xf32>
    %50 = vector.extract_strided_slice %0 {offsets = [8, 0], sizes = [1, 96], strides = [1, 1]} : vector<9x96xf32> to vector<1x96xf32>
    %51 = vector.broadcast %50 : vector<1x96xf32> to vector<2x96xf32>
    %52 = arith.mulf %49, %51 : vector<2x96xf32>
    %53 = arith.addf %47, %52 : vector<2x96xf32>
    %c0_20 = arith.constant 0 : index
    %c0_21 = arith.constant 0 : index
    %54 = vector.load %arg3[%c0_20, %c0_21] : memref<1x96xf32, #tpu.memory_space<vmem>>, vector<1x96xf32>
    %55 = vector.broadcast %54 : vector<1x96xf32> to vector<2x96xf32>
    %56 = arith.addf %53, %55 : vector<2x96xf32>
    %c0_22 = arith.constant 0 : index
    %c0_23 = arith.constant 0 : index
    %57 = vector.load %arg4[%c0_22, %c0_23] : memref<2x96xf32, #tpu.memory_space<vmem>>, vector<2x96xf32>
    tpu.vector_store %arg4[%c0_22, %c0_23], %56 {strides = array<i32>} : memref<2x96xf32, #tpu.memory_space<vmem>>, vector<2x96xf32>,
    return
  }
  func.func @transform_0(%arg0: i32) -> (i32, i32, i32) {
    %c0_i32 = arith.constant 0 : i32
    %c0_i32_0 = arith.constant 0 : i32
    %c0_i32_1 = arith.constant 0 : i32
    return %c0_i32, %arg0, %c0_i32_0 : i32, i32, i32
  }
  func.func @transform_1(%arg0: i32) -> (i32, i32) {
    %c0_i32 = arith.constant 0 : i32
    %c0_i32_0 = arith.constant 0 : i32
    %c0_i32_1 = arith.constant 0 : i32
    return %c0_i32, %c0_i32_0 : i32, i32
  }
  func.func @transform_2(%arg0: i32) -> (i32, i32) {
    %c0_i32 = arith.constant 0 : i32
    %c0_i32_0 = arith.constant 0 : i32
    %c0_i32_1 = arith.constant 0 : i32
    return %c0_i32, %c0_i32_0 : i32, i32
  }
  func.func @transform_3(%arg0: i32) -> (i32, i32) {
    %c0_i32 = arith.constant 0 : i32
    %c0_i32_0 = arith.constant 0 : i32
    return %arg0, %c0_i32 : i32, i32
  }
}

module attributes {stable_mosaic.version = 11 : i64} {
  func.func @_matmul_bias_kernel(%arg0: i32, %arg1: memref<2x96xbf16, #tpu.memory_space<vmem>>, %arg2: memref<96x96xbf16, #tpu.memory_space<vmem>>, %arg3: memref<1x96xf32, #tpu.memory_space<vmem>>, %arg4: memref<2x96xf32, #tpu.memory_space<vmem>>) attributes {dimension_semantics = [#tpu.dimension_semantics<parallel>], iteration_bounds = array<i64: 1>, scalar_prefetch = 0 : i64, scratch_operands = 0 : i64, tpu.core_type = #tpu.core_type<tc>, window_params = [{transform_indices = @transform_0, window_bounds = array<i64: 2, 96>}, {pipeline_mode = #tpu.pipeline_mode<synchronous>, transform_indices = @transform_1, window_bounds = array<i64: 96, 96>}, {pipeline_mode = #tpu.pipeline_mode<synchronous>, transform_indices = @transform_2, window_bounds = array<i64: 1, 96>}, {transform_indices = @transform_3, window_bounds = array<i64: 2, 96>}]} {
    %c0 = arith.constant 0 : index
    %c0_0 = arith.constant 0 : index
    %0 = vector.load %arg1[%c0, %c0_0] : memref<2x96xbf16, #tpu.memory_space<vmem>>, vector<2x96xbf16>
    %c0_1 = arith.constant 0 : index
    %c0_2 = arith.constant 0 : index
    %1 = vector.load %arg2[%c0_1, %c0_2] : memref<96x96xbf16, #tpu.memory_space<vmem>>, vector<96x96xbf16>
    %cst = arith.constant dense<0.000000e+00> : vector<2x96xf32>
    %2 = tpu.matmul %0, %1, %cst {dimension_numbers = #tpu.dot_dimension_numbers<[1], [0], [0], [1], [0, 0, 1, 1], [], []>} : vector<2x96xbf16>, vector<96x96xbf16>, vector<2x96xf32> -> vector<2x96xf32>
    %c0_3 = arith.constant 0 : index
    %c0_4 = arith.constant 0 : index
    %3 = vector.load %arg3[%c0_3, %c0_4] : memref<1x96xf32, #tpu.memory_space<vmem>>, vector<1x96xf32>
    %4 = vector.broadcast %3 : vector<1x96xf32> to vector<2x96xf32>
    %5 = arith.addf %2, %4 : vector<2x96xf32>
    %cst_5 = arith.constant 0.000000e+00 : f32
    %6 = vector.broadcast %cst_5 : f32 to vector<2x96xf32>
    %7 = arith.maximumf %5, %6 : vector<2x96xf32>
    %c0_6 = arith.constant 0 : index
    %c0_7 = arith.constant 0 : index
    %8 = vector.load %arg4[%c0_6, %c0_7] : memref<2x96xf32, #tpu.memory_space<vmem>>, vector<2x96xf32>
    tpu.vector_store %arg4[%c0_6, %c0_7], %7 {strides = array<i32>} : memref<2x96xf32, #tpu.memory_space<vmem>>, vector<2x96xf32>,
    return
  }
  func.func @transform_0(%arg0: i32) -> (i32, i32) {
    %c0_i32 = arith.constant 0 : i32
    %c0_i32_0 = arith.constant 0 : i32
    return %arg0, %c0_i32 : i32, i32
  }
  func.func @transform_1(%arg0: i32) -> (i32, i32) {
    %c0_i32 = arith.constant 0 : i32
    %c0_i32_0 = arith.constant 0 : i32
    %c0_i32_1 = arith.constant 0 : i32
    return %c0_i32, %c0_i32_0 : i32, i32
  }
  func.func @transform_2(%arg0: i32) -> (i32, i32) {
    %c0_i32 = arith.constant 0 : i32
    %c0_i32_0 = arith.constant 0 : i32
    %c0_i32_1 = arith.constant 0 : i32
    return %c0_i32, %c0_i32_0 : i32, i32
  }
  func.func @transform_3(%arg0: i32) -> (i32, i32) {
    %c0_i32 = arith.constant 0 : i32
    %c0_i32_0 = arith.constant 0 : i32
    return %arg0, %c0_i32 : i32, i32
  }
}

module attributes {stable_mosaic.version = 11 : i64} {
  func.func @_matmul_bias_kernel(%arg0: i32, %arg1: memref<8x96xbf16, #tpu.memory_space<vmem>>, %arg2: memref<96x96xbf16, #tpu.memory_space<vmem>>, %arg3: memref<1x96xf32, #tpu.memory_space<vmem>>, %arg4: memref<8x96xf32, #tpu.memory_space<vmem>>) attributes {dimension_semantics = [#tpu.dimension_semantics<parallel>], iteration_bounds = array<i64: 1>, scalar_prefetch = 0 : i64, scratch_operands = 0 : i64, tpu.core_type = #tpu.core_type<tc>, window_params = [{transform_indices = @transform_0, window_bounds = array<i64: 8, 96>}, {pipeline_mode = #tpu.pipeline_mode<synchronous>, transform_indices = @transform_1, window_bounds = array<i64: 96, 96>}, {pipeline_mode = #tpu.pipeline_mode<synchronous>, transform_indices = @transform_2, window_bounds = array<i64: 1, 96>}, {transform_indices = @transform_3, window_bounds = array<i64: 8, 96>}]} {
    %c0 = arith.constant 0 : index
    %c0_0 = arith.constant 0 : index
    %0 = vector.load %arg1[%c0, %c0_0] : memref<8x96xbf16, #tpu.memory_space<vmem>>, vector<8x96xbf16>
    %c0_1 = arith.constant 0 : index
    %c0_2 = arith.constant 0 : index
    %1 = vector.load %arg2[%c0_1, %c0_2] : memref<96x96xbf16, #tpu.memory_space<vmem>>, vector<96x96xbf16>
    %cst = arith.constant dense<0.000000e+00> : vector<8x96xf32>
    %2 = tpu.matmul %0, %1, %cst {dimension_numbers = #tpu.dot_dimension_numbers<[1], [0], [0], [1], [0, 0, 1, 1], [], []>} : vector<8x96xbf16>, vector<96x96xbf16>, vector<8x96xf32> -> vector<8x96xf32>
    %c0_3 = arith.constant 0 : index
    %c0_4 = arith.constant 0 : index
    %3 = vector.load %arg3[%c0_3, %c0_4] : memref<1x96xf32, #tpu.memory_space<vmem>>, vector<1x96xf32>
    %4 = vector.broadcast %3 : vector<1x96xf32> to vector<8x96xf32>
    %5 = arith.addf %2, %4 : vector<8x96xf32>
    %cst_5 = arith.constant 0.000000e+00 : f32
    %6 = vector.broadcast %cst_5 : f32 to vector<8x96xf32>
    %7 = arith.maximumf %5, %6 : vector<8x96xf32>
    %c0_6 = arith.constant 0 : index
    %c0_7 = arith.constant 0 : index
    %8 = vector.load %arg4[%c0_6, %c0_7] : memref<8x96xf32, #tpu.memory_space<vmem>>, vector<8x96xf32>
    tpu.vector_store %arg4[%c0_6, %c0_7], %7 {strides = array<i32>} : memref<8x96xf32, #tpu.memory_space<vmem>>, vector<8x96xf32>,
    return
  }
  func.func @transform_0(%arg0: i32) -> (i32, i32) {
    %c0_i32 = arith.constant 0 : i32
    %c0_i32_0 = arith.constant 0 : i32
    return %arg0, %c0_i32 : i32, i32
  }
  func.func @transform_1(%arg0: i32) -> (i32, i32) {
    %c0_i32 = arith.constant 0 : i32
    %c0_i32_0 = arith.constant 0 : i32
    %c0_i32_1 = arith.constant 0 : i32
    return %c0_i32, %c0_i32_0 : i32, i32
  }
  func.func @transform_2(%arg0: i32) -> (i32, i32) {
    %c0_i32 = arith.constant 0 : i32
    %c0_i32_0 = arith.constant 0 : i32
    %c0_i32_1 = arith.constant 0 : i32
    return %c0_i32, %c0_i32_0 : i32, i32
  }
  func.func @transform_3(%arg0: i32) -> (i32, i32) {
    %c0_i32 = arith.constant 0 : i32
    %c0_i32_0 = arith.constant 0 : i32
    return %arg0, %c0_i32 : i32, i32
  }
}

module attributes {stable_mosaic.version = 11 : i64} {
  func.func @_basic_unit_kernel(%arg0: i32, %arg1: memref<1x1x96xbf16, #tpu.memory_space<vmem>>, %arg2: memref<96x96xbf16, #tpu.memory_space<vmem>>, %arg3: memref<1x96xf32, #tpu.memory_space<vmem>>, %arg4: memref<9x96xf32, #tpu.memory_space<vmem>>, %arg5: memref<1x96xf32, #tpu.memory_space<vmem>>, %arg6: memref<96x96xbf16, #tpu.memory_space<vmem>>, %arg7: memref<1x96xf32, #tpu.memory_space<vmem>>, %arg8: memref<1x1x96xf32, #tpu.memory_space<vmem>>, %arg9: memref<3x3x96xf32, #tpu.memory_space<vmem>>, %arg10: memref<1x96xf32, #tpu.memory_space<vmem>>) attributes {dimension_semantics = [#tpu.dimension_semantics<parallel>], iteration_bounds = array<i64: 2>, scalar_prefetch = 0 : i64, scratch_operands = 2 : i64, tpu.core_type = #tpu.core_type<tc>, window_params = [{transform_indices = @transform_0, window_bounds = array<i64: 1, 1, 96>}, {pipeline_mode = #tpu.pipeline_mode<synchronous>, transform_indices = @transform_1, window_bounds = array<i64: 96, 96>}, {pipeline_mode = #tpu.pipeline_mode<synchronous>, transform_indices = @transform_2, window_bounds = array<i64: 1, 96>}, {pipeline_mode = #tpu.pipeline_mode<synchronous>, transform_indices = @transform_3, window_bounds = array<i64: 9, 96>}, {pipeline_mode = #tpu.pipeline_mode<synchronous>, transform_indices = @transform_4, window_bounds = array<i64: 1, 96>}, {pipeline_mode = #tpu.pipeline_mode<synchronous>, transform_indices = @transform_5, window_bounds = array<i64: 96, 96>}, {pipeline_mode = #tpu.pipeline_mode<synchronous>, transform_indices = @transform_6, window_bounds = array<i64: 1, 96>}, {transform_indices = @transform_7, window_bounds = array<i64: 1, 1, 96>}]} {
    %c0 = arith.constant 0 : index
    %c0_0 = arith.constant 0 : index
    %c0_1 = arith.constant 0 : index
    %0 = vector.load %arg1[%c0, %c0_0, %c0_1] : memref<1x1x96xbf16, #tpu.memory_space<vmem>>, vector<1x1x96xbf16>
    %1 = vector.shape_cast %0 : vector<1x1x96xbf16> to vector<1x96xbf16>
    %c0_2 = arith.constant 0 : index
    %c0_3 = arith.constant 0 : index
    %2 = vector.load %arg2[%c0_2, %c0_3] : memref<96x96xbf16, #tpu.memory_space<vmem>>, vector<96x96xbf16>
    %cst = arith.constant dense<0.000000e+00> : vector<1x96xf32>
    %3 = tpu.matmul %1, %2, %cst {dimension_numbers = #tpu.dot_dimension_numbers<[1], [0], [0], [1], [0, 0, 1, 1], [], []>} : vector<1x96xbf16>, vector<96x96xbf16>, vector<1x96xf32> -> vector<1x96xf32>
    %c0_4 = arith.constant 0 : index
    %c0_5 = arith.constant 0 : index
    %4 = vector.load %arg3[%c0_4, %c0_5] : memref<1x96xf32, #tpu.memory_space<vmem>>, vector<1x96xf32>
    %5 = arith.addf %3, %4 : vector<1x96xf32>
    %cst_6 = arith.constant 0.000000e+00 : f32
    %6 = vector.broadcast %cst_6 : f32 to vector<1x96xf32>
    %7 = arith.maximumf %5, %6 : vector<1x96xf32>
    %cst_7 = arith.constant 0.000000e+00 : f32
    %8 = vector.broadcast %cst_7 : f32 to vector<3x3x96xf32>
    %c0_8 = arith.constant 0 : index
    %c0_9 = arith.constant 0 : index
    %c0_10 = arith.constant 0 : index
    %9 = vector.load %arg9[%c0_8, %c0_9, %c0_10] : memref<3x3x96xf32, #tpu.memory_space<vmem>>, vector<3x3x96xf32>
    tpu.vector_store %arg9[%c0_8, %c0_9, %c0_10], %8 {strides = array<i32>} : memref<3x3x96xf32, #tpu.memory_space<vmem>>, vector<3x3x96xf32>,
    %c1 = arith.constant 1 : index
    %c1_11 = arith.constant 1 : index
    %c0_12 = arith.constant 0 : index
    %10 = vector.load %arg9[%c1, %c1_11, %c0_12] : memref<3x3x96xf32, #tpu.memory_space<vmem>>, vector<1x1x96xf32>
    %11 = vector.shape_cast %10 : vector<1x1x96xf32> to vector<1x96xf32>
    %12 = vector.shape_cast %7 : vector<1x96xf32> to vector<1x1x96xf32>
    tpu.vector_store %arg9[%c1, %c1_11, %c0_12], %12 {strides = array<i32>} : memref<3x3x96xf32, #tpu.memory_space<vmem>>, vector<1x1x96xf32>,
    %c0_13 = arith.constant 0 : index
    %c0_14 = arith.constant 0 : index
    %13 = vector.load %arg4[%c0_13, %c0_14] : memref<9x96xf32, #tpu.memory_space<vmem>>, vector<9x96xf32>
    %c0_15 = arith.constant 0 : index
    %c0_16 = arith.constant 0 : index
    %14 = vector.load %arg5[%c0_15, %c0_16] : memref<1x96xf32, #tpu.memory_space<vmem>>, vector<1x96xf32>
    %cst_17 = arith.constant 0.000000e+00 : f32
    %15 = vector.broadcast %cst_17 : f32 to vector<1x96xf32>
    %c0_18 = arith.constant 0 : index
    %c0_19 = arith.constant 0 : index
    %c0_20 = arith.constant 0 : index
    %16 = vector.load %arg9[%c0_18, %c0_19, %c0_20] : memref<3x3x96xf32, #tpu.memory_space<vmem>>, vector<1x1x96xf32>
    %17 = vector.shape_cast %16 : vector<1x1x96xf32> to vector<1x96xf32>
    %18 = vector.extract_strided_slice %13 {offsets = [0, 0], sizes = [1, 96], strides = [1, 1]} : vector<9x96xf32> to vector<1x96xf32>
    %19 = arith.mulf %17, %18 : vector<1x96xf32>
    %20 = arith.addf %15, %19 : vector<1x96xf32>
    %c0_21 = arith.constant 0 : index
    %c1_22 = arith.constant 1 : index
    %c0_23 = arith.constant 0 : index
    %21 = vector.load %arg9[%c0_21, %c1_22, %c0_23] : memref<3x3x96xf32, #tpu.memory_space<vmem>>, vector<1x1x96xf32>
    %22 = vector.shape_cast %21 : vector<1x1x96xf32> to vector<1x96xf32>
    %23 = vector.extract_strided_slice %13 {offsets = [1, 0], sizes = [1, 96], strides = [1, 1]} : vector<9x96xf32> to vector<1x96xf32>
    %24 = arith.mulf %22, %23 : vector<1x96xf32>
    %25 = arith.addf %20, %24 : vector<1x96xf32>
    %c0_24 = arith.constant 0 : index
    %c2 = arith.constant 2 : index
    %c0_25 = arith.constant 0 : index
    %26 = vector.load %arg9[%c0_24, %c2, %c0_25] : memref<3x3x96xf32, #tpu.memory_space<vmem>>, vector<1x1x96xf32>
    %27 = vector.shape_cast %26 : vector<1x1x96xf32> to vector<1x96xf32>
    %28 = vector.extract_strided_slice %13 {offsets = [2, 0], sizes = [1, 96], strides = [1, 1]} : vector<9x96xf32> to vector<1x96xf32>
    %29 = arith.mulf %27, %28 : vector<1x96xf32>
    %30 = arith.addf %25, %29 : vector<1x96xf32>
    %c1_26 = arith.constant 1 : index
    %c0_27 = arith.constant 0 : index
    %c0_28 = arith.constant 0 : index
    %31 = vector.load %arg9[%c1_26, %c0_27, %c0_28] : memref<3x3x96xf32, #tpu.memory_space<vmem>>, vector<1x1x96xf32>
    %32 = vector.shape_cast %31 : vector<1x1x96xf32> to vector<1x96xf32>
    %33 = vector.extract_strided_slice %13 {offsets = [3, 0], sizes = [1, 96], strides = [1, 1]} : vector<9x96xf32> to vector<1x96xf32>
    %34 = arith.mulf %32, %33 : vector<1x96xf32>
    %35 = arith.addf %30, %34 : vector<1x96xf32>
    %c1_29 = arith.constant 1 : index
    %c1_30 = arith.constant 1 : index
    %c0_31 = arith.constant 0 : index
    %36 = vector.load %arg9[%c1_29, %c1_30, %c0_31] : memref<3x3x96xf32, #tpu.memory_space<vmem>>, vector<1x1x96xf32>
    %37 = vector.shape_cast %36 : vector<1x1x96xf32> to vector<1x96xf32>
    %38 = vector.extract_strided_slice %13 {offsets = [4, 0], sizes = [1, 96], strides = [1, 1]} : vector<9x96xf32> to vector<1x96xf32>
    %39 = arith.mulf %37, %38 : vector<1x96xf32>
    %40 = arith.addf %35, %39 : vector<1x96xf32>
    %c1_32 = arith.constant 1 : index
    %c2_33 = arith.constant 2 : index
    %c0_34 = arith.constant 0 : index
    %41 = vector.load %arg9[%c1_32, %c2_33, %c0_34] : memref<3x3x96xf32, #tpu.memory_space<vmem>>, vector<1x1x96xf32>
    %42 = vector.shape_cast %41 : vector<1x1x96xf32> to vector<1x96xf32>
    %43 = vector.extract_strided_slice %13 {offsets = [5, 0], sizes = [1, 96], strides = [1, 1]} : vector<9x96xf32> to vector<1x96xf32>
    %44 = arith.mulf %42, %43 : vector<1x96xf32>
    %45 = arith.addf %40, %44 : vector<1x96xf32>
    %c2_35 = arith.constant 2 : index
    %c0_36 = arith.constant 0 : index
    %c0_37 = arith.constant 0 : index
    %46 = vector.load %arg9[%c2_35, %c0_36, %c0_37] : memref<3x3x96xf32, #tpu.memory_space<vmem>>, vector<1x1x96xf32>
    %47 = vector.shape_cast %46 : vector<1x1x96xf32> to vector<1x96xf32>
    %48 = vector.extract_strided_slice %13 {offsets = [6, 0], sizes = [1, 96], strides = [1, 1]} : vector<9x96xf32> to vector<1x96xf32>
    %49 = arith.mulf %47, %48 : vector<1x96xf32>
    %50 = arith.addf %45, %49 : vector<1x96xf32>
    %c2_38 = arith.constant 2 : index
    %c1_39 = arith.constant 1 : index
    %c0_40 = arith.constant 0 : index
    %51 = vector.load %arg9[%c2_38, %c1_39, %c0_40] : memref<3x3x96xf32, #tpu.memory_space<vmem>>, vector<1x1x96xf32>
    %52 = vector.shape_cast %51 : vector<1x1x96xf32> to vector<1x96xf32>
    %53 = vector.extract_strided_slice %13 {offsets = [7, 0], sizes = [1, 96], strides = [1, 1]} : vector<9x96xf32> to vector<1x96xf32>
    %54 = arith.mulf %52, %53 : vector<1x96xf32>
    %55 = arith.addf %50, %54 : vector<1x96xf32>
    %c2_41 = arith.constant 2 : index
    %c2_42 = arith.constant 2 : index
    %c0_43 = arith.constant 0 : index
    %56 = vector.load %arg9[%c2_41, %c2_42, %c0_43] : memref<3x3x96xf32, #tpu.memory_space<vmem>>, vector<1x1x96xf32>
    %57 = vector.shape_cast %56 : vector<1x1x96xf32> to vector<1x96xf32>
    %58 = vector.extract_strided_slice %13 {offsets = [8, 0], sizes = [1, 96], strides = [1, 1]} : vector<9x96xf32> to vector<1x96xf32>
    %59 = arith.mulf %57, %58 : vector<1x96xf32>
    %60 = arith.addf %55, %59 : vector<1x96xf32>
    %61 = arith.addf %60, %14 : vector<1x96xf32>
    %c0_44 = arith.constant 0 : index
    %c0_45 = arith.constant 0 : index
    %62 = vector.load %arg10[%c0_44, %c0_45] : memref<1x96xf32, #tpu.memory_space<vmem>>, vector<1x96xf32>
    tpu.vector_store %arg10[%c0_44, %c0_45], %61 {strides = array<i32>} : memref<1x96xf32, #tpu.memory_space<vmem>>, vector<1x96xf32>,
    %c0_46 = arith.constant 0 : index
    %c0_47 = arith.constant 0 : index
    %63 = vector.load %arg10[%c0_46, %c0_47] : memref<1x96xf32, #tpu.memory_space<vmem>>, vector<1x96xf32>
    %64 = arith.truncf %63 : vector<1x96xf32> to vector<1x96xbf16>
    %c0_48 = arith.constant 0 : index
    %c0_49 = arith.constant 0 : index
    %65 = vector.load %arg6[%c0_48, %c0_49] : memref<96x96xbf16, #tpu.memory_space<vmem>>, vector<96x96xbf16>
    %cst_50 = arith.constant dense<0.000000e+00> : vector<1x96xf32>
    %66 = tpu.matmul %64, %65, %cst_50 {dimension_numbers = #tpu.dot_dimension_numbers<[1], [0], [0], [1], [0, 0, 1, 1], [], []>} : vector<1x96xbf16>, vector<96x96xbf16>, vector<1x96xf32> -> vector<1x96xf32>
    %c0_51 = arith.constant 0 : index
    %c0_52 = arith.constant 0 : index
    %67 = vector.load %arg7[%c0_51, %c0_52] : memref<1x96xf32, #tpu.memory_space<vmem>>, vector<1x96xf32>
    %68 = arith.addf %66, %67 : vector<1x96xf32>
    %cst_53 = arith.constant 0.000000e+00 : f32
    %69 = vector.broadcast %cst_53 : f32 to vector<1x96xf32>
    %70 = arith.maximumf %68, %69 : vector<1x96xf32>
    %c0_54 = arith.constant 0 : index
    %c0_55 = arith.constant 0 : index
    %c0_56 = arith.constant 0 : index
    %71 = vector.load %arg8[%c0_54, %c0_55, %c0_56] : memref<1x1x96xf32, #tpu.memory_space<vmem>>, vector<1x1x96xf32>
    %72 = vector.shape_cast %71 : vector<1x1x96xf32> to vector<1x96xf32>
    %73 = vector.shape_cast %70 : vector<1x96xf32> to vector<1x1x96xf32>
    tpu.vector_store %arg8[%c0_54, %c0_55, %c0_56], %73 {strides = array<i32>} : memref<1x1x96xf32, #tpu.memory_space<vmem>>, vector<1x1x96xf32>,
    return
  }
  func.func @transform_0(%arg0: i32) -> (i32, i32, i32) {
    %c0_i32 = arith.constant 0 : i32
    %c0_i32_0 = arith.constant 0 : i32
    %c0_i32_1 = arith.constant 0 : i32
    return %arg0, %c0_i32, %c0_i32_0 : i32, i32, i32
  }
  func.func @transform_1(%arg0: i32) -> (i32, i32) {
    %c0_i32 = arith.constant 0 : i32
    %c0_i32_0 = arith.constant 0 : i32
    %c0_i32_1 = arith.constant 0 : i32
    return %c0_i32, %c0_i32_0 : i32, i32
  }
  func.func @transform_2(%arg0: i32) -> (i32, i32) {
    %c0_i32 = arith.constant 0 : i32
    %c0_i32_0 = arith.constant 0 : i32
    %c0_i32_1 = arith.constant 0 : i32
    return %c0_i32, %c0_i32_0 : i32, i32
  }
  func.func @transform_3(%arg0: i32) -> (i32, i32) {
    %c0_i32 = arith.constant 0 : i32
    %c0_i32_0 = arith.constant 0 : i32
    %c0_i32_1 = arith.constant 0 : i32
    return %c0_i32, %c0_i32_0 : i32, i32
  }
  func.func @transform_4(%arg0: i32) -> (i32, i32) {
    %c0_i32 = arith.constant 0 : i32
    %c0_i32_0 = arith.constant 0 : i32
    %c0_i32_1 = arith.constant 0 : i32
    return %c0_i32, %c0_i32_0 : i32, i32
  }
  func.func @transform_5(%arg0: i32) -> (i32, i32) {
    %c0_i32 = arith.constant 0 : i32
    %c0_i32_0 = arith.constant 0 : i32
    %c0_i32_1 = arith.constant 0 : i32
    return %c0_i32, %c0_i32_0 : i32, i32
  }
  func.func @transform_6(%arg0: i32) -> (i32, i32) {
    %c0_i32 = arith.constant 0 : i32
    %c0_i32_0 = arith.constant 0 : i32
    %c0_i32_1 = arith.constant 0 : i32
    return %c0_i32, %c0_i32_0 : i32, i32
  }
  func.func @transform_7(%arg0: i32) -> (i32, i32, i32) {
    %c0_i32 = arith.constant 0 : i32
    %c0_i32_0 = arith.constant 0 : i32
    %c0_i32_1 = arith.constant 0 : i32
    return %arg0, %c0_i32, %c0_i32_0 : i32, i32, i32
  }
}

module attributes {stable_mosaic.version = 11 : i64} {
  func.func @_matmul_bias_kernel(%arg0: i32, %arg1: memref<2x192xbf16, #tpu.memory_space<vmem>>, %arg2: memref<192x1024xbf16, #tpu.memory_space<vmem>>, %arg3: memref<1x1024xf32, #tpu.memory_space<vmem>>, %arg4: memref<2x1024xf32, #tpu.memory_space<vmem>>) attributes {dimension_semantics = [#tpu.dimension_semantics<parallel>], iteration_bounds = array<i64: 1>, scalar_prefetch = 0 : i64, scratch_operands = 0 : i64, tpu.core_type = #tpu.core_type<tc>, window_params = [{transform_indices = @transform_0, window_bounds = array<i64: 2, 192>}, {pipeline_mode = #tpu.pipeline_mode<synchronous>, transform_indices = @transform_1, window_bounds = array<i64: 192, 1024>}, {pipeline_mode = #tpu.pipeline_mode<synchronous>, transform_indices = @transform_2, window_bounds = array<i64: 1, 1024>}, {transform_indices = @transform_3, window_bounds = array<i64: 2, 1024>}]} {
    %c0 = arith.constant 0 : index
    %c0_0 = arith.constant 0 : index
    %0 = vector.load %arg1[%c0, %c0_0] : memref<2x192xbf16, #tpu.memory_space<vmem>>, vector<2x192xbf16>
    %c0_1 = arith.constant 0 : index
    %c0_2 = arith.constant 0 : index
    %1 = vector.load %arg2[%c0_1, %c0_2] : memref<192x1024xbf16, #tpu.memory_space<vmem>>, vector<192x1024xbf16>
    %cst = arith.constant dense<0.000000e+00> : vector<2x1024xf32>
    %2 = tpu.matmul %0, %1, %cst {dimension_numbers = #tpu.dot_dimension_numbers<[1], [0], [0], [1], [0, 0, 1, 1], [], []>} : vector<2x192xbf16>, vector<192x1024xbf16>, vector<2x1024xf32> -> vector<2x1024xf32>
    %c0_3 = arith.constant 0 : index
    %c0_4 = arith.constant 0 : index
    %3 = vector.load %arg3[%c0_3, %c0_4] : memref<1x1024xf32, #tpu.memory_space<vmem>>, vector<1x1024xf32>
    %4 = vector.broadcast %3 : vector<1x1024xf32> to vector<2x1024xf32>
    %5 = arith.addf %2, %4 : vector<2x1024xf32>
    %cst_5 = arith.constant 0.000000e+00 : f32
    %6 = vector.broadcast %cst_5 : f32 to vector<2x1024xf32>
    %7 = arith.maximumf %5, %6 : vector<2x1024xf32>
    %c0_6 = arith.constant 0 : index
    %c0_7 = arith.constant 0 : index
    %8 = vector.load %arg4[%c0_6, %c0_7] : memref<2x1024xf32, #tpu.memory_space<vmem>>, vector<2x1024xf32>
    tpu.vector_store %arg4[%c0_6, %c0_7], %7 {strides = array<i32>} : memref<2x1024xf32, #tpu.memory_space<vmem>>, vector<2x1024xf32>,
    return
  }
  func.func @transform_0(%arg0: i32) -> (i32, i32) {
    %c0_i32 = arith.constant 0 : i32
    %c0_i32_0 = arith.constant 0 : i32
    return %arg0, %c0_i32 : i32, i32
  }
  func.func @transform_1(%arg0: i32) -> (i32, i32) {
    %c0_i32 = arith.constant 0 : i32
    %c0_i32_0 = arith.constant 0 : i32
    %c0_i32_1 = arith.constant 0 : i32
    return %c0_i32, %c0_i32_0 : i32, i32
  }
  func.func @transform_2(%arg0: i32) -> (i32, i32) {
    %c0_i32 = arith.constant 0 : i32
    %c0_i32_0 = arith.constant 0 : i32
    %c0_i32_1 = arith.constant 0 : i32
    return %c0_i32, %c0_i32_0 : i32, i32
  }
  func.func @transform_3(%arg0: i32) -> (i32, i32) {
    %c0_i32 = arith.constant 0 : i32
    %c0_i32_0 = arith.constant 0 : i32
    return %arg0, %c0_i32 : i32, i32
  }
}

</mosaic_0001>

<bundles_post_ra>
// kernel: shufflenet_v2_backbone.31
= control target key start
LH: loop header
LB: loop body
LE: loop exit
PB: predicated region body
PF: predicated region fallthrough
CT: control target
= control target key end

     0   :  { %vm355_vm0 = vcmask 1044480   ;;  %vm356_vm1 = vcmask 1045504   ;;  %v874_v2 = vmov 65535   ;;  %vm258_vm2 = vcmask 220160   ;;  %s1357_s1 = inlined_call_operand.vmem [shape: bf16[27,24], index: 1, kind: input, shape index: {}]   ;;  %s1358_s2 = inlined_call_operand.vmem [shape: f32[1,24], index: 2, kind: input, shape index: {}]   ;;  %s1359_s0 = inlined_call_operand.vmem [shape: bf16[512,27], index: 0, kind: input, shape index: {}]   ;;  %s1360_s3 = inlined_call_operand.vmem [shape: f32[512,24], index: 3, kind: output, shape index: {}]  }
   0x1   :  { %v798_v0 = vld [vmem:[%s1357_s1 + $0x8] sm:$0xf]  ;;  %v865_v1 = vld [vmem:[%s1357_s1 + $0x8] sm:$0x30]  ;;  %v357_v3 = vsel %vm355_vm0, 4294967295, %v874_v2  ;;  %v864_v7 = vld [vmem:[%s1357_s1] sm:$0xff] }
   0x2   :  { %v799_v4 = vor.u32 %v865_v1, %v798_v0  ;;  %v358_v5 = vsel %vm356_vm1, %v357_v3, 0  ;;  %v832_v8 = vld [vmem:[%s1359_s0] sm:$0xff]  ;;  %v833_v12 = vld [vmem:[%s1359_s0 + $0x8] sm:$0xff]  ;;  %v834_v16 = vld [vmem:[%s1359_s0 + $0x10] sm:$0xff]  ;;  %vm595_vm3 = vcmask 195584  }
   0x3   :  { %v840_v9 = vld [vmem:[%s1359_s0 + $0x40] sm:$0xff]  ;;  %v841_v13 = vld [vmem:[%s1359_s0 + $0x48] sm:$0xff]  ;;  %v842_v17 = vld [vmem:[%s1359_s0 + $0x50] sm:$0xff] }
   0x4   :  { %v360_v6 = vand.u32 %v799_v4, %v358_v5  ;;  %v848_v10 = vld [vmem:[%s1359_s0 + $0x80] sm:$0xff]  ;;  %v849_v14 = vld [vmem:[%s1359_s0 + $0x88] sm:$0xff]  ;;  %v850_v18 = vld [vmem:[%s1359_s0 + $0x90] sm:$0xff] }
   0x5   :  { %v856_v11 = vld [vmem:[%s1359_s0 + $0xc0] sm:$0xff]  ;;  %v857_v15 = vld [vmem:[%s1359_s0 + $0xc8] sm:$0xff]  ;;  %v858_v19 = vld [vmem:[%s1359_s0 + $0xd0] sm:$0xff] }
   0x6   :  { %368 = vmatpush.bf16.msra.mxu0 %v360_v6  ;;  %866 = vmatpush.bf16.msra.mxu1 %v360_v6  ;;  %v835_v20 = vld [vmem:[%s1359_s0 + $0x18] sm:$0xff]  ;;  %v836_v24 = vld [vmem:[%s1359_s0 + $0x20] sm:$0xff]  ;;  %v837_v28 = vld [vmem:[%s1359_s0 + $0x28] sm:$0xff] }
   0x7   :  { %867 = vmatpush.bf16.msra.mxu2 %v360_v6  ;;  %868 = vmatpush.bf16.msra.mxu3 %v360_v6  ;;  %v843_v21 = vld [vmem:[%s1359_s0 + $0x58] sm:$0xff]  ;;  %v844_v25 = vld [vmem:[%s1359_s0 + $0x60] sm:$0xff]  ;;  %v845_v29 = vld [vmem:[%s1359_s0 + $0x68] sm:$0xff] }
   0x8   :  { %v851_v22 = vld [vmem:[%s1359_s0 + $0x98] sm:$0xff]  ;;  %v852_v26 = vld [vmem:[%s1359_s0 + $0xa0] sm:$0xff]  ;;  %v853_v30 = vld [vmem:[%s1359_s0 + $0xa8] sm:$0xff] }
   0x9   :  { %v859_v23 = vld [vmem:[%s1359_s0 + $0xd8] sm:$0xff]  ;;  %v860_v27 = vld [vmem:[%s1359_s0 + $0xe0] sm:$0xff]  ;;  %v861_v31 = vld [vmem:[%s1359_s0 + $0xe8] sm:$0xff] }
   0xa   :  { %369 = vmatpush.bf16.msra.mxu0 %v864_v7  ;;  %869 = vmatpush.bf16.msra.mxu1 %v864_v7  ;;  %v838_v32 = vld [vmem:[%s1359_s0 + $0x30] sm:$0xff]  ;;  %v839_v36 = vld [vmem:[%s1359_s0 + $0x38] sm:$0xff]  ;;  %v1035_v40 = vld [vmem:[%s1358_s2] ss:$0 sm:$0xff] }
   0xb   :  { %870 = vmatpush.bf16.msra.mxu2 %v864_v7  ;;  %871 = vmatpush.bf16.msra.mxu3 %v864_v7  ;;  %v846_v33 = vld [vmem:[%s1359_s0 + $0x70] sm:$0xff]  ;;  %v847_v37 = vld [vmem:[%s1359_s0 + $0x78] sm:$0xff] }
   0xc   :  { %v854_v34 = vld [vmem:[%s1359_s0 + $0xb0] sm:$0xff]  ;;  %v855_v38 = vld [vmem:[%s1359_s0 + $0xb8] sm:$0xff] }
   0xd   :  { %800 = vmatmul.msk.bf16.vlgmr.msra.gmra.mxu0 %vm258_vm2, %v832_v8  ;;  %808 = vmatmul.msk.bf16.vlgmr.msra.gmra.mxu1 %vm258_vm2, %v840_v9  ;;  %v862_v35 = vld [vmem:[%s1359_s0 + $0xf0] sm:$0xff]  ;;  %v863_v39 = vld [vmem:[%s1359_s0 + $0xf8] sm:$0xff] }
   0xe   :  { %816 = vmatmul.msk.bf16.vlgmr.msra.gmra.mxu2 %vm258_vm2, %v848_v10  ;;  %824 = vmatmul.msk.bf16.vlgmr.msra.gmra.mxu3 %vm258_vm2, %v856_v11 }
  0x1d   :  { %801 = vmatmul.msk.bf16.gmra.mxu0 %vm258_vm2, %v833_v12  ;;  %809 = vmatmul.msk.bf16.gmra.mxu1 %vm258_vm2, %v841_v13 }
  0x1e   :  { %817 = vmatmul.msk.bf16.gmra.mxu2 %vm258_vm2, %v849_v14  ;;  %825 = vmatmul.msk.bf16.gmra.mxu3 %vm258_vm2, %v857_v15 }
  0x2d   :  { %802 = vmatmul.msk.bf16.gmra.mxu0 %vm258_vm2, %v834_v16  ;;  %810 = vmatmul.msk.bf16.gmra.mxu1 %vm258_vm2, %v842_v17 }
  0x2e   :  { %818 = vmatmul.msk.bf16.gmra.mxu2 %vm258_vm2, %v850_v18  ;;  %826 = vmatmul.msk.bf16.gmra.mxu3 %vm258_vm2, %v858_v19 }
  0x3d   :  { %803 = vmatmul.msk.bf16.gmra.mxu0 %vm258_vm2, %v835_v20  ;;  %811 = vmatmul.msk.bf16.gmra.mxu1 %vm258_vm2, %v843_v21 }
  0x3e   :  { %819 = vmatmul.msk.bf16.gmra.mxu2 %vm258_vm2, %v851_v22  ;;  %827 = vmatmul.msk.bf16.gmra.mxu3 %vm258_vm2, %v859_v23 }
  0x4d   :  { %804 = vmatmul.msk.bf16.gmra.mxu0 %vm258_vm2, %v836_v24  ;;  %812 = vmatmul.msk.bf16.gmra.mxu1 %vm258_vm2, %v844_v25 }
  0x4e   :  { %820 = vmatmul.msk.bf16.gmra.mxu2 %vm258_vm2, %v852_v26  ;;  %828 = vmatmul.msk.bf16.gmra.mxu3 %vm258_vm2, %v860_v27 }
  0x5d   :  { %805 = vmatmul.msk.bf16.gmra.mxu0 %vm258_vm2, %v837_v28  ;;  %813 = vmatmul.msk.bf16.gmra.mxu1 %vm258_vm2, %v845_v29 }
  0x5e   :  { %821 = vmatmul.msk.bf16.gmra.mxu2 %vm258_vm2, %v853_v30  ;;  %829 = vmatmul.msk.bf16.gmra.mxu3 %vm258_vm2, %v861_v31 }
  0x6d   :  { %806 = vmatmul.msk.bf16.gmra.mxu0 %vm258_vm2, %v838_v32  ;;  %814 = vmatmul.msk.bf16.gmra.mxu1 %vm258_vm2, %v846_v33 }
  0x6e   :  { %822 = vmatmul.msk.bf16.gmra.mxu2 %vm258_vm2, %v854_v34  ;;  %830 = vmatmul.msk.bf16.gmra.mxu3 %vm258_vm2, %v862_v35 }
  0x7d   :  { %807 = vmatmul.msk.bf16.gmra.mxu0 %vm258_vm2, %v839_v36  ;;  %815 = vmatmul.msk.bf16.gmra.mxu1 %vm258_vm2, %v847_v37 }
  0x7e   :  { %823 = vmatmul.msk.bf16.gmra.mxu2 %vm258_vm2, %v855_v38  ;;  %831 = vmatmul.msk.bf16.gmra.mxu3 %vm258_vm2, %v863_v39 }
  0x8a   :  { %v371_v41 = vpop.f32.mrf.mxu0  ;;  %v411_v42 = vpop.f32.mrf.mxu1 }
  0x8b   :  { %v372_v43 = vadd.f32 %v1035_v40, %v371_v41  ;;  %v412_v44 = vadd.f32 %v1035_v40, %v411_v42 }
  0x8d   :  { %v531_v45 = vmax.f32 %v372_v43, 0.0  ;;  %v547_v46 = vmax.f32 %v412_v44, 0.0 }
  0x8f   :  { %596 = vst.msk [vmem:[%s1360_s3] sm:$0xff] %vm595_vm3, %v531_v45 }
  0x90   :  { %612 = vst.msk [vmem:[%s1360_s3 + $0x80] sm:$0xff] %vm595_vm3, %v547_v46 }
  0x91   :  { %v451_v47 = vpop.f32.mrf.mxu2  ;;  %v491_v48 = vpop.f32.mrf.mxu3 }
  0x92   :  { %v452_v49 = vadd.f32 %v1035_v40, %v451_v47  ;;  %v492_v50 = vadd.f32 %v1035_v40, %v491_v48  ;;  %v373_v51 = vpop.f32.mrf.mxu0  ;;  %v413_v52 = vpop.f32.mrf.mxu1 }
  0x93   :  { %v374_v53 = vadd.f32 %v1035_v40, %v373_v51  ;;  %v414_v54 = vadd.f32 %v1035_v40, %v413_v52 }
  0x94   :  { %v563_v55 = vmax.f32 %v452_v49, 0.0  ;;  %v579_v56 = vmax.f32 %v492_v50, 0.0 }
  0x95   :  { %v532_v57 = vmax.f32 %v374_v53, 0.0  ;;  %v548_v58 = vmax.f32 %v414_v54, 0.0 }
  0x96   :  { %628 = vst.msk [vmem:[%s1360_s3 + $0x100] sm:$0xff] %vm595_vm3, %v563_v55 }
  0x97   :  { %644 = vst.msk [vmem:[%s1360_s3 + $0x180] sm:$0xff] %vm595_vm3, %v579_v56 }
  0x98   :  { %597 = vst.msk [vmem:[%s1360_s3 + $0x8] sm:$0xff] %vm595_vm3, %v532_v57 }
  0x99   :  { %613 = vst.msk [vmem:[%s1360_s3 + $0x88] sm:$0xff] %vm595_vm3, %v548_v58  ;;  %v453_v59 = vpop.f32.mrf.mxu2  ;;  %v493_v60 = vpop.f32.mrf.mxu3 }
  0x9a   :  { %v454_v61 = vadd.f32 %v1035_v40, %v453_v59  ;;  %v494_v62 = vadd.f32 %v1035_v40, %v493_v60  ;;  %v376_v63 = vpop.f32.mrf.mxu0  ;;  %v416_v0 = vpop.f32.mrf.mxu1 }
  0x9b   :  { %v377_v1 = vadd.f32 %v1035_v40, %v376_v63  ;;  %v417_v2 = vadd.f32 %v1035_v40, %v416_v0 }
  0x9c   :  { %v564_v3 = vmax.f32 %v454_v61, 0.0  ;;  %v580_v4 = vmax.f32 %v494_v62, 0.0 }
  0x9d   :  { %v533_v5 = vmax.f32 %v377_v1, 0.0  ;;  %v549_v6 = vmax.f32 %v417_v2, 0.0 }
  0x9e   :  { %629 = vst.msk [vmem:[%s1360_s3 + $0x108] sm:$0xff] %vm595_vm3, %v564_v3 }
  0x9f   :  { %645 = vst.msk [vmem:[%s1360_s3 + $0x188] sm:$0xff] %vm595_vm3, %v580_v4 }
  0xa0   :  { %598 = vst.msk [vmem:[%s1360_s3 + $0x10] sm:$0xff] %vm595_vm3, %v533_v5 }
  0xa1   :  { %614 = vst.msk [vmem:[%s1360_s3 + $0x90] sm:$0xff] %vm595_vm3, %v549_v6  ;;  %v456_v7 = vpop.f32.mrf.mxu2  ;;  %v496_v8 = vpop.f32.mrf.mxu3 }
  0xa2   :  { %v457_v9 = vadd.f32 %v1035_v40, %v456_v7  ;;  %v497_v10 = vadd.f32 %v1035_v40, %v496_v8  ;;  %v378_v11 = vpop.f32.mrf.mxu0  ;;  %v418_v12 = vpop.f32.mrf.mxu1 }
  0xa3   :  { %v379_v13 = vadd.f32 %v1035_v40, %v378_v11  ;;  %v419_v14 = vadd.f32 %v1035_v40, %v418_v12 }
  0xa4   :  { %v565_v15 = vmax.f32 %v457_v9, 0.0  ;;  %v581_v16 = vmax.f32 %v497_v10, 0.0 }
  0xa5   :  { %v534_v17 = vmax.f32 %v379_v13, 0.0  ;;  %v550_v18 = vmax.f32 %v419_v14, 0.0 }
  0xa6   :  { %630 = vst.msk [vmem:[%s1360_s3 + $0x110] sm:$0xff] %vm595_vm3, %v565_v15 }
  0xa7   :  { %646 = vst.msk [vmem:[%s1360_s3 + $0x190] sm:$0xff] %vm595_vm3, %v581_v16 }
  0xa8   :  { %599 = vst.msk [vmem:[%s1360_s3 + $0x18] sm:$0xff] %vm595_vm3, %v534_v17 }
  0xa9   :  { %615 = vst.msk [vmem:[%s1360_s3 + $0x98] sm:$0xff] %vm595_vm3, %v550_v18  ;;  %v458_v19 = vpop.f32.mrf.mxu2  ;;  %v498_v20 = vpop.f32.mrf.mxu3 }
  0xaa   :  { %v459_v21 = vadd.f32 %v1035_v40, %v458_v19  ;;  %v499_v22 = vadd.f32 %v1035_v40, %v498_v20  ;;  %v381_v23 = vpop.f32.mrf.mxu0  ;;  %v421_v24 = vpop.f32.mrf.mxu1 }
  0xab   :  { %v382_v25 = vadd.f32 %v1035_v40, %v381_v23  ;;  %v422_v26 = vadd.f32 %v1035_v40, %v421_v24 }
  0xac   :  { %v566_v27 = vmax.f32 %v459_v21, 0.0  ;;  %v582_v28 = vmax.f32 %v499_v22, 0.0 }
  0xad   :  { %v535_v29 = vmax.f32 %v382_v25, 0.0  ;;  %v551_v30 = vmax.f32 %v422_v26, 0.0 }
  0xae   :  { %631 = vst.msk [vmem:[%s1360_s3 + $0x118] sm:$0xff] %vm595_vm3, %v566_v27 }
  0xaf   :  { %647 = vst.msk [vmem:[%s1360_s3 + $0x198] sm:$0xff] %vm595_vm3, %v582_v28 }
  0xb0   :  { %600 = vst.msk [vmem:[%s1360_s3 + $0x20] sm:$0xff] %vm595_vm3, %v535_v29 }
  0xb1   :  { %616 = vst.msk [vmem:[%s1360_s3 + $0xa0] sm:$0xff] %vm595_vm3, %v551_v30  ;;  %v461_v31 = vpop.f32.mrf.mxu2  ;;  %v501_v32 = vpop.f32.mrf.mxu3 }
  0xb2   :  { %v462_v33 = vadd.f32 %v1035_v40, %v461_v31  ;;  %v502_v34 = vadd.f32 %v1035_v40, %v501_v32  ;;  %v383_v35 = vpop.f32.mrf.mxu0  ;;  %v423_v36 = vpop.f32.mrf.mxu1 }
  0xb3   :  { %v384_v37 = vadd.f32 %v1035_v40, %v383_v35  ;;  %v424_v38 = vadd.f32 %v1035_v40, %v423_v36 }
  0xb4   :  { %v567_v39 = vmax.f32 %v462_v33, 0.0  ;;  %v583_v41 = vmax.f32 %v502_v34, 0.0 }
  0xb5   :  { %v536_v42 = vmax.f32 %v384_v37, 0.0  ;;  %v552_v43 = vmax.f32 %v424_v38, 0.0 }
  0xb6   :  { %632 = vst.msk [vmem:[%s1360_s3 + $0x120] sm:$0xff] %vm595_vm3, %v567_v39 }
  0xb7   :  { %648 = vst.msk [vmem:[%s1360_s3 + $0x1a0] sm:$0xff] %vm595_vm3, %v583_v41 }
  0xb8   :  { %601 = vst.msk [vmem:[%s1360_s3 + $0x28] sm:$0xff] %vm595_vm3, %v536_v42 }
  0xb9   :  { %617 = vst.msk [vmem:[%s1360_s3 + $0xa8] sm:$0xff] %vm595_vm3, %v552_v43  ;;  %v463_v44 = vpop.f32.mrf.mxu2  ;;  %v503_v45 = vpop.f32.mrf.mxu3 }
  0xba   :  { %v464_v46 = vadd.f32 %v1035_v40, %v463_v44  ;;  %v504_v47 = vadd.f32 %v1035_v40, %v503_v45  ;;  %v386_v48 = vpop.f32.mrf.mxu0  ;;  %v426_v49 = vpop.f32.mrf.mxu1 }
  0xbb   :  { %v387_v50 = vadd.f32 %v1035_v40, %v386_v48  ;;  %v427_v51 = vadd.f32 %v1035_v40, %v426_v49 }
  0xbc   :  { %v568_v52 = vmax.f32 %v464_v46, 0.0  ;;  %v584_v53 = vmax.f32 %v504_v47, 0.0 }
  0xbd   :  { %v537_v54 = vmax.f32 %v387_v50, 0.0  ;;  %v553_v55 = vmax.f32 %v427_v51, 0.0 }
  0xbe   :  { %633 = vst.msk [vmem:[%s1360_s3 + $0x128] sm:$0xff] %vm595_vm3, %v568_v52 }
  0xbf   :  { %649 = vst.msk [vmem:[%s1360_s3 + $0x1a8] sm:$0xff] %vm595_vm3, %v584_v53 }
  0xc0   :  { %602 = vst.msk [vmem:[%s1360_s3 + $0x30] sm:$0xff] %vm595_vm3, %v537_v54 }
  0xc1   :  { %618 = vst.msk [vmem:[%s1360_s3 + $0xb0] sm:$0xff] %vm595_vm3, %v553_v55  ;;  %v466_v56 = vpop.f32.mrf.mxu2  ;;  %v506_v57 = vpop.f32.mrf.mxu3 }
  0xc2   :  { %v467_v58 = vadd.f32 %v1035_v40, %v466_v56  ;;  %v507_v59 = vadd.f32 %v1035_v40, %v506_v57  ;;  %v388_v60 = vpop.f32.mrf.mxu0  ;;  %v428_v61 = vpop.f32.mrf.mxu1 }
  0xc3   :  { %v389_v62 = vadd.f32 %v1035_v40, %v388_v60  ;;  %v429_v63 = vadd.f32 %v1035_v40, %v428_v61 }
  0xc4   :  { %v569_v0 = vmax.f32 %v467_v58, 0.0  ;;  %v585_v1 = vmax.f32 %v507_v59, 0.0 }
  0xc5   :  { %v538_v2 = vmax.f32 %v389_v62, 0.0  ;;  %v554_v3 = vmax.f32 %v429_v63, 0.0 }
  0xc6   :  { %634 = vst.msk [vmem:[%s1360_s3 + $0x130] sm:$0xff] %vm595_vm3, %v569_v0 }
  0xc7   :  { %650 = vst.msk [vmem:[%s1360_s3 + $0x1b0] sm:$0xff] %vm595_vm3, %v585_v1 }
  0xc8   :  { %603 = vst.msk [vmem:[%s1360_s3 + $0x38] sm:$0xff] %vm595_vm3, %v538_v2 }
  0xc9   :  { %619 = vst.msk [vmem:[%s1360_s3 + $0xb8] sm:$0xff] %vm595_vm3, %v554_v3  ;;  %v468_v4 = vpop.f32.mrf.mxu2  ;;  %v508_v5 = vpop.f32.mrf.mxu3 }
  0xca   :  { %v469_v6 = vadd.f32 %v1035_v40, %v468_v4  ;;  %v509_v7 = vadd.f32 %v1035_v40, %v508_v5  ;;  %v391_v8 = vpop.f32.mrf.mxu0  ;;  %v431_v9 = vpop.f32.mrf.mxu1 }
  0xcb   :  { %v392_v10 = vadd.f32 %v1035_v40, %v391_v8  ;;  %v432_v11 = vadd.f32 %v1035_v40, %v431_v9 }
  0xcc   :  { %v570_v12 = vmax.f32 %v469_v6, 0.0  ;;  %v586_v13 = vmax.f32 %v509_v7, 0.0 }
  0xcd   :  { %v539_v14 = vmax.f32 %v392_v10, 0.0  ;;  %v555_v15 = vmax.f32 %v432_v11, 0.0 }
  0xce   :  { %635 = vst.msk [vmem:[%s1360_s3 + $0x138] sm:$0xff] %vm595_vm3, %v570_v12 }
  0xcf   :  { %651 = vst.msk [vmem:[%s1360_s3 + $0x1b8] sm:$0xff] %vm595_vm3, %v586_v13 }
  0xd0   :  { %604 = vst.msk [vmem:[%s1360_s3 + $0x40] sm:$0xff] %vm595_vm3, %v539_v14 }
  0xd1   :  { %620 = vst.msk [vmem:[%s1360_s3 + $0xc0] sm:$0xff] %vm595_vm3, %v555_v15  ;;  %v471_v16 = vpop.f32.mrf.mxu2  ;;  %v511_v17 = vpop.f32.mrf.mxu3 }
  0xd2   :  { %v472_v18 = vadd.f32 %v1035_v40, %v471_v16  ;;  %v512_v19 = vadd.f32 %v1035_v40, %v511_v17  ;;  %v393_v20 = vpop.f32.mrf.mxu0  ;;  %v433_v21 = vpop.f32.mrf.mxu1 }
  0xd3   :  { %v394_v22 = vadd.f32 %v1035_v40, %v393_v20  ;;  %v434_v23 = vadd.f32 %v1035_v40, %v433_v21 }
  0xd4   :  { %v571_v24 = vmax.f32 %v472_v18, 0.0  ;;  %v587_v25 = vmax.f32 %v512_v19, 0.0 }
  0xd5   :  { %v540_v26 = vmax.f32 %v394_v22, 0.0  ;;  %v556_v27 = vmax.f32 %v434_v23, 0.0 }
  0xd6   :  { %636 = vst.msk [vmem:[%s1360_s3 + $0x140] sm:$0xff] %vm595_vm3, %v571_v24 }
  0xd7   :  { %652 = vst.msk [vmem:[%s1360_s3 + $0x1c0] sm:$0xff] %vm595_vm3, %v587_v25 }
  0xd8   :  { %605 = vst.msk [vmem:[%s1360_s3 + $0x48] sm:$0xff] %vm595_vm3, %v540_v26 }
  0xd9   :  { %621 = vst.msk [vmem:[%s1360_s3 + $0xc8] sm:$0xff] %vm595_vm3, %v556_v27  ;;  %v473_v28 = vpop.f32.mrf.mxu2  ;;  %v513_v29 = vpop.f32.mrf.mxu3 }
  0xda   :  { %v474_v30 = vadd.f32 %v1035_v40, %v473_v28  ;;  %v514_v31 = vadd.f32 %v1035_v40, %v513_v29  ;;  %v396_v32 = vpop.f32.mrf.mxu0  ;;  %v436_v33 = vpop.f32.mrf.mxu1 }
  0xdb   :  { %v397_v34 = vadd.f32 %v1035_v40, %v396_v32  ;;  %v437_v35 = vadd.f32 %v1035_v40, %v436_v33 }
  0xdc   :  { %v572_v36 = vmax.f32 %v474_v30, 0.0  ;;  %v588_v37 = vmax.f32 %v514_v31, 0.0 }
  0xdd   :  { %v541_v38 = vmax.f32 %v397_v34, 0.0  ;;  %v557_v39 = vmax.f32 %v437_v35, 0.0 }
  0xde   :  { %637 = vst.msk [vmem:[%s1360_s3 + $0x148] sm:$0xff] %vm595_vm3, %v572_v36 }
  0xdf   :  { %653 = vst.msk [vmem:[%s1360_s3 + $0x1c8] sm:$0xff] %vm595_vm3, %v588_v37 }
  0xe0   :  { %606 = vst.msk [vmem:[%s1360_s3 + $0x50] sm:$0xff] %vm595_vm3, %v541_v38 }
  0xe1   :  { %622 = vst.msk [vmem:[%s1360_s3 + $0xd0] sm:$0xff] %vm595_vm3, %v557_v39  ;;  %v476_v41 = vpop.f32.mrf.mxu2  ;;  %v516_v42 = vpop.f32.mrf.mxu3 }
  0xe2   :  { %v477_v43 = vadd.f32 %v1035_v40, %v476_v41  ;;  %v517_v44 = vadd.f32 %v1035_v40, %v516_v42  ;;  %v398_v45 = vpop.f32.mrf.mxu0  ;;  %v438_v46 = vpop.f32.mrf.mxu1 }
  0xe3   :  { %v399_v47 = vadd.f32 %v1035_v40, %v398_v45  ;;  %v439_v48 = vadd.f32 %v1035_v40, %v438_v46 }
  0xe4   :  { %v573_v49 = vmax.f32 %v477_v43, 0.0  ;;  %v589_v50 = vmax.f32 %v517_v44, 0.0 }
  0xe5   :  { %v542_v51 = vmax.f32 %v399_v47, 0.0  ;;  %v558_v52 = vmax.f32 %v439_v48, 0.0 }
  0xe6   :  { %638 = vst.msk [vmem:[%s1360_s3 + $0x150] sm:$0xff] %vm595_vm3, %v573_v49 }
  0xe7   :  { %654 = vst.msk [vmem:[%s1360_s3 + $0x1d0] sm:$0xff] %vm595_vm3, %v589_v50 }
  0xe8   :  { %607 = vst.msk [vmem:[%s1360_s3 + $0x58] sm:$0xff] %vm595_vm3, %v542_v51 }
  0xe9   :  { %623 = vst.msk [vmem:[%s1360_s3 + $0xd8] sm:$0xff] %vm595_vm3, %v558_v52  ;;  %v478_v53 = vpop.f32.mrf.mxu2  ;;  %v518_v54 = vpop.f32.mrf.mxu3 }
  0xea   :  { %v479_v55 = vadd.f32 %v1035_v40, %v478_v53  ;;  %v519_v56 = vadd.f32 %v1035_v40, %v518_v54  ;;  %v401_v57 = vpop.f32.mrf.mxu0  ;;  %v441_v58 = vpop.f32.mrf.mxu1 }
  0xeb   :  { %v402_v59 = vadd.f32 %v1035_v40, %v401_v57  ;;  %v442_v60 = vadd.f32 %v1035_v40, %v441_v58 }
  0xec   :  { %v574_v61 = vmax.f32 %v479_v55, 0.0  ;;  %v590_v62 = vmax.f32 %v519_v56, 0.0 }
  0xed   :  { %v543_v63 = vmax.f32 %v402_v59, 0.0  ;;  %v559_v0 = vmax.f32 %v442_v60, 0.0 }
  0xee   :  { %639 = vst.msk [vmem:[%s1360_s3 + $0x158] sm:$0xff] %vm595_vm3, %v574_v61 }
  0xef   :  { %655 = vst.msk [vmem:[%s1360_s3 + $0x1d8] sm:$0xff] %vm595_vm3, %v590_v62 }
  0xf0   :  { %608 = vst.msk [vmem:[%s1360_s3 + $0x60] sm:$0xff] %vm595_vm3, %v543_v63 }
  0xf1   :  { %624 = vst.msk [vmem:[%s1360_s3 + $0xe0] sm:$0xff] %vm595_vm3, %v559_v0  ;;  %v481_v1 = vpop.f32.mrf.mxu2  ;;  %v521_v2 = vpop.f32.mrf.mxu3 }
  0xf2   :  { %v482_v3 = vadd.f32 %v1035_v40, %v481_v1  ;;  %v522_v4 = vadd.f32 %v1035_v40, %v521_v2  ;;  %v403_v5 = vpop.f32.mrf.mxu0  ;;  %v443_v6 = vpop.f32.mrf.mxu1 }
  0xf3   :  { %v404_v7 = vadd.f32 %v1035_v40, %v403_v5  ;;  %v444_v8 = vadd.f32 %v1035_v40, %v443_v6 }
  0xf4   :  { %v575_v9 = vmax.f32 %v482_v3, 0.0  ;;  %v591_v10 = vmax.f32 %v522_v4, 0.0 }
  0xf5   :  { %v544_v11 = vmax.f32 %v404_v7, 0.0  ;;  %v560_v12 = vmax.f32 %v444_v8, 0.0 }
  0xf6   :  { %640 = vst.msk [vmem:[%s1360_s3 + $0x160] sm:$0xff] %vm595_vm3, %v575_v9 }
  0xf7   :  { %656 = vst.msk [vmem:[%s1360_s3 + $0x1e0] sm:$0xff] %vm595_vm3, %v591_v10 }
  0xf8   :  { %609 = vst.msk [vmem:[%s1360_s3 + $0x68] sm:$0xff] %vm595_vm3, %v544_v11 }
  0xf9   :  { %625 = vst.msk [vmem:[%s1360_s3 + $0xe8] sm:$0xff] %vm595_vm3, %v560_v12  ;;  %v483_v13 = vpop.f32.mrf.mxu2  ;;  %v523_v14 = vpop.f32.mrf.mxu3 }
  0xfa   :  { %v484_v15 = vadd.f32 %v1035_v40, %v483_v13  ;;  %v524_v16 = vadd.f32 %v1035_v40, %v523_v14  ;;  %v406_v17 = vpop.f32.mrf.mxu0  ;;  %v446_v18 = vpop.f32.mrf.mxu1 }
  0xfb   :  { %v407_v19 = vadd.f32 %v1035_v40, %v406_v17  ;;  %v447_v20 = vadd.f32 %v1035_v40, %v446_v18 }
  0xfc   :  { %v576_v21 = vmax.f32 %v484_v15, 0.0  ;;  %v592_v22 = vmax.f32 %v524_v16, 0.0 }
  0xfd   :  { %v545_v23 = vmax.f32 %v407_v19, 0.0  ;;  %v561_v24 = vmax.f32 %v447_v20, 0.0 }
  0xfe   :  { %641 = vst.msk [vmem:[%s1360_s3 + $0x168] sm:$0xff] %vm595_vm3, %v576_v21 }
  0xff   :  { %657 = vst.msk [vmem:[%s1360_s3 + $0x1e8] sm:$0xff] %vm595_vm3, %v592_v22 }
 0x100   :  { %610 = vst.msk [vmem:[%s1360_s3 + $0x70] sm:$0xff] %vm595_vm3, %v545_v23 }
 0x101   :  { %626 = vst.msk [vmem:[%s1360_s3 + $0xf0] sm:$0xff] %vm595_vm3, %v561_v24  ;;  %v486_v25 = vpop.f32.mrf.mxu2  ;;  %v526_v26 = vpop.f32.mrf.mxu3 }
 0x102   :  { %v487_v27 = vadd.f32 %v1035_v40, %v486_v25  ;;  %v527_v28 = vadd.f32 %v1035_v40, %v526_v26  ;;  %v408_v29 = vpop.f32.mrf.mxu0  ;;  %v448_v30 = vpop.f32.mrf.mxu1 }
 0x103   :  { %v409_v31 = vadd.f32 %v1035_v40, %v408_v29  ;;  %v449_v32 = vadd.f32 %v1035_v40, %v448_v30 }
 0x104   :  { %v577_v33 = vmax.f32 %v487_v27, 0.0  ;;  %v593_v34 = vmax.f32 %v527_v28, 0.0 }
 0x105   :  { %v546_v35 = vmax.f32 %v409_v31, 0.0  ;;  %v562_v36 = vmax.f32 %v449_v32, 0.0 }
 0x106   :  { %642 = vst.msk [vmem:[%s1360_s3 + $0x170] sm:$0xff] %vm595_vm3, %v577_v33 }
 0x107   :  { %658 = vst.msk [vmem:[%s1360_s3 + $0x1f0] sm:$0xff] %vm595_vm3, %v593_v34 }
 0x108   :  { %611 = vst.msk [vmem:[%s1360_s3 + $0x78] sm:$0xff] %vm595_vm3, %v546_v35 }
 0x109   :  { %627 = vst.msk [vmem:[%s1360_s3 + $0xf8] sm:$0xff] %vm595_vm3, %v562_v36  ;;  %v488_v37 = vpop.f32.mrf.mxu2  ;;  %v528_v38 = vpop.f32.mrf.mxu3 }
 0x10a   :  { %v489_v39 = vadd.f32 %v1035_v40, %v488_v37  ;;  %v529_v41 = vadd.f32 %v1035_v40, %v528_v38 }
 0x10c   :  { %v578_v42 = vmax.f32 %v489_v39, 0.0  ;;  %v594_v43 = vmax.f32 %v529_v41, 0.0 }
 0x10e   :  { %643 = vst.msk [vmem:[%s1360_s3 + $0x178] sm:$0xff] %vm595_vm3, %v578_v42 }
 0x10f   :  { %659 = vst.msk [vmem:[%s1360_s3 + $0x1f8] sm:$0xff] %vm595_vm3, %v594_v43 }

// kernel: shufflenet_v2_backbone.32
= control target key start
LH: loop header
LB: loop body
LE: loop exit
PB: predicated region body
PF: predicated region fallthrough
CT: control target
= control target key end

     0   :  { %vm85_vm0 = vcmask 523264   ;;  %s255_s0 = inlined_call_operand.vmem [shape: f32[9,16,192], index: 0, kind: input, shape index: {}]   ;;  %s256_s1 = inlined_call_operand.vmem [shape: f32[16,192], index: 1, kind: output, shape index: {}]  }
   0x1   :  { %v8_v0 = vld [vmem:[%s255_s0] sm:$0xff]  ;;  %v9_v6 = vld [vmem:[%s255_s0 + $0x8] sm:$0xff]  ;;  %v10_v15 = vld [vmem:[%s255_s0 + $0x10] sm:$0xff] }
   0x2   :  { %v93_v1 = vld [vmem:[%s255_s0 + $0x20] sm:$0xff]  ;;  %v94_v7 = vld [vmem:[%s255_s0 + $0x28] sm:$0xff]  ;;  %v95_v16 = vld [vmem:[%s255_s0 + $0x30] sm:$0xff] }
   0x3   :  { %v97_v2 = vld [vmem:[%s255_s0 + $0x40] sm:$0xff]  ;;  %v17_v3 = vmax.f32 %v8_v0, %v93_v1  ;;  %v98_v8 = vld [vmem:[%s255_s0 + $0x48] sm:$0xff]  ;;  %v18_v10 = vmax.f32 %v9_v6, %v94_v7  ;;  %v99_v17 = vld [vmem:[%s255_s0 + $0x50] sm:$0xff]  ;;  %v19_v20 = vmax.f32 %v10_v15, %v95_v16 }
   0x4   :  { %v101_v4 = vld [vmem:[%s255_s0 + $0x60] sm:$0xff]  ;;  %v102_v13 = vld [vmem:[%s255_s0 + $0x68] sm:$0xff]  ;;  %v103_v24 = vld [vmem:[%s255_s0 + $0x70] sm:$0xff] }
   0x5   :  { %v26_v5 = vmax.f32 %v17_v3, %v97_v2  ;;  %v105_v9 = vld [vmem:[%s255_s0 + $0x80] sm:$0xff]  ;;  %v27_v14 = vmax.f32 %v18_v10, %v98_v8  ;;  %v106_v19 = vld [vmem:[%s255_s0 + $0x88] sm:$0xff]  ;;  %v28_v26 = vmax.f32 %v19_v20, %v99_v17  ;;  %v11_v27 = vld [vmem:[%s255_s0 + $0x18] sm:$0xff] }
   0x6   :  { %v109_v12 = vld [vmem:[%s255_s0 + $0xa0] sm:$0xff]  ;;  %v110_v23 = vld [vmem:[%s255_s0 + $0xa8] sm:$0xff]  ;;  %v96_v28 = vld [vmem:[%s255_s0 + $0x38] sm:$0xff] }
   0x7   :  { %v35_v11 = vmax.f32 %v26_v5, %v101_v4  ;;  %v113_v21 = vld [vmem:[%s255_s0 + $0xc0] sm:$0xff]  ;;  %v36_v22 = vmax.f32 %v27_v14, %v102_v13  ;;  %v100_v29 = vld [vmem:[%s255_s0 + $0x58] sm:$0xff]  ;;  %v107_v32 = vld [vmem:[%s255_s0 + $0x90] sm:$0xff]  ;;  %v20_v33 = vmax.f32 %v11_v27, %v96_v28  ;;  %v37_v36 = vmax.f32 %v28_v26, %v103_v24 }
   0x8   :  { %v117_v30 = vld [vmem:[%s255_s0 + $0xe0] sm:$0xff]  ;;  %v114_v35 = vld [vmem:[%s255_s0 + $0xc8] sm:$0xff]  ;;  %v104_v37 = vld [vmem:[%s255_s0 + $0x78] sm:$0xff] }
   0x9   :  { %v44_v18 = vmax.f32 %v35_v11, %v105_v9  ;;  %v45_v31 = vmax.f32 %v36_v22, %v106_v19  ;;  %v121_v38 = vld [vmem:[%s255_s0 + $0x100] sm:$0xff]  ;;  %v111_v40 = vld [vmem:[%s255_s0 + $0xb0] sm:$0xff]  ;;  %v29_v41 = vmax.f32 %v20_v33, %v100_v29  ;;  %v118_v43 = vld [vmem:[%s255_s0 + $0xe8] sm:$0xff]  ;;  %v46_v44 = vmax.f32 %v37_v36, %v107_v32 }
   0xa   :  { %v108_v45 = vld [vmem:[%s255_s0 + $0x98] sm:$0xff]  ;;  %v115_v47 = vld [vmem:[%s255_s0 + $0xd0] sm:$0xff]  ;;  %v122_v50 = vld [vmem:[%s255_s0 + $0x108] sm:$0xff] }
   0xb   :  { %v53_v25 = vmax.f32 %v44_v18, %v109_v12  ;;  %v54_v39 = vmax.f32 %v45_v31, %v110_v23  ;;  %v38_v48 = vmax.f32 %v29_v41, %v104_v37  ;;  %v55_v51 = vmax.f32 %v46_v44, %v111_v40  ;;  %v112_v52 = vld [vmem:[%s255_s0 + $0xb8] sm:$0xff]  ;;  %v119_v54 = vld [vmem:[%s255_s0 + $0xf0] sm:$0xff] }
   0xc   :  { %v116_v57 = vld [vmem:[%s255_s0 + $0xd8] sm:$0xff]  ;;  %v123_v59 = vld [vmem:[%s255_s0 + $0x110] sm:$0xff] }
   0xd   :  { %v62_v34 = vmax.f32 %v53_v25, %v113_v21  ;;  %v63_v46 = vmax.f32 %v54_v39, %v114_v35  ;;  %v47_v55 = vmax.f32 %v38_v48, %v108_v45  ;;  %v64_v56 = vmax.f32 %v55_v51, %v115_v47  ;;  %v120_v62 = vld [vmem:[%s255_s0 + $0xf8] sm:$0xff] }
   0xe   :  { %v124_v1 = vld [vmem:[%s255_s0 + $0x118] sm:$0xff] }
   0xf   :  { %v71_v42 = vmax.f32 %v62_v34, %v117_v30  ;;  %v72_v53 = vmax.f32 %v63_v46, %v118_v43  ;;  %v56_v60 = vmax.f32 %v47_v55, %v112_v52  ;;  %v73_v61 = vmax.f32 %v64_v56, %v119_v54 }
  0x11   :  { %v80_v49 = vmax.f32 %v71_v42, %v121_v38  ;;  %v81_v58 = vmax.f32 %v72_v53, %v122_v50  ;;  %v65_v63 = vmax.f32 %v56_v60, %v116_v57  ;;  %v82_v0 = vmax.f32 %v73_v61, %v123_v59 }
  0x13   :  { %84 = vst [vmem:[%s256_s1] sm:$0xff] %v80_v49  ;;  %v74_v2 = vmax.f32 %v65_v63, %v120_v62 }
  0x14   :  { %86 = vst.msk [vmem:[%s256_s1 + $0x8] sm:$0xff] %vm85_vm0, %v81_v58 }
  0x15   :  { %87 = vst [vmem:[%s256_s1 + $0x10] sm:$0xff] %v82_v0  ;;  %v83_v3 = vmax.f32 %v74_v2, %v124_v1 }
  0x17   :  { %88 = vst.msk [vmem:[%s256_s1 + $0x18] sm:$0xff] %vm85_vm0, %v83_v3 }

// kernel: tile.35
= control target key start
LH: loop header
LB: loop body
LE: loop exit
PB: predicated region body
PF: predicated region fallthrough
CT: control target
= control target key end

     0   :  { %vm40_vm0 = vcmask 1047556   ;;  %s116_s24 = smov 48   ;;  %s117_s25 = smov 24   ;;  %vm42_vm1 = vcmask 195584   ;;  %vm57_vm2 = vcmask 785984   ;;  %vm74_vm3 = vcmask 589184   ;;  %s183_s0 = inlined_call_operand.vmem [shape: f32[9,4,1,1,24], index: 0, kind: input, shape index: {}]   ;;  %s184_s1 = inlined_call_operand.vmem [shape: f32[9,96], index: 1, kind: output, shape index: {}]  }
   0x1   :  { %v101_v0 = vld [vmem:[%s183_s0 + $0x1c] sm:$0xf]  ;;  %v102_v1 = vld [vmem:[%s183_s0 + $0x18] sm:$0xf]  ;;  %v103_v2 = vld [vmem:[%s183_s0 + $0x14] sm:$0xf] }
   0x2   :  { %11 = vst [vmem:[#allocation0 + $0x38] sm:$0xf] %v101_v0  ;;  %v104_v3 = vld [vmem:[%s183_s0 + $0x10] sm:$0xf]  ;;  %v105_v4 = vld [vmem:[%s183_s0 + $0xc] sm:$0xf] }
   0x3   :  { %15 = vst [vmem:[#allocation0 + $0x30] sm:$0xf] %v102_v1  ;;  %v106_v5 = vld [vmem:[%s183_s0 + $0x8] sm:$0xf]  ;;  %v107_v6 = vld [vmem:[%s183_s0 + $0x4] sm:$0xf] }
   0x4   :  { %19 = vst [vmem:[#allocation0 + $0x28] sm:$0xf] %v103_v2  ;;  %v36_v7 = vld [vmem:[%s183_s0] sm:$0xf]  ;;  %vm91_vm4 = vcmask 392384  }
   0x5   :  { %23 = vst [vmem:[#allocation0 + $0x20] sm:$0xf] %v104_v3  ;;  %v100_v8 = vld [vmem:[%s183_s0 + $0x20] sm:$0xf]  ;;  %s115_s0 = smov 72  }
   0x6   :  { %27 = vst [vmem:[#allocation0 + $0x18] sm:$0xf] %v105_v4 }
   0x7   :  { %31 = vst [vmem:[#allocation0 + $0x10] sm:$0xf] %v106_v5 }
   0x8   :  { %35 = vst [vmem:[#allocation0 + $0x8] sm:$0xf] %v107_v6 }
   0x9   :  { %37 = vst [vmem:[#allocation0] sm:$0xf] %v36_v7 }
   0xa   :  { %7 = vst [vmem:[#allocation0 + $0x40] sm:$0xf] %v100_v8 }
   0xc   :  { %v52_v9 = vld [vmem:[#allocation0 + $0x3] ss:$8 sm:$0xf0]   ;;  %v69_v10 = vld [vmem:[#allocation0 + $0x2] ss:$8 sm:$0xf0]  }
   0xd   :  { %v86_v11 = vld [vmem:[#allocation0 + $0x1] ss:$8 sm:$0xf0]   ;;  %v39_v22 = vld [vmem:[#allocation0] ss:$8 sm:$0xf0]  }
  0x10   :  { %v50_v12 = vld [vmem:[#allocation0 + $0x3] ss:$8 sm:$0xf]   ;;  %v67_v13 = vld [vmem:[#allocation0 + $0x2] ss:$8 sm:$0xf]  }
  0x11   :  { %v54_v14 = vsel %vm40_vm0, %v52_v9, %v50_v12  ;;  %v71_v15 = vsel %vm40_vm0, %v69_v10, %v67_v13  ;;  %v84_v16 = vld [vmem:[#allocation0 + $0x1] ss:$8 sm:$0xf]   ;;  %v60_v18 = vld [vmem:[#allocation0 + $0x43] sm:$0x1]  }
  0x12   :  { %55 = vrot.lane.b32.xlu0 %v54_v14, %s115_s0  ;;  %72 = vrot.lane.b32.xlu1 %v71_v15, %s116_s24  ;;  %v88_v17 = vsel %vm40_vm0, %v86_v11, %v84_v16  ;;  %v77_v19 = vld [vmem:[#allocation0 + $0x42] sm:$0x1]   ;;  %v94_v20 = vld [vmem:[#allocation0 + $0x41] sm:$0x1]   ;;  %v45_v24 = vld [vmem:[#allocation0 + $0x40] sm:$0x1]  }
  0x13   :  { %89 = vrot.lane.b32.xlu2 %v88_v17, %s117_s25  ;;  %v38_v21 = vld [vmem:[#allocation0] ss:$8 sm:$0xf]   ;;  %108 = vst.msk [vmem:[%s184_s1 + $0x8] sm:$0x1] %vm42_vm1, %v45_v24  }
  0x14   :  { %v41_v23 = vsel %vm40_vm0, %v39_v22, %v38_v21 }
  0x15   :  { %43 = vst.msk [vmem:[%s184_s1] sm:$0xff] %vm42_vm1, %v41_v23  }
  0x1a   :  { %61 = vrot.lane.b32.xlu0 %v60_v18, %s115_s0  ;;  %78 = vrot.lane.b32.xlu1 %v77_v19, %s116_s24 }
  0x1b   :  { %95 = vrot.lane.b32.xlu2 %v94_v20, %s117_s25 }
  0x6d   :  { %v90_v25 = vpop.permute.xlu2 %89  }
  0x75   :  { %v96_v26 = vpop.permute.xlu2 %95  }
  0x84   :  { %v56_v27 = vpop.permute.xlu0 %55   ;;  %v73_v28 = vpop.permute.xlu1 %72  }
  0x85   :  { %58 = vst.msk [vmem:[%s184_s1] sm:$0xff] %vm57_vm2, %v56_v27  }
  0x86   :  { %75 = vst.msk [vmem:[%s184_s1] sm:$0xff] %vm74_vm3, %v73_v28  }
  0x87   :  { %92 = vst.msk [vmem:[%s184_s1] sm:$0xff] %vm91_vm4, %v90_v25  }
  0x8c   :  { %v62_v29 = vpop.permute.xlu0 %61   ;;  %v79_v30 = vpop.permute.xlu1 %78  }
  0x8d   :  { %109 = vst.msk [vmem:[%s184_s1 + $0x8] sm:$0x1] %vm57_vm2, %v62_v29  }
  0x8e   :  { %110 = vst.msk [vmem:[%s184_s1 + $0x8] sm:$0x1] %vm74_vm3, %v79_v30  }
  0x8f   :  { %111 = vst.msk [vmem:[%s184_s1 + $0x8] sm:$0x1] %vm91_vm4, %v96_v26  }

// kernel: shufflenet_v2_backbone.33
= control target key start
LH: loop header
LB: loop body
LE: loop exit
PB: predicated region body
PF: predicated region fallthrough
CT: control target
= control target key end

     0   :  { %vm64_vm0 = vcmask 785408   ;;  %s139_s0 = inlined_call_operand.vmem [shape: f32[9,8,96], index: 0, kind: input, shape index: {}]   ;;  %s140_s1 = inlined_call_operand.vmem [shape: f32[9,96], index: 1, kind: input, shape index: {}]   ;;  %s141_s2 = inlined_call_operand.vmem [shape: f32[1,96], index: 2, kind: input, shape index: {}]   ;;  %s142_s3 = inlined_call_operand.vmem [shape: f32[8,96], index: 3, kind: output, shape index: {}]  }
   0x1   :  { %v14_v0 = vld [vmem:[%s140_s1] sm:$0xff]  ;;  %v70_v3 = vld [vmem:[%s139_s0 + $0x8] sm:$0xff]  ;;  %v71_v5 = vld [vmem:[%s139_s0 + $0x10] sm:$0xff] }
   0x2   :  { %v16_v1 = vld [vmem:[%s139_s0] sm:$0xff]  ;;  %v17_v2 = vperm.slane %v14_v0, 0  ;;  %v21_v4 = vperm.slane %v14_v0, 1  ;;  %v26_v6 = vperm.slane %v14_v0, 2  ;;  %v72_v7 = vld [vmem:[%s139_s0 + $0x18] sm:$0xff]  ;;  %v31_v8 = vperm.slane %v14_v0, 3 }
   0x3   :  { %v36_v12 = vperm.slane %v14_v0, 4  ;;  %v73_v13 = vld [vmem:[%s139_s0 + $0x20] sm:$0xff]  ;;  %v41_v16 = vperm.slane %v14_v0, 5  ;;  %v74_v17 = vld [vmem:[%s139_s0 + $0x28] sm:$0xff]  ;;  %v46_v20 = vperm.slane %v14_v0, 6  ;;  %v75_v21 = vld [vmem:[%s139_s0 + $0x30] sm:$0xff] }
   0x4   :  { %v18_v9 = vmul.f32 %v17_v2, %v16_v1  ;;  %v22_v10 = vmul.f32 %v70_v3, %v21_v4  ;;  %v27_v11 = vmul.f32 %v71_v5, %v26_v6  ;;  %v32_v15 = vmul.f32 %v72_v7, %v31_v8  ;;  %v76_v25 = vld [vmem:[%s139_s0 + $0x38] sm:$0xff]  ;;  %v78_v28 = vld [vmem:[%s140_s1 + $0x8] ss:$0 sm:$0xff]  ;;  %v77_v29 = vld [vmem:[%s139_s0 + $0x40] sm:$0xff] }
   0x5   :  { %v37_v19 = vmul.f32 %v73_v13, %v36_v12  ;;  %v42_v23 = vmul.f32 %v74_v17, %v41_v16  ;;  %v51_v24 = vperm.slane %v14_v0, 7  ;;  %v47_v27 = vmul.f32 %v75_v21, %v46_v20  ;;  %v79_v35 = vld [vmem:[%s141_s2] ss:$0 sm:$0xff] }
   0x6   :  { %v23_v14 = vadd.f32 %v22_v10, %v18_v9  ;;  %v57_v33 = vmul.f32 %v78_v28, %v77_v29 }
   0x7   :  { %v52_v31 = vmul.f32 %v76_v25, %v51_v24 }
   0x8   :  { %v28_v18 = vadd.f32 %v27_v11, %v23_v14 }
   0xa   :  { %v33_v22 = vadd.f32 %v32_v15, %v28_v18 }
   0xc   :  { %v38_v26 = vadd.f32 %v37_v19, %v33_v22 }
   0xe   :  { %v43_v30 = vadd.f32 %v42_v23, %v38_v26 }
  0x10   :  { %v48_v32 = vadd.f32 %v47_v27, %v43_v30 }
  0x12   :  { %v53_v34 = vadd.f32 %v52_v31, %v48_v32 }
  0x14   :  { %v58_v36 = vadd.f32 %v57_v33, %v53_v34 }
  0x16   :  { %v63_v37 = vadd.f32 %v79_v35, %v58_v36 }
  0x18   :  { %65 = vst.msk [vmem:[%s142_s3] sm:$0xff] %vm64_vm0, %v63_v37 }

// kernel: shufflenet_v2_backbone.35
= control target key start
LH: loop header
LB: loop body
LE: loop exit
PB: predicated region body
PF: predicated region fallthrough
CT: control target
= control target key end

     0   :  { %vm112_vm0 = vcmask 1043456   ;;  %vm87_vm1 = vcmask 195584   ;;  %s386_s1 = inlined_call_operand.vmem [shape: bf16[24,24], index: 1, kind: input, shape index: {}]   ;;  %s387_s2 = inlined_call_operand.vmem [shape: f32[1,24], index: 2, kind: input, shape index: {}]   ;;  %s388_s0 = inlined_call_operand.vmem [shape: bf16[128,24], index: 0, kind: input, shape index: {}]   ;;  %s389_s3 = inlined_call_operand.vmem [shape: f32[128,24], index: 3, kind: output, shape index: {}]  }
   0x1   :  { %v33_v0 = vld [vmem:[%s386_s1 + $0x8] sm:$0xf]  ;;  %v253_v4 = vld [vmem:[%s386_s1] sm:$0xff]  ;;  %v247_v6 = vld [vmem:[%s388_s0 + $0x10] sm:$0xff] }
   0x2   :  { %v83_v1 = vunpack.c.l.b16 %v33_v0  ;;  %v245_v5 = vld [vmem:[%s388_s0] sm:$0xff]  ;;  %v251_v8 = vld [vmem:[%s388_s0 + $0x30] sm:$0xff]  ;;  %v246_v9 = vld [vmem:[%s388_s0 + $0x8] sm:$0xff] }
   0x3   :  { %v249_v7 = vld [vmem:[%s388_s0 + $0x20] sm:$0xff]  ;;  %v248_v10 = vld [vmem:[%s388_s0 + $0x18] sm:$0xff]  ;;  %v250_v11 = vld [vmem:[%s388_s0 + $0x28] sm:$0xff] }
   0x4   :  { %v85_v2 = vpack.c.b16 %v83_v1, %v83_v1  ;;  %v252_v12 = vld [vmem:[%s388_s0 + $0x38] sm:$0xff]  ;;  %v260_v13 = vld [vmem:[%s387_s2] ss:$0 sm:$0xff] }
   0x6   :  { %v114_v3 = vsel %vm112_vm0, %v85_v2, 0 }
   0x7   :  { %122 = vmatpush.bf16.msra.mxu0 %v114_v3  ;;  %254 = vmatpush.bf16.msra.mxu1 %v114_v3 }
   0x8   :  { %255 = vmatpush.bf16.msra.mxu2 %v114_v3  ;;  %256 = vmatpush.bf16.msra.mxu3 %v114_v3 }
   0xb   :  { %123 = vmatpush.bf16.msra.mxu0 %v253_v4  ;;  %257 = vmatpush.bf16.msra.mxu1 %v253_v4 }
   0xc   :  { %258 = vmatpush.bf16.msra.mxu2 %v253_v4  ;;  %259 = vmatpush.bf16.msra.mxu3 %v253_v4 }
   0xe   :  { %237 = vmatmul.msk.bf16.vlgmr.msra.gmra.mxu0 %vm87_vm1, %v245_v5  ;;  %239 = vmatmul.msk.bf16.vlgmr.msra.gmra.mxu1 %vm87_vm1, %v247_v6 }
   0xf   :  { %241 = vmatmul.msk.bf16.vlgmr.msra.gmra.mxu2 %vm87_vm1, %v249_v7  ;;  %243 = vmatmul.msk.bf16.vlgmr.msra.gmra.mxu3 %vm87_vm1, %v251_v8 }
  0x1e   :  { %238 = vmatmul.msk.bf16.gmra.mxu0 %vm87_vm1, %v246_v9  ;;  %240 = vmatmul.msk.bf16.gmra.mxu1 %vm87_vm1, %v248_v10 }
  0x1f   :  { %242 = vmatmul.msk.bf16.gmra.mxu2 %vm87_vm1, %v250_v11  ;;  %244 = vmatmul.msk.bf16.gmra.mxu3 %vm87_vm1, %v252_v12 }
  0x8b   :  { %v125_v14 = vpop.f32.mrf.mxu0  ;;  %v135_v15 = vpop.f32.mrf.mxu1 }
  0x8c   :  { %v126_v16 = vadd.f32 %v260_v13, %v125_v14  ;;  %v136_v17 = vadd.f32 %v260_v13, %v135_v15 }
  0x8e   :  { %v165_v18 = vmax.f32 %v126_v16, 0.0  ;;  %v169_v19 = vmax.f32 %v136_v17, 0.0 }
  0x90   :  { %181 = vst.msk [vmem:[%s389_s3] sm:$0xff] %vm87_vm1, %v165_v18 }
  0x91   :  { %185 = vst.msk [vmem:[%s389_s3 + $0x20] sm:$0xff] %vm87_vm1, %v169_v19 }
  0x92   :  { %v145_v20 = vpop.f32.mrf.mxu2  ;;  %v155_v21 = vpop.f32.mrf.mxu3 }
  0x93   :  { %v146_v22 = vadd.f32 %v260_v13, %v145_v20  ;;  %v156_v23 = vadd.f32 %v260_v13, %v155_v21  ;;  %v127_v24 = vpop.f32.mrf.mxu0  ;;  %v137_v25 = vpop.f32.mrf.mxu1 }
  0x94   :  { %v128_v26 = vadd.f32 %v260_v13, %v127_v24  ;;  %v138_v27 = vadd.f32 %v260_v13, %v137_v25 }
  0x95   :  { %v173_v28 = vmax.f32 %v146_v22, 0.0  ;;  %v177_v29 = vmax.f32 %v156_v23, 0.0 }
  0x96   :  { %v166_v30 = vmax.f32 %v128_v26, 0.0  ;;  %v170_v31 = vmax.f32 %v138_v27, 0.0 }
  0x97   :  { %189 = vst.msk [vmem:[%s389_s3 + $0x40] sm:$0xff] %vm87_vm1, %v173_v28 }
  0x98   :  { %193 = vst.msk [vmem:[%s389_s3 + $0x60] sm:$0xff] %vm87_vm1, %v177_v29 }
  0x99   :  { %182 = vst.msk [vmem:[%s389_s3 + $0x8] sm:$0xff] %vm87_vm1, %v166_v30 }
  0x9a   :  { %186 = vst.msk [vmem:[%s389_s3 + $0x28] sm:$0xff] %vm87_vm1, %v170_v31  ;;  %v147_v32 = vpop.f32.mrf.mxu2  ;;  %v157_v33 = vpop.f32.mrf.mxu3 }
  0x9b   :  { %v148_v34 = vadd.f32 %v260_v13, %v147_v32  ;;  %v158_v35 = vadd.f32 %v260_v13, %v157_v33  ;;  %v130_v36 = vpop.f32.mrf.mxu0  ;;  %v140_v37 = vpop.f32.mrf.mxu1 }
  0x9c   :  { %v131_v38 = vadd.f32 %v260_v13, %v130_v36  ;;  %v141_v39 = vadd.f32 %v260_v13, %v140_v37 }
  0x9d   :  { %v174_v40 = vmax.f32 %v148_v34, 0.0  ;;  %v178_v41 = vmax.f32 %v158_v35, 0.0 }
  0x9e   :  { %v167_v42 = vmax.f32 %v131_v38, 0.0  ;;  %v171_v43 = vmax.f32 %v141_v39, 0.0 }
  0x9f   :  { %190 = vst.msk [vmem:[%s389_s3 + $0x48] sm:$0xff] %vm87_vm1, %v174_v40 }
  0xa0   :  { %194 = vst.msk [vmem:[%s389_s3 + $0x68] sm:$0xff] %vm87_vm1, %v178_v41 }
  0xa1   :  { %183 = vst.msk [vmem:[%s389_s3 + $0x10] sm:$0xff] %vm87_vm1, %v167_v42 }
  0xa2   :  { %187 = vst.msk [vmem:[%s389_s3 + $0x30] sm:$0xff] %vm87_vm1, %v171_v43  ;;  %v150_v44 = vpop.f32.mrf.mxu2  ;;  %v160_v45 = vpop.f32.mrf.mxu3 }
  0xa3   :  { %v151_v46 = vadd.f32 %v260_v13, %v150_v44  ;;  %v161_v47 = vadd.f32 %v260_v13, %v160_v45  ;;  %v132_v48 = vpop.f32.mrf.mxu0  ;;  %v142_v49 = vpop.f32.mrf.mxu1 }
  0xa4   :  { %v133_v50 = vadd.f32 %v260_v13, %v132_v48  ;;  %v143_v51 = vadd.f32 %v260_v13, %v142_v49 }
  0xa5   :  { %v175_v52 = vmax.f32 %v151_v46, 0.0  ;;  %v179_v53 = vmax.f32 %v161_v47, 0.0 }
  0xa6   :  { %v168_v54 = vmax.f32 %v133_v50, 0.0  ;;  %v172_v55 = vmax.f32 %v143_v51, 0.0 }
  0xa7   :  { %191 = vst.msk [vmem:[%s389_s3 + $0x50] sm:$0xff] %vm87_vm1, %v175_v52 }
  0xa8   :  { %195 = vst.msk [vmem:[%s389_s3 + $0x70] sm:$0xff] %vm87_vm1, %v179_v53 }
  0xa9   :  { %184 = vst.msk [vmem:[%s389_s3 + $0x18] sm:$0xff] %vm87_vm1, %v168_v54 }
  0xaa   :  { %188 = vst.msk [vmem:[%s389_s3 + $0x38] sm:$0xff] %vm87_vm1, %v172_v55  ;;  %v152_v56 = vpop.f32.mrf.mxu2  ;;  %v162_v57 = vpop.f32.mrf.mxu3 }
  0xab   :  { %v153_v58 = vadd.f32 %v260_v13, %v152_v56  ;;  %v163_v59 = vadd.f32 %v260_v13, %v162_v57 }
  0xad   :  { %v176_v60 = vmax.f32 %v153_v58, 0.0  ;;  %v180_v61 = vmax.f32 %v163_v59, 0.0 }
  0xaf   :  { %192 = vst.msk [vmem:[%s389_s3 + $0x58] sm:$0xff] %vm87_vm1, %v176_v60 }
  0xb0   :  { %196 = vst.msk [vmem:[%s389_s3 + $0x78] sm:$0xff] %vm87_vm1, %v180_v61 }

// kernel: shufflenet_v2_backbone.34
= control target key start
LH: loop header
LB: loop body
LE: loop exit
PB: predicated region body
PF: predicated region fallthrough
CT: control target
= control target key end

     0   :  { %vm52_vm0 = vcmask 1043456   ;;  %vm45_vm1 = vcmask 195584   ;;  %s160_s1 = inlined_call_operand.vmem [shape: bf16[24,24], index: 1, kind: input, shape index: {}]   ;;  %s161_s2 = inlined_call_operand.vmem [shape: f32[1,24], index: 2, kind: input, shape index: {}]   ;;  %s162_s0 = inlined_call_operand.vmem [shape: bf16[32,24], index: 0, kind: input, shape index: {}]   ;;  %s163_s3 = inlined_call_operand.vmem [shape: f32[32,24], index: 3, kind: output, shape index: {}]  }
   0x1   :  { %v21_v0 = vld [vmem:[%s160_s1 + $0x8] sm:$0xf]  ;;  %v103_v4 = vld [vmem:[%s160_s1] sm:$0xff] }
   0x2   :  { %v41_v1 = vunpack.c.l.b16 %v21_v0  ;;  %v101_v5 = vld [vmem:[%s162_s0] sm:$0xff]  ;;  %v102_v6 = vld [vmem:[%s162_s0 + $0x8] sm:$0xff] }
   0x3   :  { %v106_v7 = vld [vmem:[%s161_s2] ss:$0 sm:$0xff] }
   0x4   :  { %v43_v2 = vpack.c.b16 %v41_v1, %v41_v1 }
   0x6   :  { %v54_v3 = vsel %vm52_vm0, %v43_v2, 0 }
   0x7   :  { %62 = vmatpush.bf16.msra.mxu0 %v54_v3  ;;  %104 = vmatpush.bf16.msra.mxu1 %v54_v3 }
   0xb   :  { %63 = vmatpush.bf16.msra.mxu0 %v103_v4  ;;  %105 = vmatpush.bf16.msra.mxu1 %v103_v4 }
   0xe   :  { %99 = vmatmul.msk.bf16.vlgmr.msra.gmra.mxu0 %vm45_vm1, %v101_v5  ;;  %100 = vmatmul.msk.bf16.vlgmr.msra.gmra.mxu1 %vm45_vm1, %v102_v6 }
  0x8b   :  { %v65_v8 = vpop.f32.mrf.mxu0  ;;  %v70_v9 = vpop.f32.mrf.mxu1 }
  0x8c   :  { %v66_v10 = vadd.f32 %v106_v7, %v65_v8  ;;  %v71_v11 = vadd.f32 %v106_v7, %v70_v9 }
  0x8e   :  { %v75_v12 = vmax.f32 %v66_v10, 0.0  ;;  %v77_v13 = vmax.f32 %v71_v11, 0.0 }
  0x90   :  { %79 = vst.msk [vmem:[%s163_s3] sm:$0xff] %vm45_vm1, %v75_v12 }
  0x91   :  { %81 = vst.msk [vmem:[%s163_s3 + $0x10] sm:$0xff] %vm45_vm1, %v77_v13 }
  0x93   :  { %v67_v14 = vpop.f32.mrf.mxu0  ;;  %v72_v15 = vpop.f32.mrf.mxu1 }
  0x94   :  { %v68_v16 = vadd.f32 %v106_v7, %v67_v14  ;;  %v73_v17 = vadd.f32 %v106_v7, %v72_v15 }
  0x96   :  { %v76_v18 = vmax.f32 %v68_v16, 0.0  ;;  %v78_v19 = vmax.f32 %v73_v17, 0.0 }
  0x98   :  { %80 = vst.msk [vmem:[%s163_s3 + $0x8] sm:$0xff] %vm45_vm1, %v76_v18 }
  0x99   :  { %82 = vst.msk [vmem:[%s163_s3 + $0x18] sm:$0xff] %vm45_vm1, %v78_v19 }

// kernel: shufflenet_v2_backbone.38
= control target key start
LH: loop header
LB: loop body
LE: loop exit
PB: predicated region body
PF: predicated region fallthrough
CT: control target
= control target key end

     0   :  { %s666_s24 = smov 0   ;;  %s788_s0 = inlined_call_operand.vmem [shape: bf16[2,16,24], index: 0, kind: input, shape index: {}]   ;;  %s789_s1 = inlined_call_operand.vmem [shape: bf16[24,24], index: 1, kind: input, shape index: {}]   ;;  %s790_s2 = inlined_call_operand.vmem [shape: f32[1,24], index: 2, kind: input, shape index: {}]   ;;  %s791_s3 = inlined_call_operand.vmem [shape: f32[9,24], index: 3, kind: input, shape index: {}]   ;;  %s792_s4 = inlined_call_operand.vmem [shape: f32[1,24], index: 4, kind: input, shape index: {}]   ;;  %s793_s5 = inlined_call_operand.vmem [shape: bf16[24,24], index: 5, kind: input, shape index: {}]   ;;  %s794_s6 = inlined_call_operand.vmem [shape: f32[1,24], index: 6, kind: input, shape index: {}]   ;;  %s795_s7 = inlined_call_operand.vmem [shape: f32[2,16,24], index: 7, kind: output, shape index: {}]  }
   0x1 LB: > { %s574_s25 = sadd.s32 4294967295, %s623_s24   ;;  %p578_p0 = scmp.ge.s32.totalorder %s623_s24, 1  ;;  %s623_s24 = sphi %s666_s24, %s17_s24  }
   0x2   : > { %p237_p1 = scmp.lt.s32.totalorder %s623_s24, 3 }
   0x4   : > { %p238_p2 = pnand %p578_p0, %p237_p1 }
   0x5   : > { %p269_p3 = scmp.lt.s32.totalorder (!%p238_p2), %s574_s25, 1 }
   0x6   : > { %241 = sbr.rel (%p238_p2) target bundleno = 346 (0x15a), region = 48 }
   0xb   : > { %v284_v0 = vld [vmem:[%s789_s1 + $0x8] sm:$0xf]  ;;  %vm307_vm0 = vcmask 1043456   ;;  %s797_s25 = smov (!%p269_p3, %s574_s25), 1  ;;  %v602_v4 = vld [vmem:[%s789_s1] sm:$0xff]  ;;  %vm303_vm1 = vcmask 195584  }
   0xc   : > { %v299_v1 = vunpack.c.l.b16 %v284_v0  ;;  %s599_s28 = sshll.u32 %s797_s25, 3  ;;  %vm327_vm2 = vcmask 193536   ;;  %v625_v6 = vmov 0.0   ;;  %v344_v7 = vld [vmem:[%s791_s3] sm:$0xff]  ;;  %vm335_vm3 = vcmask 191488   ;;  %s600_s27 = sshll.u32 %s797_s25, 4 }
   0xd   : > { %s273_s10 = scalar_lea.vmem %s788_s0, %s599_s28  ;;  %328 = vst.msk [vmem:[#allocation2] sm:$0x3f] %vm327_vm2, %v625_v6  ;;  %v613_v8 = vld [vmem:[%s790_s2] ss:$0 sm:$0xff]  ;;  %v694_v9 = vperm.slane %v344_v7, 0  ;;  %v696_v10 = vperm.slane %v344_v7, 1  ;;  %s278_s30 = scalar_lea.vmem %s795_s7, %s600_s27 }
   0xe   : > { %v301_v2 = vpack.c.b16 %v299_v1, %v299_v1  ;;  %v601_v5 = vld [vmem:[%s273_s10] sm:$0xff]  ;;  %329 = vst.msk [vmem:[#allocation2 + $0x8] sm:$0x3f] %vm327_vm2, %v625_v6  ;;  %vm338_vm4 = vcmask 195588   ;;  %v700_v18 = vperm.slane %v344_v7, 2  ;;  %v708_v24 = vperm.slane %v344_v7, 3 }
   0xf   : > { %330 = vst.msk [vmem:[#allocation2 + $0x10] sm:$0x3f] %vm327_vm2, %v625_v6  ;;  %v481_v23 = vld [vmem:[%s793_s5 + $0x8] sm:$0xf]  ;;  %v710_v28 = vperm.slane %v344_v7, 4  ;;  %v712_v31 = vperm.slane %v344_v7, 5 }
  0x10   : > { %v309_v3 = vsel %vm307_vm0, %v301_v2, 0  ;;  %333 = vst.msk [vmem:[#allocation2 + $0x28] sm:$0x3f] %vm327_vm2, %v625_v6  ;;  %v491_v26 = vunpack.c.l.b16 %v481_v23  ;;  %v715_v34 = vperm.slane %v344_v7, 6  ;;  %v717_v35 = vperm.slane %v344_v7, 7  ;;  %v603_v63 = vld [vmem:[%s793_s5] sm:$0xff] }
  0x11   : > { %317 = vmatpush.bf16.msra.mxu0 %v309_v3  ;;  %331 = vst.msk [vmem:[#allocation2 + $0x18] sm:$0x3f] %vm327_vm2, %v625_v6  ;;  %v733_v60 = vld [vmem:[%s791_s3 + $0x8] ss:$0 sm:$0xff] }
  0x12   : > { %332 = vst.msk [vmem:[#allocation2 + $0x20] sm:$0x3f] %vm327_vm2, %v625_v6  ;;  %v493_v40 = vpack.c.b16 %v491_v26, %v491_v26 }
  0x14   : > { %v347_v12 = vld [vmem:[#allocation2] sm:$0xf]  ;;  %v499_v57 = vsel %vm307_vm0, %v493_v40, 0 }
  0x15   : > { %318 = vmatpush.bf16.msra.mxu0 %v602_v4  ;;  %v351_v13 = vld [vmem:[#allocation2 + $0x1] sm:$0xf]  ;;  %v349_v16 = vmul.f32 %v694_v9, %v347_v12  ;;  %507 = vmatpush.bf16.msra.mxu1 %v499_v57  ;;  %v745_v12 = vld [vmem:[%s792_s4] ss:$0 sm:$0xff] }
  0x16   : > { %v353_v17 = vmul.f32 %v696_v10, %v351_v13  ;;  %v355_v19 = vld [vmem:[#allocation2 + $0x2] sm:$0xf] }
  0x17   : > { %v357_v21 = vmul.f32 %v700_v18, %v355_v19 }
  0x18   : > { %591 = vmatmul.msk.bf16.vlgmr.msra.gmra.mxu0 %vm303_vm1, %v601_v5  ;;  %v354_v20 = vadd.f32 %v353_v17, %v349_v16 }
  0x19   : > { %508 = vmatpush.bf16.msra.mxu1 %v603_v63 }
  0x1a   : > { %v358_v27 = vadd.f32 %v357_v21, %v354_v20 }
  0x95   : > { %v320_v11 = vpop.f32.mrf.mxu0 }
  0x96   : > { %v321_v14 = vadd.f32 %v613_v8, %v320_v11 }
  0x98   : > { %v325_v15 = vmax.f32 %v321_v14, 0.0 }
  0x9a   : > { %336 = vst.msk [vmem:[#allocation2 + $0x9] sm:$0xf] %vm335_vm3, %v325_v15 }
  0x9b   : > { %339 = vst.msk [vmem:[#allocation2 + $0xd] sm:$0xf0] %vm338_vm4, %v325_v15 }
  0x9d   : > { %v322_v22 = vpop.f32.mrf.mxu0 }
  0x9e   : > { %v323_v25 = vadd.f32 %v613_v8, %v322_v22 }
  0xa0   : > { %v326_v36 = vmax.f32 %v323_v25, 0.0 }
  0xa1   : > { %v359_v29 = vld [vmem:[#allocation2 + $0x8] sm:$0xf] }
  0xa2   : > { %v363_v30 = vld [vmem:[#allocation2 + $0x9] sm:$0xf]  ;;  %v361_v32 = vmul.f32 %v708_v24, %v359_v29  ;;  %v371_v43 = vld [vmem:[#allocation2 + $0x10] sm:$0xf]  ;;  %341 = vst.msk [vmem:[#allocation2 + $0x19] sm:$0xf] %vm335_vm3, %v326_v36 }
  0xa3   : > { %v367_v33 = vld [vmem:[#allocation2 + $0xa] sm:$0xf]  ;;  %v365_v42 = vmul.f32 %v710_v28, %v363_v30  ;;  %v397_v46 = vld [vmem:[#allocation2 + $0x10] sm:$0xf]  ;;  %343 = vst.msk [vmem:[#allocation2 + $0x1d] sm:$0xf0] %vm338_vm4, %v326_v36  ;;  %v373_v59 = vmul.f32 %v715_v34, %v371_v43 }
  0xa4   : > { %v388_v37 = vld [vmem:[#allocation2 + $0x8] sm:$0xf]  ;;  %v362_v41 = vadd.f32 %v361_v32, %v358_v27  ;;  %v417_v47 = vld [vmem:[#allocation2 + $0x10] sm:$0xf]  ;;  %v369_v50 = vmul.f32 %v712_v31, %v367_v33  ;;  %v398_v62 = vmul.f32 %v397_v46, %v708_v24 }
  0xa5   : > { %v391_v38 = vld [vmem:[#allocation2 + $0x9] sm:$0xf]  ;;  %v389_v44 = vmul.f32 %v388_v37, %v694_v9  ;;  %v420_v48 = vld [vmem:[#allocation2 + $0x11] sm:$0xf]  ;;  %v418_v55 = vmul.f32 %v417_v47, %v694_v9 }
  0xa6   : > { %v394_v39 = vld [vmem:[#allocation2 + $0xa] sm:$0xf]  ;;  %v392_v45 = vmul.f32 %v391_v38, %v696_v10  ;;  %v366_v49 = vadd.f32 %v365_v42, %v362_v41  ;;  %v375_v51 = vld [vmem:[#allocation2 + $0x11] sm:$0xf]  ;;  %v421_v56 = vmul.f32 %v420_v48, %v696_v10 }
  0xa7   : > { %v395_v53 = vmul.f32 %v394_v39, %v700_v18  ;;  %v400_v54 = vld [vmem:[#allocation2 + $0x11] sm:$0xf]  ;;  %v377_v3 = vmul.f32 %v717_v35, %v375_v51 }
  0xa8   : > { %v393_v52 = vadd.f32 %v392_v45, %v389_v44  ;;  %v370_v58 = vadd.f32 %v369_v50, %v366_v49  ;;  %v379_v0 = vld [vmem:[#allocation2 + $0x12] sm:$0xf]  ;;  %v401_v5 = vmul.f32 %v400_v54, %v710_v28  ;;  %v422_v7 = vadd.f32 %v421_v56, %v418_v55  ;;  %v465_v56 = vld [vmem:[#allocation2 + $0x28] sm:$0xf] }
  0xa9   : > { %v403_v1 = vld [vmem:[#allocation2 + $0x12] sm:$0xf]  ;;  %v381_v11 = vmul.f32 %v733_v60, %v379_v0  ;;  %v406_v16 = vld [vmem:[#allocation2 + $0x18] sm:$0xf]  ;;  %v466_v0 = vmul.f32 %v465_v56, %v715_v34 }
  0xaa   : > { %v396_v61 = vadd.f32 %v395_v53, %v393_v52  ;;  %v374_v2 = vadd.f32 %v373_v59, %v370_v58  ;;  %v423_v6 = vld [vmem:[#allocation2 + $0x12] sm:$0xf]  ;;  %v404_v14 = vmul.f32 %v403_v1, %v712_v31  ;;  %v409_v17 = vld [vmem:[#allocation2 + $0x19] sm:$0xf]  ;;  %v407_v21 = vmul.f32 %v406_v16, %v715_v34  ;;  %v435_v45 = vld [vmem:[#allocation2 + $0x20] sm:$0xf] }
  0xab   : > { %v424_v15 = vmul.f32 %v423_v6, %v700_v18  ;;  %v426_v22 = vld [vmem:[#allocation2 + $0x18] sm:$0xf]  ;;  %v410_v33 = vmul.f32 %v409_v17, %v717_v35  ;;  %v455_v46 = vld [vmem:[#allocation2 + $0x20] sm:$0xf]  ;;  %v468_v1 = vld [vmem:[#allocation2 + $0x29] sm:$0xf] }
  0xac   : > { %v399_v4 = vadd.f32 %v398_v62, %v396_v61  ;;  %v378_v8 = vadd.f32 %v377_v3, %v374_v2  ;;  %v429_v23 = vld [vmem:[#allocation2 + $0x19] sm:$0xf]  ;;  %v427_v27 = vmul.f32 %v426_v22, %v708_v24  ;;  %v438_v52 = vld [vmem:[#allocation2 + $0x21] sm:$0xf]  ;;  %v456_v55 = vmul.f32 %v455_v46, %v708_v24 }
  0xad   : > { %v425_v25 = vadd.f32 %v424_v15, %v422_v7  ;;  %v412_v26 = vld [vmem:[#allocation2 + $0x1a] sm:$0xf]  ;;  %v430_v40 = vmul.f32 %v429_v23, %v710_v28  ;;  %v458_v53 = vld [vmem:[#allocation2 + $0x21] sm:$0xf]  ;;  %v439_v62 = vmul.f32 %v438_v52, %v717_v35 }
  0xae   : > { %v402_v13 = vadd.f32 %v401_v5, %v399_v4  ;;  %v382_v19 = vadd.f32 %v381_v11, %v378_v8  ;;  %v432_v29 = vld [vmem:[#allocation2 + $0x1a] sm:$0xf]  ;;  %v413_v44 = vmul.f32 %v733_v60, %v412_v26  ;;  %v441_v57 = vld [vmem:[#allocation2 + $0x22] sm:$0xf]  ;;  %v471_v5 = vld [vmem:[#allocation2 + $0x2a] sm:$0xf]  ;;  %v469_v8 = vmul.f32 %v468_v1, %v717_v35 }
  0xaf   : > { %v446_v36 = vld [vmem:[#allocation2 + $0x18] sm:$0xf]  ;;  %v428_v39 = vadd.f32 %v427_v27, %v425_v25  ;;  %v433_v48 = vmul.f32 %v432_v29, %v712_v31  ;;  %v461_v58 = vld [vmem:[#allocation2 + $0x22] sm:$0xf]  ;;  %v442_v3 = vmul.f32 %v733_v60, %v441_v57  ;;  %v616_v35 = vld [vmem:[%s794_s6] ss:$0 sm:$0xff] }
  0xb0   : > { %v405_v20 = vadd.f32 %v404_v14, %v402_v13  ;;  %v386_v30 = vadd.f32 %v745_v12, %v382_v19  ;;  %v449_v37 = vld [vmem:[#allocation2 + $0x19] sm:$0xf]  ;;  %v447_v41 = vmul.f32 %v446_v36, %v694_v9  ;;  %v436_v9 = vmul.f32 %v435_v45, %v715_v34 }
  0xb1   : > { %v452_v38 = vld [vmem:[#allocation2 + $0x1a] sm:$0xf]  ;;  %v450_v42 = vmul.f32 %v449_v37, %v696_v10  ;;  %v431_v47 = vadd.f32 %v430_v40, %v428_v39  ;;  %v462_v4 = vmul.f32 %v461_v58, %v712_v31  ;;  %v472_v34 = vmul.f32 %v733_v60, %v471_v5 }
  0xb2   : > { %v408_v32 = vadd.f32 %v407_v21, %v405_v20  ;;  %387 = vst.msk [vmem:[#allocation3] sm:$0xf] %vm335_vm3, %v386_v30  ;;  %v453_v50 = vmul.f32 %v452_v38, %v700_v18  ;;  %v459_v18 = vmul.f32 %v458_v53, %v710_v28 }
  0xb3   : > { %v451_v49 = vadd.f32 %v450_v42, %v447_v41  ;;  %v434_v54 = vadd.f32 %v433_v48, %v431_v47 }
  0xb4   : > { %v411_v43 = vadd.f32 %v410_v33, %v408_v32 }
  0xb5   : > { %v454_v10 = vadd.f32 %v453_v50, %v451_v49  ;;  %v437_v61 = vadd.f32 %v436_v9, %v434_v54 }
  0xb6   : > { %v414_v51 = vadd.f32 %v413_v44, %v411_v43 }
  0xb7   : > { %v457_v63 = vadd.f32 %v456_v55, %v454_v10  ;;  %v440_v2 = vadd.f32 %v439_v62, %v437_v61 }
  0xb8   : > { %v415_v59 = vadd.f32 %v745_v12, %v414_v51 }
  0xb9   : > { %v460_v24 = vadd.f32 %v459_v18, %v457_v63  ;;  %v443_v6 = vadd.f32 %v442_v3, %v440_v2 }
  0xba   : > { %416 = vst.msk [vmem:[#allocation3 + $0x4] sm:$0xf] %vm335_vm3, %v415_v59 }
  0xbb   : > { %v463_v7 = vadd.f32 %v462_v4, %v460_v24  ;;  %v444_v28 = vadd.f32 %v745_v12, %v443_v6 }
  0xbd   : > { %v467_v11 = vadd.f32 %v466_v0, %v463_v7  ;;  %445 = vst.msk [vmem:[#allocation3 + $0x8] sm:$0xf] %vm335_vm3, %v444_v28 }
  0xbf   : > { %v470_v13 = vadd.f32 %v469_v8, %v467_v11 }
  0xc1   : > { %v473_v14 = vadd.f32 %v472_v34, %v470_v13  ;;  %v476_v31 = vld [vmem:[#allocation3] sm:$0xff] }
  0xc3   : > { %v474_v15 = vadd.f32 %v745_v12, %v473_v14 }
  0xc5   : > { %475 = vst.msk [vmem:[#allocation3 + $0xc] sm:$0xf] %vm335_vm3, %v474_v15 }
  0xcc   : > { %v477_v16 = vld [vmem:[#allocation3 + $0x8] sm:$0xff] }
  0xcd   : > { %v478_v17 = vpack.c.bf16 %v477_v16, %v476_v31 }
  0xcf   : > { %596 = vmatmul.msk.bf16.vlgmr.msra.gmra.mxu1 %vm303_vm1, %v478_v17 }
 0x14c   : > { %v510_v19 = vpop.f32.mrf.mxu1 }
 0x14d   : > { %v511_v60 = vadd.f32 %v616_v35, %v510_v19 }
 0x14f   : > { %v515_v20 = vmax.f32 %v511_v60, 0.0 }
 0x151   : > { %517 = vst.msk [vmem:[%s278_s30] sm:$0xff] %vm303_vm1, %v515_v20 }
 0x154   : > { %v512_v12 = vpop.f32.mrf.mxu1 }
 0x155   : > { %v513_v21 = vadd.f32 %v616_v35, %v512_v12 }
 0x157   : > { %v516_v22 = vmax.f32 %v513_v21, 0.0 }
 0x159   : > { %518 = vst.msk [vmem:[%s278_s30 + $0x8] sm:$0xff] %vm303_vm1, %v516_v22 }
 0x15a PF: > { %s17_s24 = sadd.s32 1, %s623_s24  }
 0x15b   : > { %p14_p4 = scmp.ge.s32.totalorder %s17_s24, 4  }
 0x15d   :  { %16 = sbr.rel (!%p14_p4) target bundleno = 1 (0x1), region = 83 }

// kernel: tile.51
= control target key start
LH: loop header
LB: loop body
LE: loop exit
PB: predicated region body
PF: predicated region fallthrough
CT: control target
= control target key end

     0   :  { %vm40_vm0 = vcmask 1047556   ;;  %vm42_vm1 = vcmask 392192   ;;  %vm57_vm2 = vcmask 785792   ;;  %s127_s0 = inlined_call_operand.vmem [shape: f32[9,2,1,1,48], index: 0, kind: input, shape index: {}]   ;;  %s128_s1 = inlined_call_operand.vmem [shape: f32[9,96], index: 1, kind: output, shape index: {}]  }
   0x1   :  { %v67_v0 = vld [vmem:[%s127_s0 + $0xe] sm:$0x3]  ;;  %v68_v1 = vld [vmem:[%s127_s0 + $0xc] sm:$0x3]  ;;  %v69_v2 = vld [vmem:[%s127_s0 + $0xa] sm:$0x3] }
   0x2   :  { %11 = vst [vmem:[#allocation0 + $0x38] sm:$0x3] %v67_v0  ;;  %v70_v3 = vld [vmem:[%s127_s0 + $0x8] sm:$0x3]  ;;  %v71_v4 = vld [vmem:[%s127_s0 + $0x6] sm:$0x3] }
   0x3   :  { %15 = vst [vmem:[#allocation0 + $0x30] sm:$0x3] %v68_v1  ;;  %v72_v5 = vld [vmem:[%s127_s0 + $0x4] sm:$0x3]  ;;  %v73_v6 = vld [vmem:[%s127_s0 + $0x2] sm:$0x3] }
   0x4   :  { %19 = vst [vmem:[#allocation0 + $0x28] sm:$0x3] %v69_v2  ;;  %v36_v7 = vld [vmem:[%s127_s0] sm:$0x3]  ;;  %v66_v8 = vld [vmem:[%s127_s0 + $0x10] sm:$0x3] }
   0x5   :  { %23 = vst [vmem:[#allocation0 + $0x20] sm:$0x3] %v70_v3  ;;  %s77_s0 = smov 48  }
   0x6   :  { %27 = vst [vmem:[#allocation0 + $0x18] sm:$0x3] %v71_v4 }
   0x7   :  { %31 = vst [vmem:[#allocation0 + $0x10] sm:$0x3] %v72_v5 }
   0x8   :  { %35 = vst [vmem:[#allocation0 + $0x8] sm:$0x3] %v73_v6 }
   0x9   :  { %37 = vst [vmem:[#allocation0] sm:$0x3] %v36_v7 }
   0xa   :  { %7 = vst [vmem:[#allocation0 + $0x40] sm:$0x3] %v66_v8 }
   0xc   :  { %v52_v9 = vld [vmem:[#allocation0 + $0x1] ss:$8 sm:$0xf0]   ;;  %v39_v10 = vld [vmem:[#allocation0] ss:$8 sm:$0xf0]  }
  0x10   :  { %v38_v11 = vld [vmem:[#allocation0] ss:$8 sm:$0xf]   ;;  %v50_v12 = vld [vmem:[#allocation0 + $0x1] ss:$8 sm:$0xf]  }
  0x11   :  { %v54_v13 = vsel %vm40_vm0, %v52_v9, %v50_v12  ;;  %v41_v14 = vsel %vm40_vm0, %v39_v10, %v38_v11  ;;  %v60_v15 = vld [vmem:[#allocation0 + $0x41] sm:$0x1]   ;;  %v45_v16 = vld [vmem:[#allocation0 + $0x40] sm:$0x1]  }
  0x12   :  { %55 = vrot.lane.b32.xlu0 %v54_v13, %s77_s0  ;;  %43 = vst.msk [vmem:[%s128_s1] sm:$0xff] %vm42_vm1, %v41_v14  }
  0x13   :  { %74 = vst.msk [vmem:[%s128_s1 + $0x8] sm:$0x1] %vm42_vm1, %v45_v16  }
  0x1a   :  { %61 = vrot.lane.b32.xlu0 %v60_v15, %s77_s0 }
  0x84   :  { %v56_v17 = vpop.permute.xlu0 %55  }
  0x85   :  { %58 = vst.msk [vmem:[%s128_s1] sm:$0xff] %vm57_vm2, %v56_v17  }
  0x8c   :  { %v62_v18 = vpop.permute.xlu0 %61  }
  0x8d   :  { %75 = vst.msk [vmem:[%s128_s1 + $0x8] sm:$0x1] %vm57_vm2, %v62_v18  }

// kernel: shufflenet_v2_backbone.42
= control target key start
LH: loop header
LB: loop body
LE: loop exit
PB: predicated region body
PF: predicated region fallthrough
CT: control target
= control target key end

     0   :  { %vm44_vm0 = vcmask 392192   ;;  %s122_s1 = inlined_call_operand.vmem [shape: bf16[48,48], index: 1, kind: input, shape index: {}]   ;;  %s123_s2 = inlined_call_operand.vmem [shape: f32[1,48], index: 2, kind: input, shape index: {}]   ;;  %s124_s0 = inlined_call_operand.vmem [shape: bf16[8,48], index: 0, kind: input, shape index: {}]   ;;  %s125_s3 = inlined_call_operand.vmem [shape: f32[8,48], index: 3, kind: output, shape index: {}]  }
   0x1   :  { %v82_v0 = vld [vmem:[%s122_s1 + $0x10] sm:$0xff]  ;;  %v81_v1 = vld [vmem:[%s122_s1 + $0x8] sm:$0xff]  ;;  %v80_v2 = vld [vmem:[%s122_s1] sm:$0xff] }
   0x2   :  { %53 = vmatpush.bf16.msra.mxu0 %v82_v0  ;;  %v15_v3 = vld [vmem:[%s124_s0] sm:$0xf] }
   0x3   :  { %v83_v4 = vld [vmem:[%s123_s2] ss:$0 sm:$0xff] }
   0x6   :  { %54 = vmatpush.bf16.msra.mxu0 %v81_v1 }
   0xa   :  { %55 = vmatpush.bf16.msra.mxu0 %v80_v2 }
   0xd   :  { %79 = vmatmul.msk.bf16.vlgmr.msra.gmra.mxu0 %vm44_vm0, %v15_v3 }
  0x8a   :  { %v57_v5 = vpop.f32.mrf.mxu0 }
  0x8b   :  { %v58_v6 = vadd.f32 %v83_v4, %v57_v5 }
  0x8d   :  { %v61_v7 = vmax.f32 %v58_v6, 0.0 }
  0x8f   :  { %62 = vst.msk [vmem:[%s125_s3] sm:$0xff] %vm44_vm0, %v61_v7 }
  0x92   :  { %v59_v8 = vpop.f32.mrf.mxu0 }

// kernel: shufflenet_v2_backbone.41
= control target key start
LH: loop header
LB: loop body
LE: loop exit
PB: predicated region body
PF: predicated region fallthrough
CT: control target
= control target key end

     0   :  { %vm64_vm0 = vcmask 781312   ;;  %s139_s0 = inlined_call_operand.vmem [shape: f32[9,4,96], index: 0, kind: input, shape index: {}]   ;;  %s140_s1 = inlined_call_operand.vmem [shape: f32[9,96], index: 1, kind: input, shape index: {}]   ;;  %s141_s2 = inlined_call_operand.vmem [shape: f32[1,96], index: 2, kind: input, shape index: {}]   ;;  %s142_s3 = inlined_call_operand.vmem [shape: f32[4,96], index: 3, kind: output, shape index: {}]  }
   0x1   :  { %v14_v0 = vld [vmem:[%s140_s1] sm:$0xff]  ;;  %v71_v5 = vld [vmem:[%s139_s0 + $0x8] sm:$0xf]  ;;  %v72_v7 = vld [vmem:[%s139_s0 + $0xc] sm:$0xf] }
   0x2   :  { %v16_v1 = vld [vmem:[%s139_s0] sm:$0xf]  ;;  %v17_v2 = vperm.slane %v14_v0, 0  ;;  %v70_v3 = vld [vmem:[%s139_s0 + $0x4] sm:$0xf]  ;;  %v21_v4 = vperm.slane %v14_v0, 1 }
   0x3   :  { %v26_v6 = vperm.slane %v14_v0, 2  ;;  %v31_v8 = vperm.slane %v14_v0, 3  ;;  %v36_v11 = vperm.slane %v14_v0, 4  ;;  %v73_v13 = vld [vmem:[%s139_s0 + $0x10] sm:$0xf]  ;;  %v41_v16 = vperm.slane %v14_v0, 5 }
   0x4   :  { %v18_v9 = vmul.f32 %v17_v2, %v16_v1  ;;  %v22_v10 = vmul.f32 %v70_v3, %v21_v4  ;;  %v74_v17 = vld [vmem:[%s139_s0 + $0x14] sm:$0xf]  ;;  %v46_v20 = vperm.slane %v14_v0, 6  ;;  %v75_v21 = vld [vmem:[%s139_s0 + $0x18] sm:$0xf]  ;;  %v51_v24 = vperm.slane %v14_v0, 7 }
   0x5   :  { %v27_v12 = vmul.f32 %v71_v5, %v26_v6  ;;  %v32_v15 = vmul.f32 %v72_v7, %v31_v8  ;;  %v37_v19 = vmul.f32 %v73_v13, %v36_v11  ;;  %v42_v23 = vmul.f32 %v74_v17, %v41_v16  ;;  %v76_v25 = vld [vmem:[%s139_s0 + $0x1c] sm:$0xf]  ;;  %v78_v28 = vld [vmem:[%s140_s1 + $0x8] ss:$0 sm:$0xff]  ;;  %v77_v29 = vld [vmem:[%s139_s0 + $0x20] sm:$0xf] }
   0x6   :  { %v23_v14 = vadd.f32 %v22_v10, %v18_v9  ;;  %v47_v27 = vmul.f32 %v75_v21, %v46_v20  ;;  %v52_v31 = vmul.f32 %v76_v25, %v51_v24  ;;  %v57_v33 = vmul.f32 %v78_v28, %v77_v29  ;;  %v79_v35 = vld [vmem:[%s141_s2] ss:$0 sm:$0xff] }
   0x8   :  { %v28_v18 = vadd.f32 %v27_v12, %v23_v14 }
   0xa   :  { %v33_v22 = vadd.f32 %v32_v15, %v28_v18 }
   0xc   :  { %v38_v26 = vadd.f32 %v37_v19, %v33_v22 }
   0xe   :  { %v43_v30 = vadd.f32 %v42_v23, %v38_v26 }
  0x10   :  { %v48_v32 = vadd.f32 %v47_v27, %v43_v30 }
  0x12   :  { %v53_v34 = vadd.f32 %v52_v31, %v48_v32 }
  0x14   :  { %v58_v36 = vadd.f32 %v57_v33, %v53_v34 }
  0x16   :  { %v63_v37 = vadd.f32 %v79_v35, %v58_v36 }
  0x18   :  { %65 = vst.msk [vmem:[%s142_s3] sm:$0xf] %vm64_vm0, %v63_v37 }

// kernel: shufflenet_v2_backbone.43
= control target key start
LH: loop header
LB: loop body
LE: loop exit
PB: predicated region body
PF: predicated region fallthrough
CT: control target
= control target key end

     0   :  { %vm57_vm0 = vcmask 392192   ;;  %s182_s1 = inlined_call_operand.vmem [shape: bf16[48,48], index: 1, kind: input, shape index: {}]   ;;  %s183_s2 = inlined_call_operand.vmem [shape: f32[1,48], index: 2, kind: input, shape index: {}]   ;;  %s184_s0 = inlined_call_operand.vmem [shape: bf16[32,48], index: 0, kind: input, shape index: {}]   ;;  %s185_s3 = inlined_call_operand.vmem [shape: f32[32,48], index: 3, kind: output, shape index: {}]  }
   0x1   :  { %v121_v0 = vld [vmem:[%s182_s1 + $0x10] sm:$0xff]  ;;  %v120_v1 = vld [vmem:[%s182_s1 + $0x8] sm:$0xff]  ;;  %v119_v2 = vld [vmem:[%s182_s1] sm:$0xff] }
   0x2   :  { %69 = vmatpush.bf16.msra.mxu0 %v121_v0  ;;  %122 = vmatpush.bf16.msra.mxu1 %v121_v0  ;;  %v117_v3 = vld [vmem:[%s184_s0] sm:$0xff]  ;;  %v118_v4 = vld [vmem:[%s184_s0 + $0x8] sm:$0xff] }
   0x3   :  { %v125_v5 = vld [vmem:[%s183_s2] ss:$0 sm:$0xff] }
   0x6   :  { %70 = vmatpush.bf16.msra.mxu0 %v120_v1  ;;  %123 = vmatpush.bf16.msra.mxu1 %v120_v1 }
   0xa   :  { %71 = vmatpush.bf16.msra.mxu0 %v119_v2  ;;  %124 = vmatpush.bf16.msra.mxu1 %v119_v2 }
   0xd   :  { %115 = vmatmul.msk.bf16.vlgmr.msra.gmra.mxu0 %vm57_vm0, %v117_v3  ;;  %116 = vmatmul.msk.bf16.vlgmr.msra.gmra.mxu1 %vm57_vm0, %v118_v4 }
  0x8a   :  { %v73_v6 = vpop.f32.mrf.mxu0  ;;  %v78_v7 = vpop.f32.mrf.mxu1 }
  0x8b   :  { %v74_v8 = vadd.f32 %v125_v5, %v73_v6  ;;  %v79_v9 = vadd.f32 %v125_v5, %v78_v7 }
  0x8d   :  { %v83_v10 = vmax.f32 %v74_v8, 0.0  ;;  %v85_v11 = vmax.f32 %v79_v9, 0.0 }
  0x8f   :  { %87 = vst.msk [vmem:[%s185_s3] sm:$0xff] %vm57_vm0, %v83_v10 }
  0x90   :  { %89 = vst.msk [vmem:[%s185_s3 + $0x10] sm:$0xff] %vm57_vm0, %v85_v11 }
  0x92   :  { %v75_v12 = vpop.f32.mrf.mxu0  ;;  %v80_v13 = vpop.f32.mrf.mxu1 }
  0x93   :  { %v76_v14 = vadd.f32 %v125_v5, %v75_v12  ;;  %v81_v15 = vadd.f32 %v125_v5, %v80_v13 }
  0x95   :  { %v84_v16 = vmax.f32 %v76_v14, 0.0  ;;  %v86_v17 = vmax.f32 %v81_v15, 0.0 }
  0x97   :  { %88 = vst.msk [vmem:[%s185_s3 + $0x8] sm:$0xff] %vm57_vm0, %v84_v16 }
  0x98   :  { %90 = vst.msk [vmem:[%s185_s3 + $0x18] sm:$0xff] %vm57_vm0, %v86_v17 }

// kernel: shufflenet_v2_backbone.53
= control target key start
LH: loop header
LB: loop body
LE: loop exit
PB: predicated region body
PF: predicated region fallthrough
CT: control target
= control target key end

     0   :  { %vm64_vm0 = vcmask 779264   ;;  %s139_s0 = inlined_call_operand.vmem [shape: f32[9,2,96], index: 0, kind: input, shape index: {}]   ;;  %s140_s1 = inlined_call_operand.vmem [shape: f32[9,96], index: 1, kind: input, shape index: {}]   ;;  %s141_s2 = inlined_call_operand.vmem [shape: f32[1,96], index: 2, kind: input, shape index: {}]   ;;  %s142_s3 = inlined_call_operand.vmem [shape: f32[2,96], index: 3, kind: output, shape index: {}]  }
   0x1   :  { %v14_v0 = vld [vmem:[%s140_s1] sm:$0xff]  ;;  %v73_v13 = vld [vmem:[%s139_s0 + $0x8] sm:$0x3]  ;;  %v74_v17 = vld [vmem:[%s139_s0 + $0xa] sm:$0x3] }
   0x2   :  { %v16_v1 = vld [vmem:[%s139_s0] sm:$0x3]  ;;  %v17_v2 = vperm.slane %v14_v0, 0  ;;  %v70_v3 = vld [vmem:[%s139_s0 + $0x2] sm:$0x3]  ;;  %v21_v4 = vperm.slane %v14_v0, 1 }
   0x3   :  { %v71_v5 = vld [vmem:[%s139_s0 + $0x4] sm:$0x3]  ;;  %v26_v6 = vperm.slane %v14_v0, 2  ;;  %v72_v7 = vld [vmem:[%s139_s0 + $0x6] sm:$0x3]  ;;  %v31_v8 = vperm.slane %v14_v0, 3 }
   0x4   :  { %v18_v9 = vmul.f32 %v17_v2, %v16_v1  ;;  %v22_v10 = vmul.f32 %v70_v3, %v21_v4  ;;  %v36_v11 = vperm.slane %v14_v0, 4  ;;  %v41_v16 = vperm.slane %v14_v0, 5  ;;  %v75_v21 = vld [vmem:[%s139_s0 + $0xc] sm:$0x3]  ;;  %v76_v25 = vld [vmem:[%s139_s0 + $0xe] sm:$0x3] }
   0x5   :  { %v27_v12 = vmul.f32 %v71_v5, %v26_v6  ;;  %v32_v15 = vmul.f32 %v72_v7, %v31_v8  ;;  %v46_v20 = vperm.slane %v14_v0, 6  ;;  %v51_v24 = vperm.slane %v14_v0, 7  ;;  %v78_v28 = vld [vmem:[%s140_s1 + $0x8] ss:$0 sm:$0xff]  ;;  %v77_v29 = vld [vmem:[%s139_s0 + $0x10] sm:$0x3] }
   0x6   :  { %v23_v14 = vadd.f32 %v22_v10, %v18_v9  ;;  %v37_v19 = vmul.f32 %v73_v13, %v36_v11  ;;  %v42_v23 = vmul.f32 %v74_v17, %v41_v16  ;;  %v57_v33 = vmul.f32 %v78_v28, %v77_v29  ;;  %v79_v35 = vld [vmem:[%s141_s2] ss:$0 sm:$0xff] }
   0x7   :  { %v47_v27 = vmul.f32 %v75_v21, %v46_v20  ;;  %v52_v31 = vmul.f32 %v76_v25, %v51_v24 }
   0x8   :  { %v28_v18 = vadd.f32 %v27_v12, %v23_v14 }
   0xa   :  { %v33_v22 = vadd.f32 %v32_v15, %v28_v18 }
   0xc   :  { %v38_v26 = vadd.f32 %v37_v19, %v33_v22 }
   0xe   :  { %v43_v30 = vadd.f32 %v42_v23, %v38_v26 }
  0x10   :  { %v48_v32 = vadd.f32 %v47_v27, %v43_v30 }
  0x12   :  { %v53_v34 = vadd.f32 %v52_v31, %v48_v32 }
  0x14   :  { %v58_v36 = vadd.f32 %v57_v33, %v53_v34 }
  0x16   :  { %v63_v37 = vadd.f32 %v79_v35, %v58_v36 }
  0x18   :  { %65 = vst.msk [vmem:[%s142_s3] sm:$0x3] %vm64_vm0, %v63_v37 }

// kernel: shufflenet_v2_backbone.46
= control target key start
LH: loop header
LB: loop body
LE: loop exit
PB: predicated region body
PF: predicated region fallthrough
CT: control target
= control target key end

     0   :  { %s611_s24 = smov 0   ;;  %s685_s0 = inlined_call_operand.vmem [shape: bf16[2,4,48], index: 0, kind: input, shape index: {}]   ;;  %s686_s1 = inlined_call_operand.vmem [shape: bf16[48,48], index: 1, kind: input, shape index: {}]   ;;  %s687_s2 = inlined_call_operand.vmem [shape: f32[1,48], index: 2, kind: input, shape index: {}]   ;;  %s688_s3 = inlined_call_operand.vmem [shape: f32[9,48], index: 3, kind: input, shape index: {}]   ;;  %s689_s4 = inlined_call_operand.vmem [shape: f32[1,48], index: 4, kind: input, shape index: {}]   ;;  %s690_s5 = inlined_call_operand.vmem [shape: bf16[48,48], index: 5, kind: input, shape index: {}]   ;;  %s691_s6 = inlined_call_operand.vmem [shape: f32[1,48], index: 6, kind: input, shape index: {}]   ;;  %s692_s7 = inlined_call_operand.vmem [shape: f32[2,4,48], index: 7, kind: output, shape index: {}]  }
   0x1 LB: > { %s508_s25 = sadd.s32 4294967295, %s568_s24   ;;  %p512_p0 = scmp.ge.s32.totalorder %s568_s24, 1  ;;  %s568_s24 = sphi %s611_s24, %s17_s24  }
   0x2   : > { %p236_p1 = scmp.lt.s32.totalorder %s568_s24, 3 }
   0x4   : > { %p237_p2 = pnand %p512_p0, %p236_p1 }
   0x5   : > { %p266_p3 = scmp.lt.s32.totalorder (!%p237_p2), %s508_s25, 1 }
   0x6   : > { %240 = sbr.rel (%p237_p2) target bundleno = 328 (0x148), region = 48 }
   0xb   : > { %v545_v0 = vld [vmem:[%s686_s1 + $0x10] sm:$0xff]  ;;  %v544_v1 = vld [vmem:[%s686_s1 + $0x8] sm:$0xff]  ;;  %s694_s25 = smov (!%p266_p3, %s508_s25), 1  ;;  %v543_v2 = vld [vmem:[%s686_s1] sm:$0xff]  ;;  %vm304_vm0 = vcmask 392192   ;;  %vm322_vm1 = vcmask 388096  }
   0xc   : > { %313 = vmatpush.bf16.msra.mxu0 %v545_v0  ;;  %s513_s30 = sshll.u32 %s694_s25, 1  ;;  %v570_v4 = vmov 0.0   ;;  %v642_v5 = vld [vmem:[%s688_s3] sm:$0xff]  ;;  %v548_v13 = vld [vmem:[%s690_s5 + $0x10] sm:$0xff]  ;;  %vm328_vm2 = vcmask 386048   ;;  %vm331_vm3 = vcmask 388098  }
   0xd   : > { %s269_s12 = scalar_lea.vmem %s685_s0, %s513_s30  ;;  %323 = vst.msk [vmem:[#allocation2] sm:$0xf] %vm322_vm1, %v570_v4  ;;  %v558_v6 = vld [vmem:[%s687_s2] ss:$0 sm:$0xff]  ;;  %v337_v7 = vperm.slane %v642_v5, 0  ;;  %v341_v8 = vperm.slane %v642_v5, 1  ;;  %445 = vmatpush.bf16.msra.mxu1 %v548_v13 }
   0xe   : > { %v275_v3 = vld [vmem:[%s269_s12] sm:$0x3]  ;;  %324 = vst.msk [vmem:[#allocation2 + $0x4] sm:$0xf] %vm322_vm1, %v570_v4  ;;  %v345_v17 = vperm.slane %v642_v5, 2  ;;  %v547_v18 = vld [vmem:[%s690_s5 + $0x8] sm:$0xff] }
   0xf   : > { %325 = vst.msk [vmem:[#allocation2 + $0x8] sm:$0xf] %vm322_vm1, %v570_v4  ;;  %v546_v22 = vld [vmem:[%s690_s5] sm:$0xff]  ;;  %v349_v24 = vperm.slane %v642_v5, 3  ;;  %v353_v26 = vperm.slane %v642_v5, 4  ;;  %v357_v31 = vperm.slane %v642_v5, 5 }
  0x10   : > { %314 = vmatpush.bf16.msra.mxu0 %v544_v1  ;;  %326 = vst.msk [vmem:[#allocation2 + $0xc] sm:$0xf] %vm322_vm1, %v570_v4  ;;  %v361_v32 = vperm.slane %v642_v5, 6  ;;  %v365_v41 = vperm.slane %v642_v5, 7  ;;  %v559_v51 = vld [vmem:[%s688_s3 + $0x8] ss:$0 sm:$0xff] }
  0x11   : > { %446 = vmatpush.bf16.msra.mxu1 %v547_v18  ;;  %v560_v1 = vld [vmem:[%s689_s4] ss:$0 sm:$0xff]  ;;  %s514_s8 = sshll.u32 %s694_s25, 2 }
  0x12   : > { %s273_s11 = scalar_lea.vmem %s692_s7, %s514_s8 }
  0x14   : > { %315 = vmatpush.bf16.msra.mxu0 %v543_v2  ;;  %v336_v10 = vld [vmem:[#allocation2] sm:$0x3]  ;;  %v344_v19 = vld [vmem:[#allocation2 + $0x2] sm:$0x3] }
  0x15   : > { %v340_v11 = vld [vmem:[#allocation2 + $0x1] sm:$0x3]  ;;  %v338_v15 = vmul.f32 %v337_v7, %v336_v10  ;;  %v346_v21 = vmul.f32 %v345_v17, %v344_v19  ;;  %447 = vmatpush.bf16.msra.mxu1 %v546_v22 }
  0x16   : > { %v342_v16 = vmul.f32 %v341_v8, %v340_v11 }
  0x17   : > { %527 = vmatmul.msk.bf16.vlgmr.msra.gmra.mxu0 %vm304_vm0, %v275_v3  ;;  %v396_v54 = vld [vmem:[#allocation2 + $0xc] sm:$0x3]  ;;  %v402_v4 = vld [vmem:[#allocation2 + $0xe] sm:$0x3] }
  0x18   : > { %v343_v20 = vadd.f32 %v342_v16, %v338_v15  ;;  %v397_v61 = vmul.f32 %v396_v54, %v361_v32  ;;  %v399_v62 = vld [vmem:[#allocation2 + $0xd] sm:$0x3]  ;;  %v403_v10 = vmul.f32 %v559_v51, %v402_v4  ;;  %v561_v16 = vld [vmem:[%s691_s6] ss:$0 sm:$0xff] }
  0x1a   : > { %v347_v25 = vadd.f32 %v346_v21, %v343_v20 }
  0x94   : > { %v317_v9 = vpop.f32.mrf.mxu0 }
  0x95   : > { %v318_v12 = vadd.f32 %v558_v6, %v317_v9 }
  0x97   : > { %v321_v14 = vmax.f32 %v318_v12, 0.0 }
  0x99   : > { %329 = vst.msk [vmem:[#allocation2 + $0x5] sm:$0x3] %vm328_vm2, %v321_v14 }
  0x9a   : > { %332 = vst.msk [vmem:[#allocation2 + $0x7] sm:$0xc] %vm331_vm3, %v321_v14 }
  0x9c   : > { %v319_v23 = vpop.f32.mrf.mxu0 }
  0xa0   : > { %v348_v27 = vld [vmem:[#allocation2 + $0x4] sm:$0x3]  ;;  %v356_v30 = vld [vmem:[#allocation2 + $0x6] sm:$0x3] }
  0xa1   : > { %v352_v28 = vld [vmem:[#allocation2 + $0x5] sm:$0x3]  ;;  %v350_v29 = vmul.f32 %v349_v24, %v348_v27  ;;  %v360_v40 = vld [vmem:[#allocation2 + $0x8] sm:$0x3]  ;;  %v358_v44 = vmul.f32 %v357_v31, %v356_v30  ;;  %v368_v55 = vld [vmem:[#allocation2 + $0xa] sm:$0x3] }
  0xa2   : > { %v377_v33 = vld [vmem:[#allocation2 + $0x4] sm:$0x3]  ;;  %v383_v35 = vld [vmem:[#allocation2 + $0x6] sm:$0x3]  ;;  %v354_v37 = vmul.f32 %v353_v26, %v352_v28  ;;  %v386_v42 = vld [vmem:[#allocation2 + $0x8] sm:$0x3]  ;;  %v362_v50 = vmul.f32 %v361_v32, %v360_v40  ;;  %v370_v0 = vmul.f32 %v559_v51, %v368_v55 }
  0xa3   : > { %v380_v34 = vld [vmem:[#allocation2 + $0x5] sm:$0x3]  ;;  %v351_v36 = vadd.f32 %v350_v29, %v347_v25  ;;  %v378_v38 = vmul.f32 %v377_v33, %v337_v7  ;;  %v384_v46 = vmul.f32 %v383_v35, %v345_v17  ;;  %v364_v47 = vld [vmem:[#allocation2 + $0x9] sm:$0x3]  ;;  %v387_v53 = vmul.f32 %v386_v42, %v349_v24 }
  0xa4   : > { %v381_v39 = vmul.f32 %v380_v34, %v341_v8  ;;  %v389_v48 = vld [vmem:[#allocation2 + $0x9] sm:$0x3]  ;;  %v366_v58 = vmul.f32 %v365_v41, %v364_v47  ;;  %v400_v7 = vmul.f32 %v399_v62, %v365_v41 }
  0xa5   : > { %v355_v43 = vadd.f32 %v354_v37, %v351_v36  ;;  %v392_v56 = vld [vmem:[#allocation2 + $0xa] sm:$0x3]  ;;  %v390_v60 = vmul.f32 %v389_v48, %v353_v26 }
  0xa6   : > { %v382_v45 = vadd.f32 %v381_v39, %v378_v38  ;;  %v393_v3 = vmul.f32 %v392_v56, %v357_v31 }
  0xa7   : > { %v359_v49 = vadd.f32 %v358_v44, %v355_v43 }
  0xa8   : > { %v385_v52 = vadd.f32 %v384_v46, %v382_v45 }
  0xa9   : > { %v363_v57 = vadd.f32 %v362_v50, %v359_v49 }
  0xaa   : > { %v388_v59 = vadd.f32 %v387_v53, %v385_v52 }
  0xab   : > { %v367_v63 = vadd.f32 %v366_v58, %v363_v57 }
  0xac   : > { %v391_v2 = vadd.f32 %v390_v60, %v388_v59 }
  0xad   : > { %v371_v5 = vadd.f32 %v370_v0, %v367_v63 }
  0xae   : > { %v394_v6 = vadd.f32 %v393_v3, %v391_v2 }
  0xaf   : > { %v375_v8 = vadd.f32 %v560_v1, %v371_v5 }
  0xb0   : > { %v398_v9 = vadd.f32 %v397_v61, %v394_v6 }
  0xb1   : > { %376 = vst.msk [vmem:[#allocation3] sm:$0x3] %vm328_vm2, %v375_v8 }
  0xb2   : > { %v401_v11 = vadd.f32 %v400_v7, %v398_v9 }
  0xb4   : > { %v404_v12 = vadd.f32 %v403_v10, %v401_v11 }
  0xb6   : > { %v405_v13 = vadd.f32 %v560_v1, %v404_v12 }
  0xb8   : > { %406 = vst.msk [vmem:[#allocation3 + $0x2] sm:$0x3] %vm328_vm2, %v405_v13 }
  0xbf   : > { %v407_v14 = vld [vmem:[#allocation3] sm:$0xf] }
  0xc0   : > { %v408_v15 = vpack.c.bf16 %v407_v14, %v407_v14 }
  0xc2   : > { %540 = vmatmul.msk.bf16.vlgmr.msra.gmra.mxu1 %vm304_vm0, %v408_v15 }
 0x13f   : > { %v449_v17 = vpop.f32.mrf.mxu1 }
 0x140   : > { %v450_v18 = vadd.f32 %v561_v16, %v449_v17 }
 0x142   : > { %v453_v19 = vmax.f32 %v450_v18, 0.0 }
 0x144   : > { %454 = vst.msk [vmem:[%s273_s11] sm:$0xf] %vm322_vm1, %v453_v19 }
 0x147   : > { %v451_v20 = vpop.f32.mrf.mxu1 }
 0x148 PF: > { %s17_s24 = sadd.s32 1, %s568_s24  }
 0x149   : > { %p14_p4 = scmp.ge.s32.totalorder %s17_s24, 4  }
 0x14b   :  { %16 = sbr.rel (!%p14_p4) target bundleno = 1 (0x1), region = 81 }

// kernel: shufflenet_v2_backbone.54
= control target key start
LH: loop header
LB: loop body
LE: loop exit
PB: predicated region body
PF: predicated region fallthrough
CT: control target
= control target key end

     0   :  { %vm68_vm0 = vcmask 785408   ;;  %vm86_vm1 = vcmask 779264   ;;  %s171_s1 = inlined_call_operand.vmem [shape: bf16[96,96], index: 1, kind: input, shape index: {}]   ;;  %s172_s2 = inlined_call_operand.vmem [shape: f32[1,96], index: 2, kind: input, shape index: {}]   ;;  %s173_s0 = inlined_call_operand.vmem [shape: bf16[2,96], index: 0, kind: input, shape index: {}]   ;;  %s174_s3 = inlined_call_operand.vmem [shape: f32[2,96], index: 3, kind: output, shape index: {}]  }
   0x1   :  { %v122_v0 = vld [vmem:[%s171_s1 + $0x28] sm:$0xff]  ;;  %v121_v1 = vld [vmem:[%s171_s1 + $0x20] sm:$0xff]  ;;  %v120_v2 = vld [vmem:[%s171_s1 + $0x18] sm:$0xff] }
   0x2   :  { %74 = vmatpush.bf16.msra.mxu0 %v122_v0  ;;  %v119_v3 = vld [vmem:[%s171_s1 + $0x10] sm:$0xff]  ;;  %v118_v4 = vld [vmem:[%s171_s1 + $0x8] sm:$0xff]  ;;  %v117_v5 = vld [vmem:[%s171_s1] sm:$0xff] }
   0x3   :  { %v15_v6 = vld [vmem:[%s173_s0] sm:$0x1] }
   0x4   :  { %v123_v7 = vld [vmem:[%s172_s2] ss:$0 sm:$0xff] }
   0x6   :  { %75 = vmatpush.bf16.msra.mxu0 %v121_v1 }
   0xa   :  { %76 = vmatpush.bf16.msra.mxu0 %v120_v2 }
   0xe   :  { %77 = vmatpush.bf16.msra.mxu0 %v119_v3 }
  0x12   :  { %78 = vmatpush.bf16.msra.mxu0 %v118_v4 }
  0x16   :  { %79 = vmatpush.bf16.msra.mxu0 %v117_v5 }
  0x19   :  { %116 = vmatmul.msk.bf16.vlgmr.msra.gmra.mxu0 %vm68_vm0, %v15_v6 }
  0x96   :  { %v81_v8 = vpop.f32.mrf.mxu0 }
  0x97   :  { %v82_v9 = vadd.f32 %v123_v7, %v81_v8 }
  0x99   :  { %v85_v10 = vmax.f32 %v82_v9, 0.0 }
  0x9b   :  { %87 = vst.msk [vmem:[%s174_s3] sm:$0x3] %vm86_vm1, %v85_v10 }
  0x9e   :  { %v83_v11 = vpop.f32.mrf.mxu0 }

// kernel: shufflenet_v2_backbone.55
= control target key start
LH: loop header
LB: loop body
LE: loop exit
PB: predicated region body
PF: predicated region fallthrough
CT: control target
= control target key end

     0   :  { %vm68_vm0 = vcmask 785408   ;;  %s170_s1 = inlined_call_operand.vmem [shape: bf16[96,96], index: 1, kind: input, shape index: {}]   ;;  %s171_s2 = inlined_call_operand.vmem [shape: f32[1,96], index: 2, kind: input, shape index: {}]   ;;  %s172_s0 = inlined_call_operand.vmem [shape: bf16[8,96], index: 0, kind: input, shape index: {}]   ;;  %s173_s3 = inlined_call_operand.vmem [shape: f32[8,96], index: 3, kind: output, shape index: {}]  }
   0x1   :  { %v121_v0 = vld [vmem:[%s170_s1 + $0x28] sm:$0xff]  ;;  %v120_v1 = vld [vmem:[%s170_s1 + $0x20] sm:$0xff]  ;;  %v119_v2 = vld [vmem:[%s170_s1 + $0x18] sm:$0xff] }
   0x2   :  { %74 = vmatpush.bf16.msra.mxu0 %v121_v0  ;;  %v118_v3 = vld [vmem:[%s170_s1 + $0x10] sm:$0xff]  ;;  %v117_v4 = vld [vmem:[%s170_s1 + $0x8] sm:$0xff]  ;;  %v116_v5 = vld [vmem:[%s170_s1] sm:$0xff] }
   0x3   :  { %v15_v6 = vld [vmem:[%s172_s0] sm:$0xf] }
   0x4   :  { %v122_v7 = vld [vmem:[%s171_s2] ss:$0 sm:$0xff] }
   0x6   :  { %75 = vmatpush.bf16.msra.mxu0 %v120_v1 }
   0xa   :  { %76 = vmatpush.bf16.msra.mxu0 %v119_v2 }
   0xe   :  { %77 = vmatpush.bf16.msra.mxu0 %v118_v3 }
  0x12   :  { %78 = vmatpush.bf16.msra.mxu0 %v117_v4 }
  0x16   :  { %79 = vmatpush.bf16.msra.mxu0 %v116_v5 }
  0x19   :  { %115 = vmatmul.msk.bf16.vlgmr.msra.gmra.mxu0 %vm68_vm0, %v15_v6 }
  0x96   :  { %v81_v8 = vpop.f32.mrf.mxu0 }
  0x97   :  { %v82_v9 = vadd.f32 %v122_v7, %v81_v8 }
  0x99   :  { %v85_v10 = vmax.f32 %v82_v9, 0.0 }
  0x9b   :  { %86 = vst.msk [vmem:[%s173_s3] sm:$0xff] %vm68_vm0, %v85_v10 }
  0x9e   :  { %v83_v11 = vpop.f32.mrf.mxu0 }

// kernel: shufflenet_v2_backbone.58
= control target key start
LH: loop header
LB: loop body
LE: loop exit
PB: predicated region body
PF: predicated region fallthrough
CT: control target
= control target key end

     0   :  { %s633_s24 = smov 0   ;;  %s710_s0 = inlined_call_operand.vmem [shape: bf16[2,1,96], index: 0, kind: input, shape index: {}]   ;;  %s711_s1 = inlined_call_operand.vmem [shape: bf16[96,96], index: 1, kind: input, shape index: {}]   ;;  %s712_s2 = inlined_call_operand.vmem [shape: f32[1,96], index: 2, kind: input, shape index: {}]   ;;  %s713_s3 = inlined_call_operand.vmem [shape: f32[9,96], index: 3, kind: input, shape index: {}]   ;;  %s714_s4 = inlined_call_operand.vmem [shape: f32[1,96], index: 4, kind: input, shape index: {}]   ;;  %s715_s5 = inlined_call_operand.vmem [shape: bf16[96,96], index: 5, kind: input, shape index: {}]   ;;  %s716_s6 = inlined_call_operand.vmem [shape: f32[1,96], index: 6, kind: input, shape index: {}]   ;;  %s717_s7 = inlined_call_operand.vmem [shape: f32[2,1,96], index: 7, kind: output, shape index: {}]  }
   0x1 LB: > { %s506_s25 = sadd.s32 4294967295, %s590_s24   ;;  %p510_p0 = scmp.ge.s32.totalorder %s590_s24, 1  ;;  %s590_s24 = sphi %s633_s24, %s17_s24  }
   0x2   : > { %p235_p1 = scmp.lt.s32.totalorder %s590_s24, 3 }
   0x4   : > { %p236_p2 = pnand %p510_p0, %p235_p1 }
   0x5   : > { %p263_p3 = scmp.lt.s32.totalorder (!%p236_p2), %s506_s25, 1 }
   0x6   : > { %239 = sbr.rel (%p236_p2) target bundleno = 331 (0x14b), region = 48 }
   0xb   : > { %v568_v0 = vld [vmem:[%s711_s1 + $0x28] sm:$0xff]  ;;  %v567_v1 = vld [vmem:[%s711_s1 + $0x20] sm:$0xff]  ;;  %v566_v2 = vld [vmem:[%s711_s1 + $0x18] sm:$0xff]  ;;  %s719_s25 = smov (!%p263_p3, %s506_s25), 1  ;;  %vm320_vm0 = vcmask 785408   ;;  %vm338_vm1 = vcmask 780288  }
   0xc   : > { %326 = vmatpush.bf16.msra.mxu0 %v568_v0  ;;  %v565_v3 = vld [vmem:[%s711_s1 + $0x10] sm:$0xff]  ;;  %v564_v4 = vld [vmem:[%s711_s1 + $0x8] sm:$0xff]  ;;  %v563_v5 = vld [vmem:[%s711_s1] sm:$0xff]  ;;  %s265_s17 = scalar_lea.vmem %s710_s0, %s719_s25  ;;  %v592_v7 = vmov 0.0   ;;  %vm343_vm2 = vcmask 778240   ;;  %s268_s21 = scalar_lea.vmem %s717_s7, %s719_s25 }
   0xd   : > { %v270_v6 = vld [vmem:[%s265_s17] sm:$0x1]  ;;  %339 = vst.msk [vmem:[#allocation2] sm:$0x7] %vm338_vm1, %v592_v7  ;;  %v574_v8 = vld [vmem:[%s715_s5 + $0x28] sm:$0xff]  ;;  %v572_v10 = vld [vmem:[%s715_s5 + $0x18] sm:$0xff] }
   0xe   : > { %340 = vst.msk [vmem:[#allocation2 + $0x4] sm:$0x7] %vm338_vm1, %v592_v7  ;;  %449 = vmatpush.bf16.msra.mxu1 %v574_v8  ;;  %v573_v9 = vld [vmem:[%s715_s5 + $0x20] sm:$0xff]  ;;  %v571_v12 = vld [vmem:[%s715_s5 + $0x10] sm:$0xff]  ;;  %v570_v14 = vld [vmem:[%s715_s5 + $0x8] sm:$0xff] }
   0xf   : > { %341 = vst.msk [vmem:[#allocation2 + $0x8] sm:$0x7] %vm338_vm1, %v592_v7  ;;  %v345_v11 = vld [vmem:[%s713_s3] sm:$0xff]  ;;  %v346_v46 = vld [vmem:[%s713_s3 + $0x8] sm:$0x1] }
  0x10   : > { %327 = vmatpush.bf16.msra.mxu0 %v567_v1  ;;  %v353_v13 = vrot.slane %v345_v11, 1  ;;  %v283_v17 = vld [vmem:[%s712_s2] sm:$0x1]  ;;  %v358_v21 = vrot.slane %v345_v11, 2  ;;  %v363_v28 = vrot.slane %v345_v11, 3  ;;  %v368_v33 = vrot.slane %v345_v11, 4 }
  0x11   : > { %v569_v18 = vld [vmem:[%s715_s5] sm:$0xff]  ;;  %v373_v34 = vrot.slane %v345_v11, 5  ;;  %v379_v37 = vrot.slane %v345_v11, 6  ;;  %v384_v42 = vrot.slane %v345_v11, 7 }
  0x12   : > { %450 = vmatpush.bf16.msra.mxu1 %v573_v9  ;;  %v347_v53 = vld [vmem:[%s714_s4] sm:$0x1] }
  0x13   : > { %v407_v58 = vld [vmem:[%s716_s6] sm:$0x1] }
  0x14   : > { %328 = vmatpush.bf16.msra.mxu0 %v566_v2  ;;  %v348_v15 = vld [vmem:[#allocation2] sm:$0x1]  ;;  %v351_v16 = vld [vmem:[#allocation2 + $0x1] sm:$0x1]  ;;  %v357_v23 = vld [vmem:[#allocation2 + $0x2] sm:$0x1] }
  0x15   : > { %v349_v19 = vmul.f32 %v348_v15, %v345_v11  ;;  %v355_v20 = vmul.f32 %v353_v13, %v351_v16  ;;  %v360_v27 = vmul.f32 %v358_v21, %v357_v23  ;;  %v362_v29 = vld [vmem:[#allocation2 + $0x4] sm:$0x1]  ;;  %v372_v35 = vld [vmem:[#allocation2 + $0x6] sm:$0x1] }
  0x16   : > { %451 = vmatpush.bf16.msra.mxu1 %v572_v10  ;;  %v365_v31 = vmul.f32 %v363_v28, %v362_v29  ;;  %v378_v39 = vld [vmem:[#allocation2 + $0x8] sm:$0x1]  ;;  %v375_v41 = vmul.f32 %v373_v34, %v372_v35  ;;  %v383_v43 = vld [vmem:[#allocation2 + $0x9] sm:$0x1]  ;;  %v388_v47 = vld [vmem:[#allocation2 + $0xa] sm:$0x1] }
  0x17   : > { %v356_v26 = vadd.f32 %v355_v20, %v349_v19  ;;  %v381_v45 = vmul.f32 %v379_v37, %v378_v39  ;;  %v386_v49 = vmul.f32 %v384_v42, %v383_v43  ;;  %v389_v51 = vmul.f32 %v388_v47, %v346_v46 }
  0x18   : > { %329 = vmatpush.bf16.msra.mxu0 %v565_v3 }
  0x19   : > { %v361_v30 = vadd.f32 %v360_v27, %v356_v26 }
  0x1a   : > { %452 = vmatpush.bf16.msra.mxu1 %v571_v12 }
  0x1b   : > { %v366_v36 = vadd.f32 %v365_v31, %v361_v30 }
  0x1c   : > { %330 = vmatpush.bf16.msra.mxu0 %v564_v4 }
  0x1e   : > { %453 = vmatpush.bf16.msra.mxu1 %v570_v14 }
  0x20   : > { %331 = vmatpush.bf16.msra.mxu0 %v563_v5 }
  0x22   : > { %454 = vmatpush.bf16.msra.mxu1 %v569_v18 }
  0x23   : > { %535 = vmatmul.msk.bf16.vlgmr.msra.gmra.mxu0 %vm320_vm0, %v270_v6 }
  0xa0   : > { %v333_v22 = vpop.f32.mrf.mxu0 }
  0xa1   : > { %v334_v24 = vadd.f32 %v333_v22, %v283_v17 }
  0xa3   : > { %v337_v25 = vmax.f32 %v334_v24, 0.0 }
  0xa5   : > { %344 = vst.msk [vmem:[#allocation2 + $0x5] sm:$0x1] %vm343_vm2, %v337_v25 }
  0xa8   : > { %v335_v32 = vpop.f32.mrf.mxu0 }
  0xac   : > { %v367_v38 = vld [vmem:[#allocation2 + $0x5] sm:$0x1] }
  0xad   : > { %v370_v40 = vmul.f32 %v368_v33, %v367_v38 }
  0xaf   : > { %v371_v44 = vadd.f32 %v370_v40, %v366_v36 }
  0xb1   : > { %v376_v48 = vadd.f32 %v375_v41, %v371_v44 }
  0xb3   : > { %v382_v50 = vadd.f32 %v381_v45, %v376_v48 }
  0xb5   : > { %v387_v52 = vadd.f32 %v386_v49, %v382_v50 }
  0xb7   : > { %v390_v54 = vadd.f32 %v389_v51, %v387_v52 }
  0xb9   : > { %v391_v55 = vadd.f32 %v390_v54, %v347_v53 }
  0xbb   : > { %392 = vst.msk [vmem:[#allocation3] sm:$0x1] %vm343_vm2, %v391_v55 }
  0xc2   : > { %v393_v56 = vld [vmem:[#allocation3] sm:$0x1] }
  0xc3   : > { %v394_v57 = vpack.c.bf16 %v393_v56, %v393_v56 }
  0xc5   : > { %560 = vmatmul.msk.bf16.vlgmr.msra.gmra.mxu1 %vm320_vm0, %v394_v57 }
 0x142   : > { %v456_v59 = vpop.f32.mrf.mxu1 }
 0x143   : > { %v457_v60 = vadd.f32 %v456_v59, %v407_v58 }
 0x145   : > { %v460_v61 = vmax.f32 %v457_v60, 0.0 }
 0x147   : > { %461 = vst.msk [vmem:[%s268_s21] sm:$0x1] %vm343_vm2, %v460_v61 }
 0x14a   : > { %v458_v62 = vpop.f32.mrf.mxu1 }
 0x14b PF: > { %s17_s24 = sadd.s32 1, %s590_s24  }
 0x14c   : > { %p14_p4 = scmp.ge.s32.totalorder %s17_s24, 4  }
 0x14e   :  { %16 = sbr.rel (!%p14_p4) target bundleno = 1 (0x1), region = 80 }

// kernel: shufflenet_v2_backbone.61
= control target key start
LH: loop header
LB: loop body
LE: loop exit
PB: predicated region body
PF: predicated region fallthrough
CT: control target
= control target key end

     0   :  { %vm615_vm0 = vcmask 523264   ;;  %vm848_vm1 = vcmask 1041408   ;;  %vm850_vm2 = vcmask 1045508   ;;  %vm852_vm3 = vcmask 1043456   ;;  %s1995_s1 = inlined_call_operand.vmem [shape: bf16[192,1024], index: 1, kind: input, shape index: {}]   ;;  %s1996_s0 = inlined_call_operand.vmem [shape: bf16[2,192], index: 0, kind: input, shape index: {}]   ;;  %s1997_s2 = inlined_call_operand.vmem [shape: f32[1,1024], index: 2, kind: input, shape index: {}]   ;;  %s1998_s3 = inlined_call_operand.vmem [shape: f32[2,1024], index: 3, kind: output, shape index: {}]  }
   0x1   :  { %v1091_v0 = vld [vmem:[%s1995_s1 + $0x1c0] sm:$0xf]  ;;  %v1313_v5 = vld [vmem:[%s1995_s1 + $0x1c4] sm:$0xf]  ;;  %v1099_v44 = vld [vmem:[%s1995_s1 + $0x1c8] sm:$0xf] }
   0x2   :  { %v1317_v1 = vld [vmem:[%s1995_s1 + $0x1dc] sm:$0xf0]  ;;  %v1093_v6 = vld [vmem:[%s1995_s1 + $0x1e0] sm:$0xf0]  ;;  %v1318_v46 = vld [vmem:[%s1995_s1 + $0x1e4] sm:$0xf0] }
   0x3   :  { %v1219_v2 = vld [vmem:[%s1995_s1 + $0x2c0] sm:$0xf]  ;;  %v1092_v3 = vor.u32 %v1317_v1, %v1091_v0  ;;  %v1096_v8 = vor.u32 %v1313_v5, %v1093_v6  ;;  %v1345_v9 = vld [vmem:[%s1995_s1 + $0x2c4] sm:$0xf]  ;;  %v1227_v47 = vld [vmem:[%s1995_s1 + $0x2c8] sm:$0xf]  ;;  %v1100_v54 = vor.u32 %v1318_v46, %v1099_v44 }
   0x4   :  { %v1349_v4 = vld [vmem:[%s1995_s1 + $0x2dc] sm:$0xf0]  ;;  %v1221_v10 = vld [vmem:[%s1995_s1 + $0x2e0] sm:$0xf0]  ;;  %v1350_v48 = vld [vmem:[%s1995_s1 + $0x2e4] sm:$0xf0] }
   0x5   :  { %v1220_v7 = vor.u32 %v1349_v4, %v1219_v2  ;;  %v1059_v11 = vld [vmem:[%s1995_s1 + $0x180] sm:$0xf]  ;;  %618 = vmatpush.bf16.msra.mxu0 %v1092_v3  ;;  %v1224_v12 = vor.u32 %v1345_v9, %v1221_v10  ;;  %644 = vmatpush.bf16.msra.mxu2 %v1096_v8  ;;  %v1305_v18 = vld [vmem:[%s1995_s1 + $0x184] sm:$0xf]  ;;  %v1228_v58 = vor.u32 %v1350_v48, %v1227_v47  ;;  %v1067_v59 = vld [vmem:[%s1995_s1 + $0x188] sm:$0xf] }
   0x6   :  { %v1309_v13 = vld [vmem:[%s1995_s1 + $0x19c] sm:$0xf0]  ;;  %v1061_v19 = vld [vmem:[%s1995_s1 + $0x1a0] sm:$0xf0]  ;;  %v1310_v60 = vld [vmem:[%s1995_s1 + $0x1a4] sm:$0xf0] }
   0x7   :  { %v1187_v14 = vld [vmem:[%s1995_s1 + $0x280] sm:$0xf]  ;;  %635 = vmatpush.bf16.msra.mxu1 %v1220_v7  ;;  %v1060_v16 = vor.u32 %v1309_v13, %v1059_v11  ;;  %v1337_v20 = vld [vmem:[%s1995_s1 + $0x284] sm:$0xf]  ;;  %661 = vmatpush.bf16.msra.mxu3 %v1224_v12  ;;  %v1064_v21 = vor.u32 %v1305_v18, %v1061_v19  ;;  %v1195_v62 = vld [vmem:[%s1995_s1 + $0x288] sm:$0xf]  ;;  %v1068_v3 = vor.u32 %v1310_v60, %v1067_v59 }
   0x8   :  { %v1341_v15 = vld [vmem:[%s1995_s1 + $0x29c] sm:$0xf0]  ;;  %v1189_v22 = vld [vmem:[%s1995_s1 + $0x2a0] sm:$0xf0]  ;;  %v1342_v0 = vld [vmem:[%s1995_s1 + $0x2a4] sm:$0xf0] }
   0x9   :  { %v1188_v17 = vor.u32 %v1341_v15, %v1187_v14  ;;  %v1027_v23 = vld [vmem:[%s1995_s1 + $0x140] sm:$0xf]  ;;  %v1192_v25 = vor.u32 %v1337_v20, %v1189_v22  ;;  %v1297_v28 = vld [vmem:[%s1995_s1 + $0x144] sm:$0xf]  ;;  %619 = vmatpush.bf16.msra.mxu0 %v1060_v16  ;;  %645 = vmatpush.bf16.msra.mxu2 %v1064_v21  ;;  %v1035_v6 = vld [vmem:[%s1995_s1 + $0x148] sm:$0xf]  ;;  %v1196_v8 = vor.u32 %v1342_v0, %v1195_v62 }
   0xa   :  { %v1301_v24 = vld [vmem:[%s1995_s1 + $0x15c] sm:$0xf0]  ;;  %v1029_v30 = vld [vmem:[%s1995_s1 + $0x160] sm:$0xf0]  ;;  %v1302_v7 = vld [vmem:[%s1995_s1 + $0x164] sm:$0xf0] }
   0xb   :  { %v1155_v26 = vld [vmem:[%s1995_s1 + $0x240] sm:$0xf]  ;;  %v1028_v29 = vor.u32 %v1301_v24, %v1027_v23  ;;  %v1329_v31 = vld [vmem:[%s1995_s1 + $0x244] sm:$0xf]  ;;  %636 = vmatpush.bf16.msra.mxu1 %v1188_v17  ;;  %v1032_v34 = vor.u32 %v1297_v28, %v1029_v30  ;;  %662 = vmatpush.bf16.msra.mxu3 %v1192_v25  ;;  %v1163_v10 = vld [vmem:[%s1995_s1 + $0x248] sm:$0xf]  ;;  %v1036_v16 = vor.u32 %v1302_v7, %v1035_v6 }
   0xc   :  { %v1333_v27 = vld [vmem:[%s1995_s1 + $0x25c] sm:$0xf0]  ;;  %v1157_v32 = vld [vmem:[%s1995_s1 + $0x260] sm:$0xf0]  ;;  %v1334_v12 = vld [vmem:[%s1995_s1 + $0x264] sm:$0xf0] }
   0xd   :  { %v1156_v33 = vor.u32 %v1333_v27, %v1155_v26  ;;  %v995_v35 = vld [vmem:[%s1995_s1 + $0x100] sm:$0xf]  ;;  %v1160_v38 = vor.u32 %v1329_v31, %v1157_v32  ;;  %v1289_v40 = vld [vmem:[%s1995_s1 + $0x104] sm:$0xf]  ;;  %620 = vmatpush.bf16.msra.mxu0 %v1028_v29  ;;  %646 = vmatpush.bf16.msra.mxu2 %v1032_v34  ;;  %v1003_v19 = vld [vmem:[%s1995_s1 + $0x108] sm:$0xf]  ;;  %v1164_v21 = vor.u32 %v1334_v12, %v1163_v10 }
   0xe   :  { %v1293_v36 = vld [vmem:[%s1995_s1 + $0x11c] sm:$0xf0]  ;;  %v997_v41 = vld [vmem:[%s1995_s1 + $0x120] sm:$0xf0]  ;;  %v1294_v20 = vld [vmem:[%s1995_s1 + $0x124] sm:$0xf0] }
   0xf   :  { %v1123_v37 = vld [vmem:[%s1995_s1 + $0x200] sm:$0xf]  ;;  %v1321_v42 = vld [vmem:[%s1995_s1 + $0x204] sm:$0xf]  ;;  %v996_v45 = vor.u32 %v1293_v36, %v995_v35  ;;  %637 = vmatpush.bf16.msra.mxu1 %v1156_v33  ;;  %v1000_v50 = vor.u32 %v1289_v40, %v997_v41  ;;  %663 = vmatpush.bf16.msra.mxu3 %v1160_v38  ;;  %v1131_v23 = vld [vmem:[%s1995_s1 + $0x208] sm:$0xf]  ;;  %v1004_v30 = vor.u32 %v1294_v20, %v1003_v19 }
  0x10   :  { %v1325_v39 = vld [vmem:[%s1995_s1 + $0x21c] sm:$0xf0]  ;;  %v1125_v43 = vld [vmem:[%s1995_s1 + $0x220] sm:$0xf0]  ;;  %v1326_v24 = vld [vmem:[%s1995_s1 + $0x224] sm:$0xf0] }
  0x11   :  { %v1124_v49 = vor.u32 %v1325_v39, %v1123_v37  ;;  %v963_v51 = vld [vmem:[%s1995_s1 + $0xc0] sm:$0xf]  ;;  %v1128_v53 = vor.u32 %v1321_v42, %v1125_v43  ;;  %v1281_v55 = vld [vmem:[%s1995_s1 + $0xc4] sm:$0xf]  ;;  %621 = vmatpush.bf16.msra.mxu0 %v996_v45  ;;  %647 = vmatpush.bf16.msra.mxu2 %v1000_v50  ;;  %v1107_v25 = vld [vmem:[%s1995_s1 + $0x1d0] sm:$0xf]  ;;  %v1132_v37 = vor.u32 %v1326_v24, %v1131_v23 }
  0x12   :  { %v1285_v52 = vld [vmem:[%s1995_s1 + $0xdc] sm:$0xf0]  ;;  %v965_v56 = vld [vmem:[%s1995_s1 + $0xe0] sm:$0xf0]  ;;  %v1319_v27 = vld [vmem:[%s1995_s1 + $0x1ec] sm:$0xf0] }
  0x13   :  { %v15_v57 = vld [vmem:[%s1996_s0] sm:$0x3]  ;;  %v964_v61 = vor.u32 %v1285_v52, %v963_v51  ;;  %638 = vmatpush.bf16.msra.mxu1 %v1124_v49  ;;  %v968_v63 = vor.u32 %v1281_v55, %v965_v56  ;;  %664 = vmatpush.bf16.msra.mxu3 %v1128_v53  ;;  %v1273_v4 = vld [vmem:[%s1995_s1 + $0x84] sm:$0xf]  ;;  %v971_v33 = vld [vmem:[%s1995_s1 + $0xc8] sm:$0xf]  ;;  %v1108_v41 = vor.u32 %v1319_v27, %v1107_v25 }
  0x14   :  { %131 = vst [vmem:[#allocation1] ss:$9 sm:$0xff] %v15_v57  ;;  %v931_v1 = vld [vmem:[%s1995_s1 + $0x80] sm:$0xf]  ;;  %v933_v5 = vld [vmem:[%s1995_s1 + $0xa0] sm:$0xf0] }
  0x15   :  { %v1277_v2 = vld [vmem:[%s1995_s1 + $0x9c] sm:$0xf0]  ;;  %622 = vmatpush.bf16.msra.mxu0 %v964_v61  ;;  %648 = vmatpush.bf16.msra.mxu2 %v968_v63  ;;  %v936_v11 = vor.u32 %v1273_v4, %v933_v5  ;;  %v1265_v17 = vld [vmem:[%s1995_s1 + $0x44] sm:$0xf]  ;;  %v1286_v34 = vld [vmem:[%s1995_s1 + $0xe4] sm:$0xf0] }
  0x16   :  { %v932_v9 = vor.u32 %v1277_v2, %v931_v1  ;;  %v899_v13 = vld [vmem:[%s1995_s1 + $0x40] sm:$0xf]  ;;  %v901_v18 = vld [vmem:[%s1995_s1 + $0x60] sm:$0xf0]  ;;  %v1314_v35 = vld [vmem:[%s1995_s1 + $0x1cc] sm:$0xf]  ;;  %v972_v43 = vor.u32 %v1286_v34, %v971_v33 }
  0x17   :  { %670 = vmatpush.bf16.msrb.mxu1 %v1100_v54  ;;  %687 = vmatpush.bf16.msrb.mxu3 %v1228_v58  ;;  %v1269_v14 = vld [vmem:[%s1995_s1 + $0x5c] sm:$0xf0]  ;;  %v904_v26 = vor.u32 %v1265_v17, %v901_v18  ;;  %v1257_v31 = vld [vmem:[%s1995_s1 + $0x4] sm:$0xf]  ;;  %v1101_v36 = vld [vmem:[%s1995_s1 + $0x1e8] sm:$0xf0] }
  0x18   :  { %v900_v22 = vor.u32 %v1269_v14, %v899_v13  ;;  %v867_v28 = vld [vmem:[%s1995_s1] sm:$0xf]  ;;  %v869_v32 = vld [vmem:[%s1995_s1 + $0x20] sm:$0xf0]  ;;  %v1346_v39 = vld [vmem:[%s1995_s1 + $0x2cc] sm:$0xf]  ;;  %v1104_v44 = vor.u32 %v1314_v35, %v1101_v36 }
  0x19   :  { %623 = vmatpush.bf16.msra.mxu0 %v932_v9  ;;  %649 = vmatpush.bf16.msra.mxu2 %v936_v11  ;;  %v1261_v29 = vld [vmem:[%s1995_s1 + $0x1c] sm:$0xf0]  ;;  %v1229_v40 = vld [vmem:[%s1995_s1 + $0x2e8] sm:$0xf0]  ;;  %v872_v42 = vor.u32 %v1257_v31, %v869_v32  ;;  %v1075_v45 = vld [vmem:[%s1995_s1 + $0x190] sm:$0xf] }
  0x1a   :  { %v868_v38 = vor.u32 %v1261_v29, %v867_v28  ;;  %v1311_v46 = vld [vmem:[%s1995_s1 + $0x1ac] sm:$0xf0]  ;;  %v939_v47 = vld [vmem:[%s1995_s1 + $0x88] sm:$0xf]  ;;  %v1232_v48 = vor.u32 %v1346_v39, %v1229_v40  ;;  %v1306_v50 = vld [vmem:[%s1995_s1 + $0x18c] sm:$0xf] }
  0x1b   :  { %v1538_v15 = vld [vmem:[#allocation1 + $0x9] sm:$0xff]  ;;  %671 = vmatpush.bf16.msrb.mxu1 %v1068_v3  ;;  %688 = vmatpush.bf16.msrb.mxu3 %v1196_v8  ;;  %v1076_v54 = vor.u32 %v1311_v46, %v1075_v45  ;;  %v1622_v55 = vld [vmem:[#allocation1] sm:$0xff]  ;;  %v1315_v19 = vld [vmem:[%s1995_s1 + $0x1d4] sm:$0xf] }
  0x1c   :  { %1250 = vmatmul.msk.bf16.vlgmr.msra.gmra.mxu3 %vm615_vm0, %v1538_v15  ;;  %1249 = vmatmul.msk.bf16.vlgmr.msra.gmra.mxu1 %vm615_vm0, %v1538_v15  ;;  %v1278_v49 = vld [vmem:[%s1995_s1 + $0xa4] sm:$0xf0]  ;;  %v1069_v51 = vld [vmem:[%s1995_s1 + $0x1a8] sm:$0xf0]  ;;  %v1043_v58 = vld [vmem:[%s1995_s1 + $0x150] sm:$0xf] }
  0x1d   :  { %624 = vmatpush.bf16.msra.mxu0 %v900_v22  ;;  %650 = vmatpush.bf16.msra.mxu2 %v904_v26  ;;  %v1338_v52 = vld [vmem:[%s1995_s1 + $0x28c] sm:$0xf]  ;;  %v940_v56 = vor.u32 %v1278_v49, %v939_v47  ;;  %v1072_v57 = vor.u32 %v1306_v50, %v1069_v51  ;;  %v1303_v59 = vld [vmem:[%s1995_s1 + $0x16c] sm:$0xf0]  ;;  %v907_v60 = vld [vmem:[%s1995_s1 + $0x48] sm:$0xf] }
  0x1e   :  { %v1197_v53 = vld [vmem:[%s1995_s1 + $0x2a8] sm:$0xf0]  ;;  %v1270_v62 = vld [vmem:[%s1995_s1 + $0x64] sm:$0xf0]  ;;  %v1044_v3 = vor.u32 %v1303_v59, %v1043_v58  ;;  %v1011_v4 = vld [vmem:[%s1995_s1 + $0x110] sm:$0xf] }
  0x1f   :  { %672 = vmatpush.bf16.msrb.mxu1 %v1036_v16  ;;  %689 = vmatpush.bf16.msrb.mxu3 %v1164_v21  ;;  %v1200_v61 = vor.u32 %v1338_v52, %v1197_v53  ;;  %v1298_v63 = vld [vmem:[%s1995_s1 + $0x14c] sm:$0xf]  ;;  %v908_v5 = vor.u32 %v1270_v62, %v907_v60  ;;  %v1295_v7 = vld [vmem:[%s1995_s1 + $0x12c] sm:$0xf0]  ;;  %v875_v8 = vld [vmem:[%s1995_s1 + $0x8] sm:$0xf] }
  0x20   :  { %v1037_v0 = vld [vmem:[%s1995_s1 + $0x168] sm:$0xf0]  ;;  %v1262_v9 = vld [vmem:[%s1995_s1 + $0x24] sm:$0xf0]  ;;  %v1235_v16 = vld [vmem:[%s1995_s1 + $0x2d0] sm:$0xf]  ;;  %v1012_v18 = vor.u32 %v1295_v7, %v1011_v4 }
  0x21   :  { %625 = vmatpush.bf16.msra.mxu0 %v868_v38  ;;  %651 = vmatpush.bf16.msra.mxu2 %v872_v42  ;;  %v1330_v1 = vld [vmem:[%s1995_s1 + $0x24c] sm:$0xf]  ;;  %v1040_v6 = vor.u32 %v1298_v63, %v1037_v0  ;;  %v1351_v17 = vld [vmem:[%s1995_s1 + $0x2ec] sm:$0xf0]  ;;  %v1109_v20 = vld [vmem:[%s1995_s1 + $0x1f0] sm:$0xf0]  ;;  %v876_v21 = vor.u32 %v1262_v9, %v875_v8 }
  0x22   :  { %v1165_v2 = vld [vmem:[%s1995_s1 + $0x268] sm:$0xf0]  ;;  %v979_v23 = vld [vmem:[%s1995_s1 + $0xd0] sm:$0xf]  ;;  %v1236_v26 = vor.u32 %v1351_v17, %v1235_v16  ;;  %v1112_v29 = vor.u32 %v1315_v19, %v1109_v20  ;;  %v1307_v33 = vld [vmem:[%s1995_s1 + $0x194] sm:$0xf] }
  0x23   :  { %673 = vmatpush.bf16.msrb.mxu1 %v1004_v30  ;;  %690 = vmatpush.bf16.msrb.mxu3 %v1132_v37  ;;  %v1168_v10 = vor.u32 %v1330_v1, %v1165_v2  ;;  %v1290_v11 = vld [vmem:[%s1995_s1 + $0x10c] sm:$0xf]  ;;  %v1287_v24 = vld [vmem:[%s1995_s1 + $0xec] sm:$0xf0]  ;;  %v1077_v34 = vld [vmem:[%s1995_s1 + $0x1b0] sm:$0xf0] }
  0x24   :  { %626 = vmatmul.bf16.vlgmr.msra.gmra.mxu0 %v1622_v55  ;;  %652 = vmatmul.bf16.vlgmr.msra.gmra.mxu2 %v1622_v55  ;;  %v1005_v12 = vld [vmem:[%s1995_s1 + $0x128] sm:$0xf0]  ;;  %v1203_v30 = vld [vmem:[%s1995_s1 + $0x290] sm:$0xf]  ;;  %v980_v32 = vor.u32 %v1287_v24, %v979_v23  ;;  %v1299_v45 = vld [vmem:[%s1995_s1 + $0x154] sm:$0xf] }
  0x25   :  { %696 = vmatpush.bf16.msrb.mxu0 %v1104_v44  ;;  %713 = vmatpush.bf16.msrb.mxu2 %v1232_v48  ;;  %v1322_v13 = vld [vmem:[%s1995_s1 + $0x20c] sm:$0xf]  ;;  %v1008_v22 = vor.u32 %v1290_v11, %v1005_v12  ;;  %v1343_v31 = vld [vmem:[%s1995_s1 + $0x2ac] sm:$0xf0]  ;;  %v1045_v46 = vld [vmem:[%s1995_s1 + $0x170] sm:$0xf0] }
  0x26   :  { %v1133_v14 = vld [vmem:[%s1995_s1 + $0x228] sm:$0xf0]  ;;  %v947_v36 = vld [vmem:[%s1995_s1 + $0x90] sm:$0xf]  ;;  %v1204_v38 = vor.u32 %v1343_v31, %v1203_v30  ;;  %v1048_v53 = vor.u32 %v1299_v45, %v1045_v46  ;;  %v1013_v59 = vld [vmem:[%s1995_s1 + $0x130] sm:$0xf0] }
  0x27   :  { %722 = vmatpush.bf16.msra.mxu3 %v1108_v41  ;;  %674 = vmatpush.bf16.msrb.mxu1 %v972_v43  ;;  %v1136_v25 = vor.u32 %v1322_v13, %v1133_v14  ;;  %v1282_v27 = vld [vmem:[%s1995_s1 + $0xcc] sm:$0xf]  ;;  %v1279_v37 = vld [vmem:[%s1995_s1 + $0xac] sm:$0xf0]  ;;  %v1080_v41 = vor.u32 %v1307_v33, %v1077_v34  ;;  %v1115_v60 = vld [vmem:[%s1995_s1 + $0x1d8] sm:$0xf] }
  0x28   :  { %v973_v28 = vld [vmem:[%s1995_s1 + $0xe8] sm:$0xf0]  ;;  %v1171_v42 = vld [vmem:[%s1995_s1 + $0x250] sm:$0xf]  ;;  %v948_v44 = vor.u32 %v1279_v37, %v947_v36  ;;  %v1347_v4 = vld [vmem:[%s1995_s1 + $0x2d4] sm:$0xf] }
  0x29   :  { %697 = vmatpush.bf16.msrb.mxu0 %v1072_v57  ;;  %714 = vmatpush.bf16.msrb.mxu2 %v1200_v61  ;;  %v976_v35 = vor.u32 %v1282_v27, %v973_v28  ;;  %v1274_v39 = vld [vmem:[%s1995_s1 + $0x8c] sm:$0xf]  ;;  %v1335_v43 = vld [vmem:[%s1995_s1 + $0x26c] sm:$0xf0]  ;;  %v1291_v57 = vld [vmem:[%s1995_s1 + $0x114] sm:$0xf] }
  0x2a   :  { %v941_v40 = vld [vmem:[%s1995_s1 + $0xa8] sm:$0xf0]  ;;  %v915_v48 = vld [vmem:[%s1995_s1 + $0x50] sm:$0xf]  ;;  %v1172_v50 = vor.u32 %v1335_v43, %v1171_v42  ;;  %v1320_v61 = vld [vmem:[%s1995_s1 + $0x1f4] sm:$0xf0] }
  0x2b   :  { %723 = vmatpush.bf16.msra.mxu3 %v1076_v54  ;;  %675 = vmatpush.bf16.msrb.mxu1 %v940_v56  ;;  %v944_v47 = vor.u32 %v1274_v39, %v941_v40  ;;  %v1271_v49 = vld [vmem:[%s1995_s1 + $0x6c] sm:$0xf0]  ;;  %v1266_v51 = vld [vmem:[%s1995_s1 + $0x4c] sm:$0xf]  ;;  %v1116_v7 = vor.u32 %v1320_v61, %v1115_v60  ;;  %v1316_v8 = vld [vmem:[%s1995_s1 + $0x1dc] sm:$0xf] }
  0x2c   :  { %1251 = vmatmul.msk.bf16.vlgmr.msrb.gmra.mxu3 %vm615_vm0, %v1538_v15  ;;  %v909_v52 = vld [vmem:[%s1995_s1 + $0x68] sm:$0xf0]  ;;  %v1139_v54 = vld [vmem:[%s1995_s1 + $0x210] sm:$0xf]  ;;  %v916_v58 = vor.u32 %v1271_v49, %v915_v48  ;;  %v1117_v9 = vld [vmem:[%s1995_s1 + $0x1f8] sm:$0xf0] }
  0x2d   :  { %698 = vmatpush.bf16.msrb.mxu0 %v1040_v6  ;;  %715 = vmatpush.bf16.msrb.mxu2 %v1168_v10  ;;  %v1327_v56 = vld [vmem:[%s1995_s1 + $0x22c] sm:$0xf0]  ;;  %v912_v62 = vor.u32 %v1266_v51, %v909_v52  ;;  %v1258_v1 = vld [vmem:[%s1995_s1 + $0xc] sm:$0xf]  ;;  %v1016_v6 = vor.u32 %v1291_v57, %v1013_v59  ;;  %v1283_v11 = vld [vmem:[%s1995_s1 + $0xd4] sm:$0xf] }
  0x2e   :  { %v883_v63 = vld [vmem:[%s1995_s1 + $0x10] sm:$0xf]  ;;  %v1140_v2 = vor.u32 %v1327_v56, %v1139_v54  ;;  %v981_v12 = vld [vmem:[%s1995_s1 + $0xf0] sm:$0xf0]  ;;  %v1083_v16 = vld [vmem:[%s1995_s1 + $0x198] sm:$0xf] }
  0x2f   :  { %724 = vmatpush.bf16.msra.mxu3 %v1044_v3  ;;  %676 = vmatpush.bf16.msrb.mxu1 %v908_v5  ;;  %v1263_v0 = vld [vmem:[%s1995_s1 + $0x2c] sm:$0xf0]  ;;  %v877_v3 = vld [vmem:[%s1995_s1 + $0x28] sm:$0xf0]  ;;  %v1237_v5 = vld [vmem:[%s1995_s1 + $0x2f0] sm:$0xf0] }
  0x30   :  { %v884_v10 = vor.u32 %v1263_v0, %v883_v63  ;;  %v880_v13 = vor.u32 %v1258_v1, %v877_v3  ;;  %v1240_v14 = vor.u32 %v1347_v4, %v1237_v5  ;;  %v1312_v17 = vld [vmem:[%s1995_s1 + $0x1b4] sm:$0xf0]  ;;  %v1339_v19 = vld [vmem:[%s1995_s1 + $0x294] sm:$0xf]  ;;  %v1085_v23 = vld [vmem:[%s1995_s1 + $0x1b8] sm:$0xf0] }
  0x31   :  { %699 = vmatpush.bf16.msrb.mxu0 %v1008_v22  ;;  %716 = vmatpush.bf16.msrb.mxu2 %v1136_v25  ;;  %v1205_v20 = vld [vmem:[%s1995_s1 + $0x2b0] sm:$0xf0]  ;;  %v1308_v22 = vld [vmem:[%s1995_s1 + $0x19c] sm:$0xf]  ;;  %v1084_v24 = vor.u32 %v1312_v17, %v1083_v16  ;;  %v1051_v28 = vld [vmem:[%s1995_s1 + $0x158] sm:$0xf] }
  0x32   :  { %v1275_v25 = vld [vmem:[%s1995_s1 + $0x94] sm:$0xf]  ;;  %v1208_v27 = vor.u32 %v1339_v19, %v1205_v20  ;;  %v1088_v30 = vor.u32 %v1308_v22, %v1085_v23  ;;  %v1300_v34 = vld [vmem:[%s1995_s1 + $0x15c] sm:$0xf]  ;;  %v1019_v40 = vld [vmem:[%s1995_s1 + $0x118] sm:$0xf] }
  0x33   :  { %725 = vmatpush.bf16.msra.mxu3 %v1012_v18  ;;  %677 = vmatpush.bf16.msrb.mxu1 %v876_v21  ;;  %v1120_v18 = vor.u32 %v1316_v8, %v1117_v9  ;;  %v984_v21 = vor.u32 %v1283_v11, %v981_v12  ;;  %v1331_v31 = vld [vmem:[%s1995_s1 + $0x254] sm:$0xf]  ;;  %v1292_v45 = vld [vmem:[%s1995_s1 + $0x11c] sm:$0xf]  ;;  %v1243_v48 = vld [vmem:[%s1995_s1 + $0x2d8] sm:$0xf] }
  0x34   :  { %1252 = vmatmul.msk.bf16.vlgmr.msrb.gmra.mxu2 %vm615_vm0, %v1538_v15  ;;  %v1267_v37 = vld [vmem:[%s1995_s1 + $0x54] sm:$0xf]  ;;  %v1352_v49 = vld [vmem:[%s1995_s1 + $0x2f4] sm:$0xf0]  ;;  %v1348_v57 = vld [vmem:[%s1995_s1 + $0x2dc] sm:$0xf] }
  0x35   :  { %748 = vmatpush.bf16.msra.mxu2 %v1112_v29  ;;  %700 = vmatpush.bf16.msrb.mxu0 %v976_v35  ;;  %v1304_v29 = vld [vmem:[%s1995_s1 + $0x174] sm:$0xf0]  ;;  %v1053_v35 = vld [vmem:[%s1995_s1 + $0x178] sm:$0xf0]  ;;  %v1323_v43 = vld [vmem:[%s1995_s1 + $0x214] sm:$0xf]  ;;  %v1244_v60 = vor.u32 %v1352_v49, %v1243_v48 }
  0x36   :  { %678 = vmatmul.bf16.vlgmr.msrb.gmra.mxu1 %v1622_v55  ;;  %v1052_v36 = vor.u32 %v1304_v29, %v1051_v28  ;;  %v1056_v42 = vor.u32 %v1300_v34, %v1053_v35  ;;  %v1259_v51 = vld [vmem:[%s1995_s1 + $0x14] sm:$0xf]  ;;  %v1288_v56 = vld [vmem:[%s1995_s1 + $0xf4] sm:$0xf0]  ;;  %v989_v63 = vld [vmem:[%s1995_s1 + $0xf8] sm:$0xf0] }
  0x37   :  { %739 = vmatpush.bf16.msra.mxu1 %v1236_v26  ;;  %726 = vmatpush.bf16.msra.mxu3 %v980_v32  ;;  %v949_v26 = vld [vmem:[%s1995_s1 + $0xb0] sm:$0xf0]  ;;  %v1280_v3 = vld [vmem:[%s1995_s1 + $0xb4] sm:$0xf0]  ;;  %v1213_v8 = vld [vmem:[%s1995_s1 + $0x2b8] sm:$0xf0] }
  0x38   :  { %v1173_v32 = vld [vmem:[%s1995_s1 + $0x270] sm:$0xf0]  ;;  %v952_v33 = vor.u32 %v1275_v25, %v949_v26  ;;  %v1211_v4 = vld [vmem:[%s1995_s1 + $0x298] sm:$0xf]  ;;  %v1276_v9 = vld [vmem:[%s1995_s1 + $0x9c] sm:$0xf] }
  0x39   :  { %749 = vmatpush.bf16.msra.mxu2 %v1080_v41  ;;  %701 = vmatpush.bf16.msrb.mxu0 %v944_v47  ;;  %v1176_v39 = vor.u32 %v1331_v31, %v1173_v32  ;;  %v1296_v41 = vld [vmem:[%s1995_s1 + $0x134] sm:$0xf0]  ;;  %v1021_v47 = vld [vmem:[%s1995_s1 + $0x138] sm:$0xf0]  ;;  %v885_v52 = vld [vmem:[%s1995_s1 + $0x30] sm:$0xf0] }
  0x3a   :  { %v1024_v59 = vor.u32 %v1292_v45, %v1021_v47  ;;  %v888_v61 = vor.u32 %v1259_v51, %v885_v52  ;;  %v1344_v5 = vld [vmem:[%s1995_s1 + $0x2b4] sm:$0xf0]  ;;  %v1332_v20 = vld [vmem:[%s1995_s1 + $0x25c] sm:$0xf] }
  0x3b   :  { %740 = vmatpush.bf16.msra.mxu1 %v1204_v38  ;;  %727 = vmatpush.bf16.msra.mxu3 %v948_v44  ;;  %v917_v38 = vld [vmem:[%s1995_s1 + $0x70] sm:$0xf0]  ;;  %v1212_v12 = vor.u32 %v1344_v5, %v1211_v4  ;;  %v1272_v16 = vld [vmem:[%s1995_s1 + $0x74] sm:$0xf0]  ;;  %v1268_v22 = vld [vmem:[%s1995_s1 + $0x5c] sm:$0xf] }
  0x3c   :  { %v1141_v44 = vld [vmem:[%s1995_s1 + $0x230] sm:$0xf0]  ;;  %v920_v46 = vor.u32 %v1267_v37, %v917_v38  ;;  %v1179_v17 = vld [vmem:[%s1995_s1 + $0x258] sm:$0xf]  ;;  %v925_v23 = vld [vmem:[%s1995_s1 + $0x78] sm:$0xf0] }
  0x3d   :  { %750 = vmatpush.bf16.msra.mxu2 %v1048_v53  ;;  %702 = vmatpush.bf16.msrb.mxu0 %v912_v62  ;;  %v987_v53 = vld [vmem:[%s1995_s1 + $0xd8] sm:$0xf]  ;;  %v1144_v54 = vor.u32 %v1323_v43, %v1141_v44  ;;  %v1284_v62 = vld [vmem:[%s1995_s1 + $0xdc] sm:$0xf]  ;;  %v928_v31 = vor.u32 %v1268_v22, %v925_v23 }
  0x3e   :  { %v988_v0 = vor.u32 %v1288_v56, %v987_v53  ;;  %v891_v26 = vld [vmem:[%s1995_s1 + $0x18] sm:$0xf]  ;;  %v1324_v32 = vld [vmem:[%s1995_s1 + $0x21c] sm:$0xf] }
  0x3f   :  { %741 = vmatpush.bf16.msra.mxu1 %v1172_v50  ;;  %728 = vmatpush.bf16.msra.mxu3 %v916_v58  ;;  %v1020_v50 = vor.u32 %v1296_v41, %v1019_v40  ;;  %v1245_v58 = vld [vmem:[%s1995_s1 + $0x2f8] sm:$0xf0]  ;;  %v1264_v28 = vld [vmem:[%s1995_s1 + $0x34] sm:$0xf0] }
  0x40   :  { %v1248_v1 = vor.u32 %v1348_v57, %v1245_v58  ;;  %v1147_v29 = vld [vmem:[%s1995_s1 + $0x218] sm:$0xf]  ;;  %v1260_v34 = vld [vmem:[%s1995_s1 + $0x1c] sm:$0xf] }
  0x41   :  { %751 = vmatpush.bf16.msra.mxu2 %v1016_v6  ;;  %703 = vmatpush.bf16.msrb.mxu0 %v880_v13  ;;  %v992_v6 = vor.u32 %v1284_v62, %v989_v63  ;;  %v923_v13 = vld [vmem:[%s1995_s1 + $0x58] sm:$0xf]  ;;  %v893_v35 = vld [vmem:[%s1995_s1 + $0x38] sm:$0xf0] }
  0x43   :  { %742 = vmatpush.bf16.msra.mxu1 %v1140_v2  ;;  %729 = vmatpush.bf16.msra.mxu3 %v884_v10  ;;  %v955_v2 = vld [vmem:[%s1995_s1 + $0x98] sm:$0xf]  ;;  %v957_v10 = vld [vmem:[%s1995_s1 + $0xb8] sm:$0xf0] }
  0x44   :  { %704 = vmatmul.bf16.vlgmr.msrb.gmra.mxu0 %v1622_v55  ;;  %v956_v11 = vor.u32 %v1280_v3, %v955_v2  ;;  %v960_v19 = vor.u32 %v1276_v9, %v957_v10 }
  0x45   :  { %800 = vmatpush.bf16.msra.mxu0 %v1120_v18  ;;  %752 = vmatpush.bf16.msra.mxu2 %v984_v21  ;;  %v1336_v18 = vld [vmem:[%s1995_s1 + $0x274] sm:$0xf0]  ;;  %v1181_v21 = vld [vmem:[%s1995_s1 + $0x278] sm:$0xf0] }
  0x46   :  { %730 = vmatmul.bf16.vlgmr.msra.gmra.mxu3 %v1622_v55  ;;  %1253 = vmatmul.msk.bf16.vlgmr.msra.gmra.mxu1 %vm615_vm0, %v1538_v15  ;;  %v1180_v25 = vor.u32 %v1336_v18, %v1179_v17 }
  0x47   :  { %774 = vmatpush.bf16.msrb.mxu1 %v1116_v7  ;;  %765 = vmatpush.bf16.msrb.mxu3 %v1240_v14  ;;  %v1340_v7 = vld [vmem:[%s1995_s1 + $0x29c] sm:$0xf] }
  0x48   :  { %v1216_v14 = vor.u32 %v1340_v7, %v1213_v8 }
  0x49   :  { %801 = vmatpush.bf16.msra.mxu0 %v1088_v30  ;;  %753 = vmatpush.bf16.msra.mxu2 %v952_v33  ;;  %v1328_v30 = vld [vmem:[%s1995_s1 + $0x234] sm:$0xf0]  ;;  %v1149_v33 = vld [vmem:[%s1995_s1 + $0x238] sm:$0xf0] }
  0x4a   :  { %v1148_v37 = vor.u32 %v1328_v30, %v1147_v29  ;;  %v1152_v38 = vor.u32 %v1324_v32, %v1149_v33 }
  0x4b   :  { %775 = vmatpush.bf16.msrb.mxu1 %v1084_v24  ;;  %766 = vmatpush.bf16.msrb.mxu3 %v1208_v27  ;;  %v924_v24 = vor.u32 %v1272_v16, %v923_v13  ;;  %v1184_v27 = vor.u32 %v1332_v20, %v1181_v21 }
  0x4d   :  { %802 = vmatpush.bf16.msra.mxu0 %v1056_v42  ;;  %754 = vmatpush.bf16.msra.mxu2 %v920_v46 }
  0x4f   :  { %776 = vmatpush.bf16.msrb.mxu1 %v1052_v36  ;;  %767 = vmatpush.bf16.msrb.mxu3 %v1176_v39  ;;  %v892_v36 = vor.u32 %v1264_v28, %v891_v26  ;;  %v896_v39 = vor.u32 %v1260_v34, %v893_v35 }
  0x51   :  { %803 = vmatpush.bf16.msra.mxu0 %v1024_v59  ;;  %755 = vmatpush.bf16.msra.mxu2 %v888_v61 }
  0x53   :  { %777 = vmatpush.bf16.msrb.mxu1 %v1020_v50  ;;  %768 = vmatpush.bf16.msrb.mxu3 %v1144_v54 }
  0x54   :  { %756 = vmatmul.bf16.vlgmr.msra.gmra.mxu2 %v1622_v55 }
  0x55   :  { %817 = vmatpush.bf16.msrb.mxu2 %v1248_v1  ;;  %804 = vmatpush.bf16.msra.mxu0 %v992_v6 }
  0x56   :  { %1254 = vmatmul.msk.bf16.vlgmr.msrb.gmra.mxu3 %vm615_vm0, %v1538_v15 }
  0x57   :  { %791 = vmatpush.bf16.msra.mxu3 %v1244_v60  ;;  %778 = vmatpush.bf16.msrb.mxu1 %v988_v0 }
  0x59   :  { %818 = vmatpush.bf16.msrb.mxu2 %v1216_v14  ;;  %805 = vmatpush.bf16.msra.mxu0 %v960_v19 }
  0x5b   :  { %779 = vmatpush.bf16.msrb.mxu1 %v956_v11  ;;  %792 = vmatpush.bf16.msra.mxu3 %v1212_v12 }
  0x5d   :  { %819 = vmatpush.bf16.msrb.mxu2 %v1184_v27  ;;  %806 = vmatpush.bf16.msra.mxu0 %v928_v31 }
  0x5f   :  { %780 = vmatpush.bf16.msrb.mxu1 %v924_v24  ;;  %793 = vmatpush.bf16.msra.mxu3 %v1180_v25 }
  0x61   :  { %820 = vmatpush.bf16.msrb.mxu2 %v1152_v38  ;;  %807 = vmatpush.bf16.msra.mxu0 %v896_v39 }
  0x63   :  { %781 = vmatpush.bf16.msrb.mxu1 %v892_v36  ;;  %794 = vmatpush.bf16.msra.mxu3 %v1148_v37 }
  0x64   :  { %808 = vmatmul.bf16.vlgmr.msra.gmra.mxu0 %v1622_v55  ;;  %1256 = vmatmul.msk.bf16.vlgmr.msrb.gmra.mxu2 %vm615_vm0, %v1538_v15 }
  0x66   :  { %782 = vmatmul.bf16.vlgmr.msrb.gmra.mxu1 %v1622_v55  ;;  %1255 = vmatmul.msk.bf16.vlgmr.msra.gmra.mxu3 %vm615_vm0, %v1538_v15  ;;  %v112_v55 = vld [vmem:[%s1997_s2] sm:$0xff] }
  0x67   :  { %v115_v51 = vperm.slane %v112_v55, 1  ;;  %v116_v52 = vperm.slane %v112_v55, 2  ;;  %v114_v15 = vperm.slane %v112_v55, 0  ;;  %v117_v60 = vperm.slane %v112_v55, 3 }
  0x68   :  { %v119_v21 = vperm.slane %v112_v55, 5  ;;  %v121_v26 = vperm.slane %v112_v55, 7  ;;  %v118_v28 = vperm.slane %v112_v55, 4  ;;  %v120_v29 = vperm.slane %v112_v55, 6 }
  0x99   :  { %v640_v40 = vpop.f32.mrf.mxu1 }
  0x9f   :  { %v666_v41 = vpop.f32.mrf.mxu3 }
  0xa1   :  { %v642_v42 = vpop.f32.mrf.mxu1  ;;  %v627_v43 = vpop.f32.mrf.mxu0 }
  0xa2   :  { %v628_v59 = vadd.f32 %v627_v43, %v114_v15 }
  0xa4   :  { %v641_v0 = vadd.f32 %v640_v40, %v628_v59 }
  0xa6   :  { %v826_v7 = vmax.f32 %v641_v0, 0.0 }
  0xa7   :  { %v668_v44 = vpop.f32.mrf.mxu3  ;;  %v653_v45 = vpop.f32.mrf.mxu2 }
  0xa8   :  { %v654_v54 = vadd.f32 %v653_v45, %v115_v51 }
  0xa9   :  { %v629_v46 = vpop.f32.mrf.mxu0 }
  0xaa   :  { %v667_v58 = vadd.f32 %v666_v41, %v654_v54 }
  0xac   :  { %v827_v63 = vmax.f32 %v667_v58, 0.0 }
  0xae   :  { %v842_v6 = vrot.slane %v827_v63, 6 }
  0xaf   :  { %v692_v47 = vpop.f32.mrf.mxu3  ;;  %v655_v49 = vpop.f32.mrf.mxu2 }
  0xb0   :  { %v849_v13 = vsel %vm848_vm1, %v826_v7, %v842_v6 }
  0xb3   :  { %v679_v48 = vpop.f32.mrf.mxu1 }
  0xb4   :  { %v680_v57 = vadd.f32 %v679_v48, %v116_v52 }
  0xb6   :  { %v693_v61 = vadd.f32 %v692_v47, %v680_v57 }
  0xb7   :  { %v694_v50 = vpop.f32.mrf.mxu3  ;;  %v718_v56 = vpop.f32.mrf.mxu2 }
  0xb8   :  { %v828_v4 = vmax.f32 %v693_v61, 0.0 }
  0xba   :  { %v843_v10 = vrot.slane %v828_v4, 4 }
  0xbb   :  { %v681_v53 = vpop.f32.mrf.mxu1 }
  0xbf   :  { %v720_v3 = vpop.f32.mrf.mxu2 }
  0xc1   :  { %v705_v62 = vpop.f32.mrf.mxu0 }
  0xc2   :  { %v706_v1 = vadd.f32 %v705_v62, %v117_v60 }
  0xc3   :  { %v744_v2 = vpop.f32.mrf.mxu1 }
  0xc4   :  { %v719_v5 = vadd.f32 %v718_v56, %v706_v1 }
  0xc6   :  { %v829_v8 = vmax.f32 %v719_v5, 0.0 }
  0xc8   :  { %v844_v11 = vrot.slane %v829_v8, 2 }
  0xc9   :  { %v731_v9 = vpop.f32.mrf.mxu3  ;;  %v707_v12 = vpop.f32.mrf.mxu0 }
  0xca   :  { %v851_v14 = vsel %vm850_vm2, %v843_v10, %v844_v11  ;;  %v732_v32 = vadd.f32 %v731_v9, %v118_v28 }
  0xcb   :  { %v746_v16 = vpop.f32.mrf.mxu1  ;;  %v853_v17 = vsel %vm852_vm3, %v849_v13, %v851_v14 }
  0xcc   :  { %859 = vst [vmem:[%s1998_s3] sm:$0xff] %v853_v17  ;;  %v745_v40 = vadd.f32 %v744_v2, %v732_v32 }
  0xce   :  { %v830_v46 = vmax.f32 %v745_v40, 0.0 }
  0xd1   :  { %v733_v18 = vpop.f32.mrf.mxu3 }
  0xd7   :  { %v757_v19 = vpop.f32.mrf.mxu2 }
  0xd8   :  { %v758_v23 = vadd.f32 %v757_v19, %v119_v21 }
  0xd9   :  { %v770_v20 = vpop.f32.mrf.mxu3 }
  0xda   :  { %v771_v30 = vadd.f32 %v770_v20, %v758_v23 }
  0xdc   :  { %v831_v35 = vmax.f32 %v771_v30, 0.0 }
  0xde   :  { %v845_v43 = vrot.slane %v831_v35, 6 }
  0xdf   :  { %v759_v24 = vpop.f32.mrf.mxu2 }
  0xe0   :  { %v854_v48 = vsel %vm848_vm1, %v830_v46, %v845_v43 }
  0xe1   :  { %v772_v25 = vpop.f32.mrf.mxu3  ;;  %v809_v27 = vpop.f32.mrf.mxu0 }
  0xe2   :  { %v810_v31 = vadd.f32 %v809_v27, %v121_v26 }
  0xe3   :  { %v783_v22 = vpop.f32.mrf.mxu1 }
  0xe4   :  { %v784_v33 = vadd.f32 %v783_v22, %v120_v29 }
  0xe7   :  { %v822_v36 = vpop.f32.mrf.mxu2 }
  0xe8   :  { %v823_v38 = vadd.f32 %v822_v36, %v810_v31 }
  0xe9   :  { %v796_v37 = vpop.f32.mrf.mxu3  ;;  %v811_v39 = vpop.f32.mrf.mxu0 }
  0xea   :  { %v797_v41 = vadd.f32 %v796_v37, %v784_v33  ;;  %v833_v42 = vmax.f32 %v823_v38, 0.0 }
  0xeb   :  { %v785_v34 = vpop.f32.mrf.mxu1 }
  0xec   :  { %v832_v44 = vmax.f32 %v797_v41, 0.0  ;;  %v847_v45 = vrot.slane %v833_v42, 2 }
  0xee   :  { %v846_v47 = vrot.slane %v832_v44, 4 }
  0xef   :  { %v824_v55 = vpop.f32.mrf.mxu2 }
  0xf0   :  { %v855_v49 = vsel %vm850_vm2, %v846_v47, %v847_v45 }
  0xf1   :  { %v856_v50 = vsel %vm852_vm3, %v854_v48, %v855_v49  ;;  %v798_v51 = vpop.f32.mrf.mxu3 }
  0xf2   :  { %860 = vst [vmem:[%s1998_s3 + $0x8] sm:$0xff] %v856_v50 }

</bundles_post_ra>
